<compile_context>
chip_gen: v6e
topology: v6e:2x2x1
jax: 0.10.0
libtpu: 0.0.40
codegen_flags: <defaults>
</compile_context>

<pallas_src>
import functools

import jax
import jax.numpy as jnp
from jax import lax
from jax.experimental import pallas as pl
from jax.experimental.pallas import tpu as pltpu


def _cell_update(gates, c, H):
    # Full-vreg activations, then slice (i, f, g, o) -- PyTorch gate order.
    # NOTE: if production H is a multiple of 128, apply tanh only to the g slice and
    # sigmoid only to i/f/o (clean 128-lane sub-blocks); at H=32 the whole (TB, 4H)
    # gates tensor is a single vreg, so the full-vreg form is already minimal.
    sig = jax.nn.sigmoid(gates)
    th = jnp.tanh(gates)
    i = sig[:, 0 * H:1 * H]
    f = sig[:, 1 * H:2 * H]
    g = th[:, 2 * H:3 * H]
    o = sig[:, 3 * H:4 * H]
    c_new = f * c + i * g
    h_new = o * jnp.tanh(c_new)
    return h_new, c_new


def lstm_classifier_kernel(x_ref,
                           wih1_ref, b1_ref, whh1f_ref, whh1b_ref,
                           wih2_ref, whh2_ref, b2_ref,
                           wfc_ref, bfc_ref,
                           out_ref,
                           xw1_s, h12_s, xw2_s,
                           *, T, TB, D, H, unroll):
    # ---- Phase 1: ONE big MXU matmul for BOTH layer-1 directions' input gates. ----
    x = x_ref[...].reshape(T * TB, D)                 # time-major rows
    xw1 = jnp.dot(x, wih1_ref[...], preferred_element_type=jnp.float32) + b1_ref[...]
    xw1_s[...] = xw1.reshape(T, TB, 8 * H)

    whh1f = whh1f_ref[...]
    whh1b = whh1b_ref[...]
    zeros = jnp.zeros((TB, H), jnp.float32)

    # ---- Phase 2: fused layer-1 forward + backward recurrences. The two chains are
    # independent; interleaving them hides each other's serialized MXU/EUP latency.
    # Only the small h @ W_hh matmuls remain on the serial path. ----
    def body_l1(i, carry):
        hf, cf, hb, cb = carry
        tb = T - 1 - i
        gates_f = xw1_s[i]                            # (TB, 8H)
        gates_b = xw1_s[tb]
        gf = gates_f[:, 0:4 * H] + jnp.dot(hf, whh1f,
                                           preferred_element_type=jnp.float32)
        gb = gates_b[:, 4 * H:8 * H] + jnp.dot(hb, whh1b,
                                               preferred_element_type=jnp.float32)
        hf, cf = _cell_update(gf, cf, H)
        hb, cb = _cell_update(gb, cb, H)
        h12_s[i, :, 0:H] = hf                         # forward states -> left half
        h12_s[tb, :, H:2 * H] = hb                    # backward states -> right half
        return (hf, cf, hb, cb)

    lax.fori_loop(0, T, body_l1, (zeros, zeros, zeros, zeros), unroll=unroll)

    # ---- Phase 3: layer-2 input gates for the whole sequence in ONE (T*TB, 2H) @
    # (2H, 4H) matmul over the packed [h1f | h1b] scratch, bias folded in. ----
    h12 = h12_s[...].reshape(T * TB, 2 * H).astype(wih2_ref.dtype)
    xw2 = jnp.dot(h12, wih2_ref[...], preferred_element_type=jnp.float32) + b2_ref[...]
    xw2_s[...] = xw2.reshape(T, TB, 4 * H)

    whh2 = whh2_ref[...]

    # ---- Phase 4: layer-2 backward recurrence: one h @ W_hh matmul per serial step. ----
    def body_l2(i, carry):
        h2, c2 = carry
        g2 = xw2_s[T - 1 - i] + jnp.dot(h2, whh2, preferred_element_type=jnp.float32)
        return _cell_update(g2, c2, H)

    h2, _ = lax.fori_loop(0, T, body_l2, (zeros, zeros), unroll=unroll)

    # ---- Classifier head: VPU multiply + lane reduce (avoids an (H,1) MXU matmul). ----
    out_ref[...] = (jnp.sum(h2 * wfc_ref[...], axis=-1, keepdims=True) + bfc_ref[...])


def lstm_classifier_forward(x_btd, params, *, batch_tile=8, use_bf16_matmuls=False):
    """batch_tile: batch rows per grid step (multiple of 8). On v7x use ~B/2 so the
    "parallel" grid axis feeds both TensorCores; on single-TC v5e/v6e prefer
    batch_tile >= B (one grid step) since the recurrence is latency-bound."""
    B, T, D = x_btd.shape
    H = params["whh1f"].shape[0]

    TB = int(batch_tile)
    assert TB % 8 == 0, "batch_tile must be a multiple of the f32 sublane tile (8)"

    # Time-major (T, B, D); pad batch up to a multiple of the batch tile.
    x_tbd = jnp.transpose(x_btd.astype(jnp.float32), (1, 0, 2))
    Bp = ((B + TB - 1) // TB) * TB
    if Bp != B:
        x_tbd = jnp.pad(x_tbd, ((0, 0), (0, Bp - B), (0, 0)))

    # Wrapper-time weight fusion: layer-1 fwd|bwd input weights side by side so x is
    # streamed through the MXU once (N = 8H), and the single (2H, 4H) layer-2 weight.
    wih1 = jnp.concatenate([params["wih1f"], params["wih1b"]], axis=1)   # (D, 8H)
    b1 = jnp.concatenate([params["b1f"], params["b1b"]], axis=1)         # (1, 8H)
    wih2 = params["wih2"]                                                # (2H, 4H)

    # bf16 only for the big hoisted matmuls (v6e/v7x); recurrent + cell math stays f32.
    mm_dtype = jnp.bfloat16 if use_bf16_matmuls else jnp.float32
    x_tbd = x_tbd.astype(mm_dtype)
    wih1 = wih1.astype(mm_dtype)
    wih2 = wih2.astype(mm_dtype)

    kernel = functools.partial(lstm_classifier_kernel, T=T, TB=TB, D=D, H=H,
                               unroll=min(T, 8))

    grid = (Bp // TB,)
    full = lambda j: (0, 0)           # whole-array weight blocks, same every grid step

    in_specs = [
        pl.BlockSpec((T, TB, D), lambda j: (0, j, 0)),      # x (time-major batch tile)
        pl.BlockSpec((D, 8 * H), full),                     # wih1 = [wih1f | wih1b]
        pl.BlockSpec((1, 8 * H), full),                     # b1
        pl.BlockSpec((H, 4 * H), full),                     # whh1f
        pl.BlockSpec((H, 4 * H), full),                     # whh1b
        pl.BlockSpec((2 * H, 4 * H), full),                 # wih2 ([fwd-half; bwd-half])
        pl.BlockSpec((H, 4 * H), full),                     # whh2
        pl.BlockSpec((1, 4 * H), full),                     # b2
        pl.BlockSpec((1, H), full),                         # wfc
        pl.BlockSpec((1, 1), full),                         # bfc
    ]
    out_specs = pl.BlockSpec((TB, 1), lambda j: (j, 0))

    itm = 2 if use_bf16_matmuls else 4
    flops = int(2 * T * Bp * D * 8 * H            # x @ [wih1f|wih1b]
                + 2 * T * Bp * 2 * H * 4 * H      # [h1f|h1b] @ wih2
                + 3 * T * 2 * Bp * H * 4 * H      # 3 recurrent (TB,H)@(H,4H) per step
                + 2 * Bp * H)                     # classifier head
    transcendentals = int(3 * T * Bp * 9 * H)
    bytes_accessed = int(itm * (T * Bp * D + D * 8 * H + 2 * H * 4 * H)
                         + 4 * (3 * H * 4 * H + 12 * H + H + 1)
                         + 4 * 2 * T * Bp * (8 * H + 2 * H + 4 * H)   # scratch r+w
                         + 4 * Bp)

    out = pl.pallas_call(
        kernel,
        out_shape=jax.ShapeDtypeStruct((Bp, 1), jnp.float32),
        grid=grid,
        in_specs=in_specs,
        out_specs=out_specs,
        scratch_shapes=[
            pltpu.VMEM((T, TB, 8 * H), jnp.float32),   # fused layer-1 input gates
            pltpu.VMEM((T, TB, 2 * H), jnp.float32),   # packed [h1f | h1b] sequence
            pltpu.VMEM((T, TB, 4 * H), jnp.float32),   # hoisted layer-2 input gates
        ],
        compiler_params=pltpu.CompilerParams(
            dimension_semantics=("parallel",),         # 2 TCs on v7x; harmless on 1-TC
            vmem_limit_bytes=32 * 1024 * 1024),
        cost_estimate=pl.CostEstimate(flops=flops,
                                      transcendentals=transcendentals,
                                      bytes_accessed=bytes_accessed),
    )(x_tbd, wih1, b1, params["whh1f"], params["whh1b"],
      wih2, params["whh2"], params["b2"], params["wfc"], params["bfc"])
    return out[:B]


def make_params(key, input_size, hidden_size):
    """Deterministic params matching PyTorch LSTM/Linear shapes (pre-transposed)."""
    H = hidden_size
    k = 1.0 / jnp.sqrt(jnp.float32(H))
    keys = jax.random.split(key, 14)
    u = lambda kk, shape: jax.random.uniform(kk, shape, jnp.float32, -k, k)

    def lstm_dir(ks, in_dim):
        w_ih = u(ks[0], (4 * H, in_dim))   # PyTorch weight_ih layout
        w_hh = u(ks[1], (4 * H, H))        # PyTorch weight_hh layout
        b_ih = u(ks[2], (4 * H,))
        b_hh = u(ks[3], (4 * H,))
        return w_ih.T, w_hh.T, (b_ih + b_hh).reshape(1, 4 * H)

    wih1f, whh1f, b1f = lstm_dir(keys[0:4], input_size)          # layer 0, forward
    wih1b, whh1b, b1b = lstm_dir(keys[4:8], input_size)          # layer 0, reverse
    wih2, whh2, b2 = lstm_dir(keys[8:12], 2 * hidden_size)       # layer 1, reverse
    # (layer-1 forward direction never feeds hn[-1] and is not materialized)

    w_fc = u(keys[12], (1, H))             # nn.Linear(H, 1).weight
    b_fc = u(keys[13], (1,))               # nn.Linear(H, 1).bias
    return dict(wih1f=wih1f, whh1f=whh1f, b1f=b1f,
                wih1b=wih1b, whh1b=whh1b, b1b=b1b,
                wih2=wih2, whh2=whh2, b2=b2,
                wfc=w_fc, bfc=b_fc.reshape(1, 1))


def reference_forward(x_btd, params):
    """Pure-JAX reference mirroring PyTorch nn.LSTM semantics (exact f32 matmuls)."""
    hi = jax.lax.Precision.HIGHEST
    dot = lambda a, b: jnp.dot(a, b, precision=hi)
    x = jnp.transpose(x_btd, (1, 0, 2)).astype(jnp.float32)
    T, B, _ = x.shape
    H = params["whh1f"].shape[0]

    def cell(xt, h, c, wih, whh, b):
        gates = dot(xt, wih) + dot(h, whh) + b
        i, f, g, o = jnp.split(gates, 4, axis=-1)
        c = jax.nn.sigmoid(f) * c + jax.nn.sigmoid(i) * jnp.tanh(g)
        h = jax.nn.sigmoid(o) * jnp.tanh(c)
        return h, c

    h = c = jnp.zeros((B, H), jnp.float32)
    h1f = []
    for t in range(T):
        h, c = cell(x[t], h, c, params["wih1f"], params["whh1f"], params["b1f"])
        h1f.append(h)
    h = c = jnp.zeros((B, H), jnp.float32)
    h1b = [None] * T
    for t in range(T - 1, -1, -1):
        h, c = cell(x[t], h, c, params["wih1b"], params["whh1b"], params["b1b"])
        h1b[t] = h
    h = c = jnp.zeros((B, H), jnp.float32)
    for t in range(T - 1, -1, -1):
        xin = jnp.concatenate([h1f[t], h1b[t]], axis=-1)
        h, c = cell(xin, h, c, params["wih2"], params["whh2"], params["b2"])
    return dot(h, params["wfc"].T) + params["bfc"]


if __name__ == "__main__":
    B, T, D, H = 16, 8, 16, 32
    key = jax.random.PRNGKey(0)
    kx, kp = jax.random.split(key)
    x = jax.random.normal(kx, (B, T, D), jnp.float32)   # batch_first, like PyTorch
    params = make_params(kp, input_size=D, hidden_size=H)

    ref = reference_forward(x, params)

    # f32 path with a 2-way batch-parallel grid (feeds both TensorCores on v7x).
    out = jax.block_until_ready(lstm_classifier_forward(x, params, batch_tile=8))
    assert out.shape == (B, 1)
    assert jnp.allclose(out, ref, atol=2e-3, rtol=2e-3), (out, ref)

    # bf16 hoisted-matmul path (v6e/v7x recommendation); single grid step, f32 cell math.
    out_bf = jax.block_until_ready(
        lstm_classifier_forward(x, params, batch_tile=16, use_bf16_matmuls=True))
    assert jnp.allclose(out_bf, ref, atol=5e-2, rtol=5e-2), (out_bf, ref)

    print("KERNEL_OK")
</pallas_src>

<mosaic_0001>
module attributes {stable_mosaic.version = 11 : i64} {
  func.func @lstm_classifier_kernel(%arg0: i32, %arg1: memref<8x8x16xf32, #tpu.memory_space<vmem>>, %arg2: memref<16x256xf32, #tpu.memory_space<vmem>>, %arg3: memref<1x256xf32, #tpu.memory_space<vmem>>, %arg4: memref<32x128xf32, #tpu.memory_space<vmem>>, %arg5: memref<32x128xf32, #tpu.memory_space<vmem>>, %arg6: memref<64x128xf32, #tpu.memory_space<vmem>>, %arg7: memref<32x128xf32, #tpu.memory_space<vmem>>, %arg8: memref<1x128xf32, #tpu.memory_space<vmem>>, %arg9: memref<1x32xf32, #tpu.memory_space<vmem>>, %arg10: memref<1x1xf32, #tpu.memory_space<vmem>>, %arg11: memref<8x1xf32, #tpu.memory_space<vmem>>, %arg12: memref<8x8x256xf32, #tpu.memory_space<vmem>>, %arg13: memref<8x8x64xf32, #tpu.memory_space<vmem>>, %arg14: memref<8x8x128xf32, #tpu.memory_space<vmem>>) attributes {dimension_semantics = [#tpu.dimension_semantics<parallel>], iteration_bounds = array<i64: 2>, scalar_prefetch = 0 : i64, scratch_operands = 3 : i64, tpu.core_type = #tpu.core_type<tc>, window_params = [{transform_indices = @transform_0, window_bounds = array<i64: 8, 8, 16>}, {pipeline_mode = #tpu.pipeline_mode<synchronous>, transform_indices = @transform_1, window_bounds = array<i64: 16, 256>}, {pipeline_mode = #tpu.pipeline_mode<synchronous>, transform_indices = @transform_2, window_bounds = array<i64: 1, 256>}, {pipeline_mode = #tpu.pipeline_mode<synchronous>, transform_indices = @transform_3, window_bounds = array<i64: 32, 128>}, {pipeline_mode = #tpu.pipeline_mode<synchronous>, transform_indices = @transform_4, window_bounds = array<i64: 32, 128>}, {pipeline_mode = #tpu.pipeline_mode<synchronous>, transform_indices = @transform_5, window_bounds = array<i64: 64, 128>}, {pipeline_mode = #tpu.pipeline_mode<synchronous>, transform_indices = @transform_6, window_bounds = array<i64: 32, 128>}, {pipeline_mode = #tpu.pipeline_mode<synchronous>, transform_indices = @transform_7, window_bounds = array<i64: 1, 128>}, {pipeline_mode = #tpu.pipeline_mode<synchronous>, transform_indices = @transform_8, window_bounds = array<i64: 1, 32>}, {pipeline_mode = #tpu.pipeline_mode<synchronous>, transform_indices = @transform_9, window_bounds = array<i64: 1, 1>}, {transform_indices = @transform_10, window_bounds = array<i64: 8, 1>}]} {
    %c0 = arith.constant 0 : index
    %c0_0 = arith.constant 0 : index
    %c0_1 = arith.constant 0 : index
    %0 = vector.load %arg1[%c0, %c0_0, %c0_1] : memref<8x8x16xf32, #tpu.memory_space<vmem>>, vector<8x8x16xf32>
    %1 = vector.shape_cast %0 : vector<8x8x16xf32> to vector<64x16xf32>
    %c0_2 = arith.constant 0 : index
    %c0_3 = arith.constant 0 : index
    %2 = vector.load %arg2[%c0_2, %c0_3] : memref<16x256xf32, #tpu.memory_space<vmem>>, vector<16x256xf32>
    %cst = arith.constant dense<0.000000e+00> : vector<64x256xf32>
    %3 = tpu.matmul %1, %2, %cst {dimension_numbers = #tpu.dot_dimension_numbers<[1], [0], [0], [1], [0, 0, 1, 1], [], []>} : vector<64x16xf32>, vector<16x256xf32>, vector<64x256xf32> -> vector<64x256xf32>
    %c0_4 = arith.constant 0 : index
    %c0_5 = arith.constant 0 : index
    %4 = vector.load %arg3[%c0_4, %c0_5] : memref<1x256xf32, #tpu.memory_space<vmem>>, vector<1x256xf32>
    %5 = vector.broadcast %4 : vector<1x256xf32> to vector<64x256xf32>
    %6 = arith.addf %3, %5 : vector<64x256xf32>
    %7 = vector.shape_cast %6 : vector<64x256xf32> to vector<8x8x256xf32>
    %c0_6 = arith.constant 0 : index
    %c0_7 = arith.constant 0 : index
    %c0_8 = arith.constant 0 : index
    %8 = vector.load %arg12[%c0_6, %c0_7, %c0_8] : memref<8x8x256xf32, #tpu.memory_space<vmem>>, vector<8x8x256xf32>
    tpu.vector_store %arg12[%c0_6, %c0_7, %c0_8], %7 {strides = array<i32>} : memref<8x8x256xf32, #tpu.memory_space<vmem>>, vector<8x8x256xf32>,
    %c0_9 = arith.constant 0 : index
    %c0_10 = arith.constant 0 : index
    %9 = vector.load %arg4[%c0_9, %c0_10] : memref<32x128xf32, #tpu.memory_space<vmem>>, vector<32x128xf32>
    %c0_11 = arith.constant 0 : index
    %c0_12 = arith.constant 0 : index
    %10 = vector.load %arg5[%c0_11, %c0_12] : memref<32x128xf32, #tpu.memory_space<vmem>>, vector<32x128xf32>
    %cst_13 = arith.constant 0.000000e+00 : f32
    %11 = vector.broadcast %cst_13 : f32 to vector<8x32xf32>
    %c0_i32 = arith.constant 0 : i32
    %c7_i32 = arith.constant 7 : i32
    %12 = arith.subi %c7_i32, %c0_i32 : i32
    %13 = arith.index_cast %c0_i32 : i32 to index
    %c0_14 = arith.constant 0 : index
    %c0_15 = arith.constant 0 : index
    %14 = vector.load %arg12[%13, %c0_14, %c0_15] : memref<8x8x256xf32, #tpu.memory_space<vmem>>, vector<1x8x256xf32>
    %15 = vector.shape_cast %14 : vector<1x8x256xf32> to vector<8x256xf32>
    %16 = arith.index_cast %12 : i32 to index
    %c0_16 = arith.constant 0 : index
    %c0_17 = arith.constant 0 : index
    %17 = vector.load %arg12[%16, %c0_16, %c0_17] : memref<8x8x256xf32, #tpu.memory_space<vmem>>, vector<1x8x256xf32>
    %18 = vector.shape_cast %17 : vector<1x8x256xf32> to vector<8x256xf32>
    %19 = vector.extract_strided_slice %15 {offsets = [0, 0], sizes = [8, 128], strides = [1, 1]} : vector<8x256xf32> to vector<8x128xf32>
    %cst_18 = arith.constant dense<0.000000e+00> : vector<8x128xf32>
    %20 = tpu.matmul %11, %9, %cst_18 {dimension_numbers = #tpu.dot_dimension_numbers<[1], [0], [0], [1], [0, 0, 1, 1], [], []>} : vector<8x32xf32>, vector<32x128xf32>, vector<8x128xf32> -> vector<8x128xf32>
    %21 = arith.addf %19, %20 : vector<8x128xf32>
    %22 = vector.extract_strided_slice %18 {offsets = [0, 128], sizes = [8, 128], strides = [1, 1]} : vector<8x256xf32> to vector<8x128xf32>
    %cst_19 = arith.constant dense<0.000000e+00> : vector<8x128xf32>
    %23 = tpu.matmul %11, %10, %cst_19 {dimension_numbers = #tpu.dot_dimension_numbers<[1], [0], [0], [1], [0, 0, 1, 1], [], []>} : vector<8x32xf32>, vector<32x128xf32>, vector<8x128xf32> -> vector<8x128xf32>
    %24 = arith.addf %22, %23 : vector<8x128xf32>
    %25 = arith.negf %21 : vector<8x128xf32>
    %26 = math.exp %25 : vector<8x128xf32>
    %cst_20 = arith.constant 1.000000e+00 : f32
    %27 = vector.broadcast %cst_20 : f32 to vector<8x128xf32>
    %28 = arith.addf %27, %26 : vector<8x128xf32>
    %29 = arith.divf %27, %28 : vector<8x128xf32>
    %30 = math.tanh %21 : vector<8x128xf32>
    %31 = vector.extract_strided_slice %29 {offsets = [0, 0], sizes = [8, 32], strides = [1, 1]} : vector<8x128xf32> to vector<8x32xf32>
    %32 = vector.extract_strided_slice %29 {offsets = [0, 32], sizes = [8, 32], strides = [1, 1]} : vector<8x128xf32> to vector<8x32xf32>
    %33 = vector.extract_strided_slice %30 {offsets = [0, 64], sizes = [8, 32], strides = [1, 1]} : vector<8x128xf32> to vector<8x32xf32>
    %34 = vector.extract_strided_slice %29 {offsets = [0, 96], sizes = [8, 32], strides = [1, 1]} : vector<8x128xf32> to vector<8x32xf32>
    %35 = arith.mulf %32, %11 : vector<8x32xf32>
    %36 = arith.mulf %31, %33 : vector<8x32xf32>
    %37 = arith.addf %35, %36 : vector<8x32xf32>
    %38 = math.tanh %37 : vector<8x32xf32>
    %39 = arith.mulf %34, %38 : vector<8x32xf32>
    %40 = arith.negf %24 : vector<8x128xf32>
    %41 = math.exp %40 : vector<8x128xf32>
    %cst_21 = arith.constant 1.000000e+00 : f32
    %42 = vector.broadcast %cst_21 : f32 to vector<8x128xf32>
    %43 = arith.addf %42, %41 : vector<8x128xf32>
    %44 = arith.divf %42, %43 : vector<8x128xf32>
    %45 = math.tanh %24 : vector<8x128xf32>
    %46 = vector.extract_strided_slice %44 {offsets = [0, 0], sizes = [8, 32], strides = [1, 1]} : vector<8x128xf32> to vector<8x32xf32>
    %47 = vector.extract_strided_slice %44 {offsets = [0, 32], sizes = [8, 32], strides = [1, 1]} : vector<8x128xf32> to vector<8x32xf32>
    %48 = vector.extract_strided_slice %45 {offsets = [0, 64], sizes = [8, 32], strides = [1, 1]} : vector<8x128xf32> to vector<8x32xf32>
    %49 = vector.extract_strided_slice %44 {offsets = [0, 96], sizes = [8, 32], strides = [1, 1]} : vector<8x128xf32> to vector<8x32xf32>
    %50 = arith.mulf %47, %11 : vector<8x32xf32>
    %51 = arith.mulf %46, %48 : vector<8x32xf32>
    %52 = arith.addf %50, %51 : vector<8x32xf32>
    %53 = math.tanh %52 : vector<8x32xf32>
    %54 = arith.mulf %49, %53 : vector<8x32xf32>
    %55 = arith.index_cast %c0_i32 : i32 to index
    %c0_22 = arith.constant 0 : index
    %c0_23 = arith.constant 0 : index
    %56 = vector.load %arg13[%55, %c0_22, %c0_23] : memref<8x8x64xf32, #tpu.memory_space<vmem>>, vector<1x8x32xf32>
    %57 = vector.shape_cast %56 : vector<1x8x32xf32> to vector<8x32xf32>
    %58 = vector.shape_cast %39 : vector<8x32xf32> to vector<1x8x32xf32>
    tpu.vector_store %arg13[%55, %c0_22, %c0_23], %58 {strides = array<i32>} : memref<8x8x64xf32, #tpu.memory_space<vmem>>, vector<1x8x32xf32>,
    %59 = arith.index_cast %12 : i32 to index
    %c0_24 = arith.constant 0 : index
    %c32 = arith.constant 32 : index
    %60 = vector.load %arg13[%59, %c0_24, %c32] : memref<8x8x64xf32, #tpu.memory_space<vmem>>, vector<1x8x32xf32>
    %61 = vector.shape_cast %60 : vector<1x8x32xf32> to vector<8x32xf32>
    %62 = vector.shape_cast %54 : vector<8x32xf32> to vector<1x8x32xf32>
    tpu.vector_store %arg13[%59, %c0_24, %c32], %62 {strides = array<i32>} : memref<8x8x64xf32, #tpu.memory_space<vmem>>, vector<1x8x32xf32>,
    %c1_i32 = arith.constant 1 : i32
    %c7_i32_25 = arith.constant 7 : i32
    %63 = arith.subi %c7_i32_25, %c1_i32 : i32
    %64 = arith.index_cast %c1_i32 : i32 to index
    %c0_26 = arith.constant 0 : index
    %c0_27 = arith.constant 0 : index
    %65 = vector.load %arg12[%64, %c0_26, %c0_27] : memref<8x8x256xf32, #tpu.memory_space<vmem>>, vector<1x8x256xf32>
    %66 = vector.shape_cast %65 : vector<1x8x256xf32> to vector<8x256xf32>
    %67 = arith.index_cast %63 : i32 to index
    %c0_28 = arith.constant 0 : index
    %c0_29 = arith.constant 0 : index
    %68 = vector.load %arg12[%67, %c0_28, %c0_29] : memref<8x8x256xf32, #tpu.memory_space<vmem>>, vector<1x8x256xf32>
    %69 = vector.shape_cast %68 : vector<1x8x256xf32> to vector<8x256xf32>
    %70 = vector.extract_strided_slice %66 {offsets = [0, 0], sizes = [8, 128], strides = [1, 1]} : vector<8x256xf32> to vector<8x128xf32>
    %cst_30 = arith.constant dense<0.000000e+00> : vector<8x128xf32>
    %71 = tpu.matmul %39, %9, %cst_30 {dimension_numbers = #tpu.dot_dimension_numbers<[1], [0], [0], [1], [0, 0, 1, 1], [], []>} : vector<8x32xf32>, vector<32x128xf32>, vector<8x128xf32> -> vector<8x128xf32>
    %72 = arith.addf %70, %71 : vector<8x128xf32>
    %73 = vector.extract_strided_slice %69 {offsets = [0, 128], sizes = [8, 128], strides = [1, 1]} : vector<8x256xf32> to vector<8x128xf32>
    %cst_31 = arith.constant dense<0.000000e+00> : vector<8x128xf32>
    %74 = tpu.matmul %54, %10, %cst_31 {dimension_numbers = #tpu.dot_dimension_numbers<[1], [0], [0], [1], [0, 0, 1, 1], [], []>} : vector<8x32xf32>, vector<32x128xf32>, vector<8x128xf32> -> vector<8x128xf32>
    %75 = arith.addf %73, %74 : vector<8x128xf32>
    %76 = arith.negf %72 : vector<8x128xf32>
    %77 = math.exp %76 : vector<8x128xf32>
    %cst_32 = arith.constant 1.000000e+00 : f32
    %78 = vector.broadcast %cst_32 : f32 to vector<8x128xf32>
    %79 = arith.addf %78, %77 : vector<8x128xf32>
    %80 = arith.divf %78, %79 : vector<8x128xf32>
    %81 = math.tanh %72 : vector<8x128xf32>
    %82 = vector.extract_strided_slice %80 {offsets = [0, 0], sizes = [8, 32], strides = [1, 1]} : vector<8x128xf32> to vector<8x32xf32>
    %83 = vector.extract_strided_slice %80 {offsets = [0, 32], sizes = [8, 32], strides = [1, 1]} : vector<8x128xf32> to vector<8x32xf32>
    %84 = vector.extract_strided_slice %81 {offsets = [0, 64], sizes = [8, 32], strides = [1, 1]} : vector<8x128xf32> to vector<8x32xf32>
    %85 = vector.extract_strided_slice %80 {offsets = [0, 96], sizes = [8, 32], strides = [1, 1]} : vector<8x128xf32> to vector<8x32xf32>
    %86 = arith.mulf %83, %37 : vector<8x32xf32>
    %87 = arith.mulf %82, %84 : vector<8x32xf32>
    %88 = arith.addf %86, %87 : vector<8x32xf32>
    %89 = math.tanh %88 : vector<8x32xf32>
    %90 = arith.mulf %85, %89 : vector<8x32xf32>
    %91 = arith.negf %75 : vector<8x128xf32>
    %92 = math.exp %91 : vector<8x128xf32>
    %cst_33 = arith.constant 1.000000e+00 : f32
    %93 = vector.broadcast %cst_33 : f32 to vector<8x128xf32>
    %94 = arith.addf %93, %92 : vector<8x128xf32>
    %95 = arith.divf %93, %94 : vector<8x128xf32>
    %96 = math.tanh %75 : vector<8x128xf32>
    %97 = vector.extract_strided_slice %95 {offsets = [0, 0], sizes = [8, 32], strides = [1, 1]} : vector<8x128xf32> to vector<8x32xf32>
    %98 = vector.extract_strided_slice %95 {offsets = [0, 32], sizes = [8, 32], strides = [1, 1]} : vector<8x128xf32> to vector<8x32xf32>
    %99 = vector.extract_strided_slice %96 {offsets = [0, 64], sizes = [8, 32], strides = [1, 1]} : vector<8x128xf32> to vector<8x32xf32>
    %100 = vector.extract_strided_slice %95 {offsets = [0, 96], sizes = [8, 32], strides = [1, 1]} : vector<8x128xf32> to vector<8x32xf32>
    %101 = arith.mulf %98, %52 : vector<8x32xf32>
    %102 = arith.mulf %97, %99 : vector<8x32xf32>
    %103 = arith.addf %101, %102 : vector<8x32xf32>
    %104 = math.tanh %103 : vector<8x32xf32>
    %105 = arith.mulf %100, %104 : vector<8x32xf32>
    %106 = arith.index_cast %c1_i32 : i32 to index
    %c0_34 = arith.constant 0 : index
    %c0_35 = arith.constant 0 : index
    %107 = vector.load %arg13[%106, %c0_34, %c0_35] : memref<8x8x64xf32, #tpu.memory_space<vmem>>, vector<1x8x32xf32>
    %108 = vector.shape_cast %107 : vector<1x8x32xf32> to vector<8x32xf32>
    %109 = vector.shape_cast %90 : vector<8x32xf32> to vector<1x8x32xf32>
    tpu.vector_store %arg13[%106, %c0_34, %c0_35], %109 {strides = array<i32>} : memref<8x8x64xf32, #tpu.memory_space<vmem>>, vector<1x8x32xf32>,
    %110 = arith.index_cast %63 : i32 to index
    %c0_36 = arith.constant 0 : index
    %c32_37 = arith.constant 32 : index
    %111 = vector.load %arg13[%110, %c0_36, %c32_37] : memref<8x8x64xf32, #tpu.memory_space<vmem>>, vector<1x8x32xf32>
    %112 = vector.shape_cast %111 : vector<1x8x32xf32> to vector<8x32xf32>
    %113 = vector.shape_cast %105 : vector<8x32xf32> to vector<1x8x32xf32>
    tpu.vector_store %arg13[%110, %c0_36, %c32_37], %113 {strides = array<i32>} : memref<8x8x64xf32, #tpu.memory_space<vmem>>, vector<1x8x32xf32>,
    %c2_i32 = arith.constant 2 : i32
    %c7_i32_38 = arith.constant 7 : i32
    %114 = arith.subi %c7_i32_38, %c2_i32 : i32
    %115 = arith.index_cast %c2_i32 : i32 to index
    %c0_39 = arith.constant 0 : index
    %c0_40 = arith.constant 0 : index
    %116 = vector.load %arg12[%115, %c0_39, %c0_40] : memref<8x8x256xf32, #tpu.memory_space<vmem>>, vector<1x8x256xf32>
    %117 = vector.shape_cast %116 : vector<1x8x256xf32> to vector<8x256xf32>
    %118 = arith.index_cast %114 : i32 to index
    %c0_41 = arith.constant 0 : index
    %c0_42 = arith.constant 0 : index
    %119 = vector.load %arg12[%118, %c0_41, %c0_42] : memref<8x8x256xf32, #tpu.memory_space<vmem>>, vector<1x8x256xf32>
    %120 = vector.shape_cast %119 : vector<1x8x256xf32> to vector<8x256xf32>
    %121 = vector.extract_strided_slice %117 {offsets = [0, 0], sizes = [8, 128], strides = [1, 1]} : vector<8x256xf32> to vector<8x128xf32>
    %cst_43 = arith.constant dense<0.000000e+00> : vector<8x128xf32>
    %122 = tpu.matmul %90, %9, %cst_43 {dimension_numbers = #tpu.dot_dimension_numbers<[1], [0], [0], [1], [0, 0, 1, 1], [], []>} : vector<8x32xf32>, vector<32x128xf32>, vector<8x128xf32> -> vector<8x128xf32>
    %123 = arith.addf %121, %122 : vector<8x128xf32>
    %124 = vector.extract_strided_slice %120 {offsets = [0, 128], sizes = [8, 128], strides = [1, 1]} : vector<8x256xf32> to vector<8x128xf32>
    %cst_44 = arith.constant dense<0.000000e+00> : vector<8x128xf32>
    %125 = tpu.matmul %105, %10, %cst_44 {dimension_numbers = #tpu.dot_dimension_numbers<[1], [0], [0], [1], [0, 0, 1, 1], [], []>} : vector<8x32xf32>, vector<32x128xf32>, vector<8x128xf32> -> vector<8x128xf32>
    %126 = arith.addf %124, %125 : vector<8x128xf32>
    %127 = arith.negf %123 : vector<8x128xf32>
    %128 = math.exp %127 : vector<8x128xf32>
    %cst_45 = arith.constant 1.000000e+00 : f32
    %129 = vector.broadcast %cst_45 : f32 to vector<8x128xf32>
    %130 = arith.addf %129, %128 : vector<8x128xf32>
    %131 = arith.divf %129, %130 : vector<8x128xf32>
    %132 = math.tanh %123 : vector<8x128xf32>
    %133 = vector.extract_strided_slice %131 {offsets = [0, 0], sizes = [8, 32], strides = [1, 1]} : vector<8x128xf32> to vector<8x32xf32>
    %134 = vector.extract_strided_slice %131 {offsets = [0, 32], sizes = [8, 32], strides = [1, 1]} : vector<8x128xf32> to vector<8x32xf32>
    %135 = vector.extract_strided_slice %132 {offsets = [0, 64], sizes = [8, 32], strides = [1, 1]} : vector<8x128xf32> to vector<8x32xf32>
    %136 = vector.extract_strided_slice %131 {offsets = [0, 96], sizes = [8, 32], strides = [1, 1]} : vector<8x128xf32> to vector<8x32xf32>
    %137 = arith.mulf %134, %88 : vector<8x32xf32>
    %138 = arith.mulf %133, %135 : vector<8x32xf32>
    %139 = arith.addf %137, %138 : vector<8x32xf32>
    %140 = math.tanh %139 : vector<8x32xf32>
    %141 = arith.mulf %136, %140 : vector<8x32xf32>
    %142 = arith.negf %126 : vector<8x128xf32>
    %143 = math.exp %142 : vector<8x128xf32>
    %cst_46 = arith.constant 1.000000e+00 : f32
    %144 = vector.broadcast %cst_46 : f32 to vector<8x128xf32>
    %145 = arith.addf %144, %143 : vector<8x128xf32>
    %146 = arith.divf %144, %145 : vector<8x128xf32>
    %147 = math.tanh %126 : vector<8x128xf32>
    %148 = vector.extract_strided_slice %146 {offsets = [0, 0], sizes = [8, 32], strides = [1, 1]} : vector<8x128xf32> to vector<8x32xf32>
    %149 = vector.extract_strided_slice %146 {offsets = [0, 32], sizes = [8, 32], strides = [1, 1]} : vector<8x128xf32> to vector<8x32xf32>
    %150 = vector.extract_strided_slice %147 {offsets = [0, 64], sizes = [8, 32], strides = [1, 1]} : vector<8x128xf32> to vector<8x32xf32>
    %151 = vector.extract_strided_slice %146 {offsets = [0, 96], sizes = [8, 32], strides = [1, 1]} : vector<8x128xf32> to vector<8x32xf32>
    %152 = arith.mulf %149, %103 : vector<8x32xf32>
    %153 = arith.mulf %148, %150 : vector<8x32xf32>
    %154 = arith.addf %152, %153 : vector<8x32xf32>
    %155 = math.tanh %154 : vector<8x32xf32>
    %156 = arith.mulf %151, %155 : vector<8x32xf32>
    %157 = arith.index_cast %c2_i32 : i32 to index
    %c0_47 = arith.constant 0 : index
    %c0_48 = arith.constant 0 : index
    %158 = vector.load %arg13[%157, %c0_47, %c0_48] : memref<8x8x64xf32, #tpu.memory_space<vmem>>, vector<1x8x32xf32>
    %159 = vector.shape_cast %158 : vector<1x8x32xf32> to vector<8x32xf32>
    %160 = vector.shape_cast %141 : vector<8x32xf32> to vector<1x8x32xf32>
    tpu.vector_store %arg13[%157, %c0_47, %c0_48], %160 {strides = array<i32>} : memref<8x8x64xf32, #tpu.memory_space<vmem>>, vector<1x8x32xf32>,
    %161 = arith.index_cast %114 : i32 to index
    %c0_49 = arith.constant 0 : index
    %c32_50 = arith.constant 32 : index
    %162 = vector.load %arg13[%161, %c0_49, %c32_50] : memref<8x8x64xf32, #tpu.memory_space<vmem>>, vector<1x8x32xf32>
    %163 = vector.shape_cast %162 : vector<1x8x32xf32> to vector<8x32xf32>
    %164 = vector.shape_cast %156 : vector<8x32xf32> to vector<1x8x32xf32>
    tpu.vector_store %arg13[%161, %c0_49, %c32_50], %164 {strides = array<i32>} : memref<8x8x64xf32, #tpu.memory_space<vmem>>, vector<1x8x32xf32>,
    %c3_i32 = arith.constant 3 : i32
    %c7_i32_51 = arith.constant 7 : i32
    %165 = arith.subi %c7_i32_51, %c3_i32 : i32
    %166 = arith.index_cast %c3_i32 : i32 to index
    %c0_52 = arith.constant 0 : index
    %c0_53 = arith.constant 0 : index
    %167 = vector.load %arg12[%166, %c0_52, %c0_53] : memref<8x8x256xf32, #tpu.memory_space<vmem>>, vector<1x8x256xf32>
    %168 = vector.shape_cast %167 : vector<1x8x256xf32> to vector<8x256xf32>
    %169 = arith.index_cast %165 : i32 to index
    %c0_54 = arith.constant 0 : index
    %c0_55 = arith.constant 0 : index
    %170 = vector.load %arg12[%169, %c0_54, %c0_55] : memref<8x8x256xf32, #tpu.memory_space<vmem>>, vector<1x8x256xf32>
    %171 = vector.shape_cast %170 : vector<1x8x256xf32> to vector<8x256xf32>
    %172 = vector.extract_strided_slice %168 {offsets = [0, 0], sizes = [8, 128], strides = [1, 1]} : vector<8x256xf32> to vector<8x128xf32>
    %cst_56 = arith.constant dense<0.000000e+00> : vector<8x128xf32>
    %173 = tpu.matmul %141, %9, %cst_56 {dimension_numbers = #tpu.dot_dimension_numbers<[1], [0], [0], [1], [0, 0, 1, 1], [], []>} : vector<8x32xf32>, vector<32x128xf32>, vector<8x128xf32> -> vector<8x128xf32>
    %174 = arith.addf %172, %173 : vector<8x128xf32>
    %175 = vector.extract_strided_slice %171 {offsets = [0, 128], sizes = [8, 128], strides = [1, 1]} : vector<8x256xf32> to vector<8x128xf32>
    %cst_57 = arith.constant dense<0.000000e+00> : vector<8x128xf32>
    %176 = tpu.matmul %156, %10, %cst_57 {dimension_numbers = #tpu.dot_dimension_numbers<[1], [0], [0], [1], [0, 0, 1, 1], [], []>} : vector<8x32xf32>, vector<32x128xf32>, vector<8x128xf32> -> vector<8x128xf32>
    %177 = arith.addf %175, %176 : vector<8x128xf32>
    %178 = arith.negf %174 : vector<8x128xf32>
    %179 = math.exp %178 : vector<8x128xf32>
    %cst_58 = arith.constant 1.000000e+00 : f32
    %180 = vector.broadcast %cst_58 : f32 to vector<8x128xf32>
    %181 = arith.addf %180, %179 : vector<8x128xf32>
    %182 = arith.divf %180, %181 : vector<8x128xf32>
    %183 = math.tanh %174 : vector<8x128xf32>
    %184 = vector.extract_strided_slice %182 {offsets = [0, 0], sizes = [8, 32], strides = [1, 1]} : vector<8x128xf32> to vector<8x32xf32>
    %185 = vector.extract_strided_slice %182 {offsets = [0, 32], sizes = [8, 32], strides = [1, 1]} : vector<8x128xf32> to vector<8x32xf32>
    %186 = vector.extract_strided_slice %183 {offsets = [0, 64], sizes = [8, 32], strides = [1, 1]} : vector<8x128xf32> to vector<8x32xf32>
    %187 = vector.extract_strided_slice %182 {offsets = [0, 96], sizes = [8, 32], strides = [1, 1]} : vector<8x128xf32> to vector<8x32xf32>
    %188 = arith.mulf %185, %139 : vector<8x32xf32>
    %189 = arith.mulf %184, %186 : vector<8x32xf32>
    %190 = arith.addf %188, %189 : vector<8x32xf32>
    %191 = math.tanh %190 : vector<8x32xf32>
    %192 = arith.mulf %187, %191 : vector<8x32xf32>
    %193 = arith.negf %177 : vector<8x128xf32>
    %194 = math.exp %193 : vector<8x128xf32>
    %cst_59 = arith.constant 1.000000e+00 : f32
    %195 = vector.broadcast %cst_59 : f32 to vector<8x128xf32>
    %196 = arith.addf %195, %194 : vector<8x128xf32>
    %197 = arith.divf %195, %196 : vector<8x128xf32>
    %198 = math.tanh %177 : vector<8x128xf32>
    %199 = vector.extract_strided_slice %197 {offsets = [0, 0], sizes = [8, 32], strides = [1, 1]} : vector<8x128xf32> to vector<8x32xf32>
    %200 = vector.extract_strided_slice %197 {offsets = [0, 32], sizes = [8, 32], strides = [1, 1]} : vector<8x128xf32> to vector<8x32xf32>
    %201 = vector.extract_strided_slice %198 {offsets = [0, 64], sizes = [8, 32], strides = [1, 1]} : vector<8x128xf32> to vector<8x32xf32>
    %202 = vector.extract_strided_slice %197 {offsets = [0, 96], sizes = [8, 32], strides = [1, 1]} : vector<8x128xf32> to vector<8x32xf32>
    %203 = arith.mulf %200, %154 : vector<8x32xf32>
    %204 = arith.mulf %199, %201 : vector<8x32xf32>
    %205 = arith.addf %203, %204 : vector<8x32xf32>
    %206 = math.tanh %205 : vector<8x32xf32>
    %207 = arith.mulf %202, %206 : vector<8x32xf32>
    %208 = arith.index_cast %c3_i32 : i32 to index
    %c0_60 = arith.constant 0 : index
    %c0_61 = arith.constant 0 : index
    %209 = vector.load %arg13[%208, %c0_60, %c0_61] : memref<8x8x64xf32, #tpu.memory_space<vmem>>, vector<1x8x32xf32>
    %210 = vector.shape_cast %209 : vector<1x8x32xf32> to vector<8x32xf32>
    %211 = vector.shape_cast %192 : vector<8x32xf32> to vector<1x8x32xf32>
    tpu.vector_store %arg13[%208, %c0_60, %c0_61], %211 {strides = array<i32>} : memref<8x8x64xf32, #tpu.memory_space<vmem>>, vector<1x8x32xf32>,
    %212 = arith.index_cast %165 : i32 to index
    %c0_62 = arith.constant 0 : index
    %c32_63 = arith.constant 32 : index
    %213 = vector.load %arg13[%212, %c0_62, %c32_63] : memref<8x8x64xf32, #tpu.memory_space<vmem>>, vector<1x8x32xf32>
    %214 = vector.shape_cast %213 : vector<1x8x32xf32> to vector<8x32xf32>
    %215 = vector.shape_cast %207 : vector<8x32xf32> to vector<1x8x32xf32>
    tpu.vector_store %arg13[%212, %c0_62, %c32_63], %215 {strides = array<i32>} : memref<8x8x64xf32, #tpu.memory_space<vmem>>, vector<1x8x32xf32>,
    %c4_i32 = arith.constant 4 : i32
    %c7_i32_64 = arith.constant 7 : i32
    %216 = arith.subi %c7_i32_64, %c4_i32 : i32
    %217 = arith.index_cast %c4_i32 : i32 to index
    %c0_65 = arith.constant 0 : index
    %c0_66 = arith.constant 0 : index
    %218 = vector.load %arg12[%217, %c0_65, %c0_66] : memref<8x8x256xf32, #tpu.memory_space<vmem>>, vector<1x8x256xf32>
    %219 = vector.shape_cast %218 : vector<1x8x256xf32> to vector<8x256xf32>
    %220 = arith.index_cast %216 : i32 to index
    %c0_67 = arith.constant 0 : index
    %c0_68 = arith.constant 0 : index
    %221 = vector.load %arg12[%220, %c0_67, %c0_68] : memref<8x8x256xf32, #tpu.memory_space<vmem>>, vector<1x8x256xf32>
    %222 = vector.shape_cast %221 : vector<1x8x256xf32> to vector<8x256xf32>
    %223 = vector.extract_strided_slice %219 {offsets = [0, 0], sizes = [8, 128], strides = [1, 1]} : vector<8x256xf32> to vector<8x128xf32>
    %cst_69 = arith.constant dense<0.000000e+00> : vector<8x128xf32>
    %224 = tpu.matmul %192, %9, %cst_69 {dimension_numbers = #tpu.dot_dimension_numbers<[1], [0], [0], [1], [0, 0, 1, 1], [], []>} : vector<8x32xf32>, vector<32x128xf32>, vector<8x128xf32> -> vector<8x128xf32>
    %225 = arith.addf %223, %224 : vector<8x128xf32>
    %226 = vector.extract_strided_slice %222 {offsets = [0, 128], sizes = [8, 128], strides = [1, 1]} : vector<8x256xf32> to vector<8x128xf32>
    %cst_70 = arith.constant dense<0.000000e+00> : vector<8x128xf32>
    %227 = tpu.matmul %207, %10, %cst_70 {dimension_numbers = #tpu.dot_dimension_numbers<[1], [0], [0], [1], [0, 0, 1, 1], [], []>} : vector<8x32xf32>, vector<32x128xf32>, vector<8x128xf32> -> vector<8x128xf32>
    %228 = arith.addf %226, %227 : vector<8x128xf32>
    %229 = arith.negf %225 : vector<8x128xf32>
    %230 = math.exp %229 : vector<8x128xf32>
    %cst_71 = arith.constant 1.000000e+00 : f32
    %231 = vector.broadcast %cst_71 : f32 to vector<8x128xf32>
    %232 = arith.addf %231, %230 : vector<8x128xf32>
    %233 = arith.divf %231, %232 : vector<8x128xf32>
    %234 = math.tanh %225 : vector<8x128xf32>
    %235 = vector.extract_strided_slice %233 {offsets = [0, 0], sizes = [8, 32], strides = [1, 1]} : vector<8x128xf32> to vector<8x32xf32>
    %236 = vector.extract_strided_slice %233 {offsets = [0, 32], sizes = [8, 32], strides = [1, 1]} : vector<8x128xf32> to vector<8x32xf32>
    %237 = vector.extract_strided_slice %234 {offsets = [0, 64], sizes = [8, 32], strides = [1, 1]} : vector<8x128xf32> to vector<8x32xf32>
    %238 = vector.extract_strided_slice %233 {offsets = [0, 96], sizes = [8, 32], strides = [1, 1]} : vector<8x128xf32> to vector<8x32xf32>
    %239 = arith.mulf %236, %190 : vector<8x32xf32>
    %240 = arith.mulf %235, %237 : vector<8x32xf32>
    %241 = arith.addf %239, %240 : vector<8x32xf32>
    %242 = math.tanh %241 : vector<8x32xf32>
    %243 = arith.mulf %238, %242 : vector<8x32xf32>
    %244 = arith.negf %228 : vector<8x128xf32>
    %245 = math.exp %244 : vector<8x128xf32>
    %cst_72 = arith.constant 1.000000e+00 : f32
    %246 = vector.broadcast %cst_72 : f32 to vector<8x128xf32>
    %247 = arith.addf %246, %245 : vector<8x128xf32>
    %248 = arith.divf %246, %247 : vector<8x128xf32>
    %249 = math.tanh %228 : vector<8x128xf32>
    %250 = vector.extract_strided_slice %248 {offsets = [0, 0], sizes = [8, 32], strides = [1, 1]} : vector<8x128xf32> to vector<8x32xf32>
    %251 = vector.extract_strided_slice %248 {offsets = [0, 32], sizes = [8, 32], strides = [1, 1]} : vector<8x128xf32> to vector<8x32xf32>
    %252 = vector.extract_strided_slice %249 {offsets = [0, 64], sizes = [8, 32], strides = [1, 1]} : vector<8x128xf32> to vector<8x32xf32>
    %253 = vector.extract_strided_slice %248 {offsets = [0, 96], sizes = [8, 32], strides = [1, 1]} : vector<8x128xf32> to vector<8x32xf32>
    %254 = arith.mulf %251, %205 : vector<8x32xf32>
    %255 = arith.mulf %250, %252 : vector<8x32xf32>
    %256 = arith.addf %254, %255 : vector<8x32xf32>
    %257 = math.tanh %256 : vector<8x32xf32>
    %258 = arith.mulf %253, %257 : vector<8x32xf32>
    %259 = arith.index_cast %c4_i32 : i32 to index
    %c0_73 = arith.constant 0 : index
    %c0_74 = arith.constant 0 : index
    %260 = vector.load %arg13[%259, %c0_73, %c0_74] : memref<8x8x64xf32, #tpu.memory_space<vmem>>, vector<1x8x32xf32>
    %261 = vector.shape_cast %260 : vector<1x8x32xf32> to vector<8x32xf32>
    %262 = vector.shape_cast %243 : vector<8x32xf32> to vector<1x8x32xf32>
    tpu.vector_store %arg13[%259, %c0_73, %c0_74], %262 {strides = array<i32>} : memref<8x8x64xf32, #tpu.memory_space<vmem>>, vector<1x8x32xf32>,
    %263 = arith.index_cast %216 : i32 to index
    %c0_75 = arith.constant 0 : index
    %c32_76 = arith.constant 32 : index
    %264 = vector.load %arg13[%263, %c0_75, %c32_76] : memref<8x8x64xf32, #tpu.memory_space<vmem>>, vector<1x8x32xf32>
    %265 = vector.shape_cast %264 : vector<1x8x32xf32> to vector<8x32xf32>
    %266 = vector.shape_cast %258 : vector<8x32xf32> to vector<1x8x32xf32>
    tpu.vector_store %arg13[%263, %c0_75, %c32_76], %266 {strides = array<i32>} : memref<8x8x64xf32, #tpu.memory_space<vmem>>, vector<1x8x32xf32>,
    %c5_i32 = arith.constant 5 : i32
    %c7_i32_77 = arith.constant 7 : i32
    %267 = arith.subi %c7_i32_77, %c5_i32 : i32
    %268 = arith.index_cast %c5_i32 : i32 to index
    %c0_78 = arith.constant 0 : index
    %c0_79 = arith.constant 0 : index
    %269 = vector.load %arg12[%268, %c0_78, %c0_79] : memref<8x8x256xf32, #tpu.memory_space<vmem>>, vector<1x8x256xf32>
    %270 = vector.shape_cast %269 : vector<1x8x256xf32> to vector<8x256xf32>
    %271 = arith.index_cast %267 : i32 to index
    %c0_80 = arith.constant 0 : index
    %c0_81 = arith.constant 0 : index
    %272 = vector.load %arg12[%271, %c0_80, %c0_81] : memref<8x8x256xf32, #tpu.memory_space<vmem>>, vector<1x8x256xf32>
    %273 = vector.shape_cast %272 : vector<1x8x256xf32> to vector<8x256xf32>
    %274 = vector.extract_strided_slice %270 {offsets = [0, 0], sizes = [8, 128], strides = [1, 1]} : vector<8x256xf32> to vector<8x128xf32>
    %cst_82 = arith.constant dense<0.000000e+00> : vector<8x128xf32>
    %275 = tpu.matmul %243, %9, %cst_82 {dimension_numbers = #tpu.dot_dimension_numbers<[1], [0], [0], [1], [0, 0, 1, 1], [], []>} : vector<8x32xf32>, vector<32x128xf32>, vector<8x128xf32> -> vector<8x128xf32>
    %276 = arith.addf %274, %275 : vector<8x128xf32>
    %277 = vector.extract_strided_slice %273 {offsets = [0, 128], sizes = [8, 128], strides = [1, 1]} : vector<8x256xf32> to vector<8x128xf32>
    %cst_83 = arith.constant dense<0.000000e+00> : vector<8x128xf32>
    %278 = tpu.matmul %258, %10, %cst_83 {dimension_numbers = #tpu.dot_dimension_numbers<[1], [0], [0], [1], [0, 0, 1, 1], [], []>} : vector<8x32xf32>, vector<32x128xf32>, vector<8x128xf32> -> vector<8x128xf32>
    %279 = arith.addf %277, %278 : vector<8x128xf32>
    %280 = arith.negf %276 : vector<8x128xf32>
    %281 = math.exp %280 : vector<8x128xf32>
    %cst_84 = arith.constant 1.000000e+00 : f32
    %282 = vector.broadcast %cst_84 : f32 to vector<8x128xf32>
    %283 = arith.addf %282, %281 : vector<8x128xf32>
    %284 = arith.divf %282, %283 : vector<8x128xf32>
    %285 = math.tanh %276 : vector<8x128xf32>
    %286 = vector.extract_strided_slice %284 {offsets = [0, 0], sizes = [8, 32], strides = [1, 1]} : vector<8x128xf32> to vector<8x32xf32>
    %287 = vector.extract_strided_slice %284 {offsets = [0, 32], sizes = [8, 32], strides = [1, 1]} : vector<8x128xf32> to vector<8x32xf32>
    %288 = vector.extract_strided_slice %285 {offsets = [0, 64], sizes = [8, 32], strides = [1, 1]} : vector<8x128xf32> to vector<8x32xf32>
    %289 = vector.extract_strided_slice %284 {offsets = [0, 96], sizes = [8, 32], strides = [1, 1]} : vector<8x128xf32> to vector<8x32xf32>
    %290 = arith.mulf %287, %241 : vector<8x32xf32>
    %291 = arith.mulf %286, %288 : vector<8x32xf32>
    %292 = arith.addf %290, %291 : vector<8x32xf32>
    %293 = math.tanh %292 : vector<8x32xf32>
    %294 = arith.mulf %289, %293 : vector<8x32xf32>
    %295 = arith.negf %279 : vector<8x128xf32>
    %296 = math.exp %295 : vector<8x128xf32>
    %cst_85 = arith.constant 1.000000e+00 : f32
    %297 = vector.broadcast %cst_85 : f32 to vector<8x128xf32>
    %298 = arith.addf %297, %296 : vector<8x128xf32>
    %299 = arith.divf %297, %298 : vector<8x128xf32>
    %300 = math.tanh %279 : vector<8x128xf32>
    %301 = vector.extract_strided_slice %299 {offsets = [0, 0], sizes = [8, 32], strides = [1, 1]} : vector<8x128xf32> to vector<8x32xf32>
    %302 = vector.extract_strided_slice %299 {offsets = [0, 32], sizes = [8, 32], strides = [1, 1]} : vector<8x128xf32> to vector<8x32xf32>
    %303 = vector.extract_strided_slice %300 {offsets = [0, 64], sizes = [8, 32], strides = [1, 1]} : vector<8x128xf32> to vector<8x32xf32>
    %304 = vector.extract_strided_slice %299 {offsets = [0, 96], sizes = [8, 32], strides = [1, 1]} : vector<8x128xf32> to vector<8x32xf32>
    %305 = arith.mulf %302, %256 : vector<8x32xf32>
    %306 = arith.mulf %301, %303 : vector<8x32xf32>
    %307 = arith.addf %305, %306 : vector<8x32xf32>
    %308 = math.tanh %307 : vector<8x32xf32>
    %309 = arith.mulf %304, %308 : vector<8x32xf32>
    %310 = arith.index_cast %c5_i32 : i32 to index
    %c0_86 = arith.constant 0 : index
    %c0_87 = arith.constant 0 : index
    %311 = vector.load %arg13[%310, %c0_86, %c0_87] : memref<8x8x64xf32, #tpu.memory_space<vmem>>, vector<1x8x32xf32>
    %312 = vector.shape_cast %311 : vector<1x8x32xf32> to vector<8x32xf32>
    %313 = vector.shape_cast %294 : vector<8x32xf32> to vector<1x8x32xf32>
    tpu.vector_store %arg13[%310, %c0_86, %c0_87], %313 {strides = array<i32>} : memref<8x8x64xf32, #tpu.memory_space<vmem>>, vector<1x8x32xf32>,
    %314 = arith.index_cast %267 : i32 to index
    %c0_88 = arith.constant 0 : index
    %c32_89 = arith.constant 32 : index
    %315 = vector.load %arg13[%314, %c0_88, %c32_89] : memref<8x8x64xf32, #tpu.memory_space<vmem>>, vector<1x8x32xf32>
    %316 = vector.shape_cast %315 : vector<1x8x32xf32> to vector<8x32xf32>
    %317 = vector.shape_cast %309 : vector<8x32xf32> to vector<1x8x32xf32>
    tpu.vector_store %arg13[%314, %c0_88, %c32_89], %317 {strides = array<i32>} : memref<8x8x64xf32, #tpu.memory_space<vmem>>, vector<1x8x32xf32>,
    %c6_i32 = arith.constant 6 : i32
    %c7_i32_90 = arith.constant 7 : i32
    %318 = arith.subi %c7_i32_90, %c6_i32 : i32
    %319 = arith.index_cast %c6_i32 : i32 to index
    %c0_91 = arith.constant 0 : index
    %c0_92 = arith.constant 0 : index
    %320 = vector.load %arg12[%319, %c0_91, %c0_92] : memref<8x8x256xf32, #tpu.memory_space<vmem>>, vector<1x8x256xf32>
    %321 = vector.shape_cast %320 : vector<1x8x256xf32> to vector<8x256xf32>
    %322 = arith.index_cast %318 : i32 to index
    %c0_93 = arith.constant 0 : index
    %c0_94 = arith.constant 0 : index
    %323 = vector.load %arg12[%322, %c0_93, %c0_94] : memref<8x8x256xf32, #tpu.memory_space<vmem>>, vector<1x8x256xf32>
    %324 = vector.shape_cast %323 : vector<1x8x256xf32> to vector<8x256xf32>
    %325 = vector.extract_strided_slice %321 {offsets = [0, 0], sizes = [8, 128], strides = [1, 1]} : vector<8x256xf32> to vector<8x128xf32>
    %cst_95 = arith.constant dense<0.000000e+00> : vector<8x128xf32>
    %326 = tpu.matmul %294, %9, %cst_95 {dimension_numbers = #tpu.dot_dimension_numbers<[1], [0], [0], [1], [0, 0, 1, 1], [], []>} : vector<8x32xf32>, vector<32x128xf32>, vector<8x128xf32> -> vector<8x128xf32>
    %327 = arith.addf %325, %326 : vector<8x128xf32>
    %328 = vector.extract_strided_slice %324 {offsets = [0, 128], sizes = [8, 128], strides = [1, 1]} : vector<8x256xf32> to vector<8x128xf32>
    %cst_96 = arith.constant dense<0.000000e+00> : vector<8x128xf32>
    %329 = tpu.matmul %309, %10, %cst_96 {dimension_numbers = #tpu.dot_dimension_numbers<[1], [0], [0], [1], [0, 0, 1, 1], [], []>} : vector<8x32xf32>, vector<32x128xf32>, vector<8x128xf32> -> vector<8x128xf32>
    %330 = arith.addf %328, %329 : vector<8x128xf32>
    %331 = arith.negf %327 : vector<8x128xf32>
    %332 = math.exp %331 : vector<8x128xf32>
    %cst_97 = arith.constant 1.000000e+00 : f32
    %333 = vector.broadcast %cst_97 : f32 to vector<8x128xf32>
    %334 = arith.addf %333, %332 : vector<8x128xf32>
    %335 = arith.divf %333, %334 : vector<8x128xf32>
    %336 = math.tanh %327 : vector<8x128xf32>
    %337 = vector.extract_strided_slice %335 {offsets = [0, 0], sizes = [8, 32], strides = [1, 1]} : vector<8x128xf32> to vector<8x32xf32>
    %338 = vector.extract_strided_slice %335 {offsets = [0, 32], sizes = [8, 32], strides = [1, 1]} : vector<8x128xf32> to vector<8x32xf32>
    %339 = vector.extract_strided_slice %336 {offsets = [0, 64], sizes = [8, 32], strides = [1, 1]} : vector<8x128xf32> to vector<8x32xf32>
    %340 = vector.extract_strided_slice %335 {offsets = [0, 96], sizes = [8, 32], strides = [1, 1]} : vector<8x128xf32> to vector<8x32xf32>
    %341 = arith.mulf %338, %292 : vector<8x32xf32>
    %342 = arith.mulf %337, %339 : vector<8x32xf32>
    %343 = arith.addf %341, %342 : vector<8x32xf32>
    %344 = math.tanh %343 : vector<8x32xf32>
    %345 = arith.mulf %340, %344 : vector<8x32xf32>
    %346 = arith.negf %330 : vector<8x128xf32>
    %347 = math.exp %346 : vector<8x128xf32>
    %cst_98 = arith.constant 1.000000e+00 : f32
    %348 = vector.broadcast %cst_98 : f32 to vector<8x128xf32>
    %349 = arith.addf %348, %347 : vector<8x128xf32>
    %350 = arith.divf %348, %349 : vector<8x128xf32>
    %351 = math.tanh %330 : vector<8x128xf32>
    %352 = vector.extract_strided_slice %350 {offsets = [0, 0], sizes = [8, 32], strides = [1, 1]} : vector<8x128xf32> to vector<8x32xf32>
    %353 = vector.extract_strided_slice %350 {offsets = [0, 32], sizes = [8, 32], strides = [1, 1]} : vector<8x128xf32> to vector<8x32xf32>
    %354 = vector.extract_strided_slice %351 {offsets = [0, 64], sizes = [8, 32], strides = [1, 1]} : vector<8x128xf32> to vector<8x32xf32>
    %355 = vector.extract_strided_slice %350 {offsets = [0, 96], sizes = [8, 32], strides = [1, 1]} : vector<8x128xf32> to vector<8x32xf32>
    %356 = arith.mulf %353, %307 : vector<8x32xf32>
    %357 = arith.mulf %352, %354 : vector<8x32xf32>
    %358 = arith.addf %356, %357 : vector<8x32xf32>
    %359 = math.tanh %358 : vector<8x32xf32>
    %360 = arith.mulf %355, %359 : vector<8x32xf32>
    %361 = arith.index_cast %c6_i32 : i32 to index
    %c0_99 = arith.constant 0 : index
    %c0_100 = arith.constant 0 : index
    %362 = vector.load %arg13[%361, %c0_99, %c0_100] : memref<8x8x64xf32, #tpu.memory_space<vmem>>, vector<1x8x32xf32>
    %363 = vector.shape_cast %362 : vector<1x8x32xf32> to vector<8x32xf32>
    %364 = vector.shape_cast %345 : vector<8x32xf32> to vector<1x8x32xf32>
    tpu.vector_store %arg13[%361, %c0_99, %c0_100], %364 {strides = array<i32>} : memref<8x8x64xf32, #tpu.memory_space<vmem>>, vector<1x8x32xf32>,
    %365 = arith.index_cast %318 : i32 to index
    %c0_101 = arith.constant 0 : index
    %c32_102 = arith.constant 32 : index
    %366 = vector.load %arg13[%365, %c0_101, %c32_102] : memref<8x8x64xf32, #tpu.memory_space<vmem>>, vector<1x8x32xf32>
    %367 = vector.shape_cast %366 : vector<1x8x32xf32> to vector<8x32xf32>
    %368 = vector.shape_cast %360 : vector<8x32xf32> to vector<1x8x32xf32>
    tpu.vector_store %arg13[%365, %c0_101, %c32_102], %368 {strides = array<i32>} : memref<8x8x64xf32, #tpu.memory_space<vmem>>, vector<1x8x32xf32>,
    %c7_i32_103 = arith.constant 7 : i32
    %c7_i32_104 = arith.constant 7 : i32
    %369 = arith.subi %c7_i32_104, %c7_i32_103 : i32
    %370 = arith.index_cast %c7_i32_103 : i32 to index
    %c0_105 = arith.constant 0 : index
    %c0_106 = arith.constant 0 : index
    %371 = vector.load %arg12[%370, %c0_105, %c0_106] : memref<8x8x256xf32, #tpu.memory_space<vmem>>, vector<1x8x256xf32>
    %372 = vector.shape_cast %371 : vector<1x8x256xf32> to vector<8x256xf32>
    %373 = arith.index_cast %369 : i32 to index
    %c0_107 = arith.constant 0 : index
    %c0_108 = arith.constant 0 : index
    %374 = vector.load %arg12[%373, %c0_107, %c0_108] : memref<8x8x256xf32, #tpu.memory_space<vmem>>, vector<1x8x256xf32>
    %375 = vector.shape_cast %374 : vector<1x8x256xf32> to vector<8x256xf32>
    %376 = vector.extract_strided_slice %372 {offsets = [0, 0], sizes = [8, 128], strides = [1, 1]} : vector<8x256xf32> to vector<8x128xf32>
    %cst_109 = arith.constant dense<0.000000e+00> : vector<8x128xf32>
    %377 = tpu.matmul %345, %9, %cst_109 {dimension_numbers = #tpu.dot_dimension_numbers<[1], [0], [0], [1], [0, 0, 1, 1], [], []>} : vector<8x32xf32>, vector<32x128xf32>, vector<8x128xf32> -> vector<8x128xf32>
    %378 = arith.addf %376, %377 : vector<8x128xf32>
    %379 = vector.extract_strided_slice %375 {offsets = [0, 128], sizes = [8, 128], strides = [1, 1]} : vector<8x256xf32> to vector<8x128xf32>
    %cst_110 = arith.constant dense<0.000000e+00> : vector<8x128xf32>
    %380 = tpu.matmul %360, %10, %cst_110 {dimension_numbers = #tpu.dot_dimension_numbers<[1], [0], [0], [1], [0, 0, 1, 1], [], []>} : vector<8x32xf32>, vector<32x128xf32>, vector<8x128xf32> -> vector<8x128xf32>
    %381 = arith.addf %379, %380 : vector<8x128xf32>
    %382 = arith.negf %378 : vector<8x128xf32>
    %383 = math.exp %382 : vector<8x128xf32>
    %cst_111 = arith.constant 1.000000e+00 : f32
    %384 = vector.broadcast %cst_111 : f32 to vector<8x128xf32>
    %385 = arith.addf %384, %383 : vector<8x128xf32>
    %386 = arith.divf %384, %385 : vector<8x128xf32>
    %387 = math.tanh %378 : vector<8x128xf32>
    %388 = vector.extract_strided_slice %386 {offsets = [0, 0], sizes = [8, 32], strides = [1, 1]} : vector<8x128xf32> to vector<8x32xf32>
    %389 = vector.extract_strided_slice %386 {offsets = [0, 32], sizes = [8, 32], strides = [1, 1]} : vector<8x128xf32> to vector<8x32xf32>
    %390 = vector.extract_strided_slice %387 {offsets = [0, 64], sizes = [8, 32], strides = [1, 1]} : vector<8x128xf32> to vector<8x32xf32>
    %391 = vector.extract_strided_slice %386 {offsets = [0, 96], sizes = [8, 32], strides = [1, 1]} : vector<8x128xf32> to vector<8x32xf32>
    %392 = arith.mulf %389, %343 : vector<8x32xf32>
    %393 = arith.mulf %388, %390 : vector<8x32xf32>
    %394 = arith.addf %392, %393 : vector<8x32xf32>
    %395 = math.tanh %394 : vector<8x32xf32>
    %396 = arith.mulf %391, %395 : vector<8x32xf32>
    %397 = arith.negf %381 : vector<8x128xf32>
    %398 = math.exp %397 : vector<8x128xf32>
    %cst_112 = arith.constant 1.000000e+00 : f32
    %399 = vector.broadcast %cst_112 : f32 to vector<8x128xf32>
    %400 = arith.addf %399, %398 : vector<8x128xf32>
    %401 = arith.divf %399, %400 : vector<8x128xf32>
    %402 = math.tanh %381 : vector<8x128xf32>
    %403 = vector.extract_strided_slice %401 {offsets = [0, 0], sizes = [8, 32], strides = [1, 1]} : vector<8x128xf32> to vector<8x32xf32>
    %404 = vector.extract_strided_slice %401 {offsets = [0, 32], sizes = [8, 32], strides = [1, 1]} : vector<8x128xf32> to vector<8x32xf32>
    %405 = vector.extract_strided_slice %402 {offsets = [0, 64], sizes = [8, 32], strides = [1, 1]} : vector<8x128xf32> to vector<8x32xf32>
    %406 = vector.extract_strided_slice %401 {offsets = [0, 96], sizes = [8, 32], strides = [1, 1]} : vector<8x128xf32> to vector<8x32xf32>
    %407 = arith.mulf %404, %358 : vector<8x32xf32>
    %408 = arith.mulf %403, %405 : vector<8x32xf32>
    %409 = arith.addf %407, %408 : vector<8x32xf32>
    %410 = math.tanh %409 : vector<8x32xf32>
    %411 = arith.mulf %406, %410 : vector<8x32xf32>
    %412 = arith.index_cast %c7_i32_103 : i32 to index
    %c0_113 = arith.constant 0 : index
    %c0_114 = arith.constant 0 : index
    %413 = vector.load %arg13[%412, %c0_113, %c0_114] : memref<8x8x64xf32, #tpu.memory_space<vmem>>, vector<1x8x32xf32>
    %414 = vector.shape_cast %413 : vector<1x8x32xf32> to vector<8x32xf32>
    %415 = vector.shape_cast %396 : vector<8x32xf32> to vector<1x8x32xf32>
    tpu.vector_store %arg13[%412, %c0_113, %c0_114], %415 {strides = array<i32>} : memref<8x8x64xf32, #tpu.memory_space<vmem>>, vector<1x8x32xf32>,
    %416 = arith.index_cast %369 : i32 to index
    %c0_115 = arith.constant 0 : index
    %c32_116 = arith.constant 32 : index
    %417 = vector.load %arg13[%416, %c0_115, %c32_116] : memref<8x8x64xf32, #tpu.memory_space<vmem>>, vector<1x8x32xf32>
    %418 = vector.shape_cast %417 : vector<1x8x32xf32> to vector<8x32xf32>
    %419 = vector.shape_cast %411 : vector<8x32xf32> to vector<1x8x32xf32>
    tpu.vector_store %arg13[%416, %c0_115, %c32_116], %419 {strides = array<i32>} : memref<8x8x64xf32, #tpu.memory_space<vmem>>, vector<1x8x32xf32>,
    %c8_i32 = arith.constant 8 : i32
    %c0_117 = arith.constant 0 : index
    %c0_118 = arith.constant 0 : index
    %c0_119 = arith.constant 0 : index
    %420 = vector.load %arg13[%c0_117, %c0_118, %c0_119] : memref<8x8x64xf32, #tpu.memory_space<vmem>>, vector<8x8x64xf32>
    %421 = vector.shape_cast %420 : vector<8x8x64xf32> to vector<64x64xf32>
    %c0_120 = arith.constant 0 : index
    %c0_121 = arith.constant 0 : index
    %422 = vector.load %arg6[%c0_120, %c0_121] : memref<64x128xf32, #tpu.memory_space<vmem>>, vector<64x128xf32>
    %cst_122 = arith.constant dense<0.000000e+00> : vector<64x128xf32>
    %423 = tpu.matmul %421, %422, %cst_122 {dimension_numbers = #tpu.dot_dimension_numbers<[1], [0], [0], [1], [0, 0, 1, 1], [], []>} : vector<64x64xf32>, vector<64x128xf32>, vector<64x128xf32> -> vector<64x128xf32>
    %c0_123 = arith.constant 0 : index
    %c0_124 = arith.constant 0 : index
    %424 = vector.load %arg8[%c0_123, %c0_124] : memref<1x128xf32, #tpu.memory_space<vmem>>, vector<1x128xf32>
    %425 = vector.broadcast %424 : vector<1x128xf32> to vector<64x128xf32>
    %426 = arith.addf %423, %425 : vector<64x128xf32>
    %427 = vector.shape_cast %426 : vector<64x128xf32> to vector<8x8x128xf32>
    %c0_125 = arith.constant 0 : index
    %c0_126 = arith.constant 0 : index
    %c0_127 = arith.constant 0 : index
    %428 = vector.load %arg14[%c0_125, %c0_126, %c0_127] : memref<8x8x128xf32, #tpu.memory_space<vmem>>, vector<8x8x128xf32>
    tpu.vector_store %arg14[%c0_125, %c0_126, %c0_127], %427 {strides = array<i32>} : memref<8x8x128xf32, #tpu.memory_space<vmem>>, vector<8x8x128xf32>,
    %c0_128 = arith.constant 0 : index
    %c0_129 = arith.constant 0 : index
    %429 = vector.load %arg7[%c0_128, %c0_129] : memref<32x128xf32, #tpu.memory_space<vmem>>, vector<32x128xf32>
    %c0_i32_130 = arith.constant 0 : i32
    %c7_i32_131 = arith.constant 7 : i32
    %430 = arith.subi %c7_i32_131, %c0_i32_130 : i32
    %431 = arith.index_cast %430 : i32 to index
    %c0_132 = arith.constant 0 : index
    %c0_133 = arith.constant 0 : index
    %432 = vector.load %arg14[%431, %c0_132, %c0_133] : memref<8x8x128xf32, #tpu.memory_space<vmem>>, vector<1x8x128xf32>
    %433 = vector.shape_cast %432 : vector<1x8x128xf32> to vector<8x128xf32>
    %cst_134 = arith.constant dense<0.000000e+00> : vector<8x128xf32>
    %434 = tpu.matmul %11, %429, %cst_134 {dimension_numbers = #tpu.dot_dimension_numbers<[1], [0], [0], [1], [0, 0, 1, 1], [], []>} : vector<8x32xf32>, vector<32x128xf32>, vector<8x128xf32> -> vector<8x128xf32>
    %435 = arith.addf %433, %434 : vector<8x128xf32>
    %436 = arith.negf %435 : vector<8x128xf32>
    %437 = math.exp %436 : vector<8x128xf32>
    %cst_135 = arith.constant 1.000000e+00 : f32
    %438 = vector.broadcast %cst_135 : f32 to vector<8x128xf32>
    %439 = arith.addf %438, %437 : vector<8x128xf32>
    %440 = arith.divf %438, %439 : vector<8x128xf32>
    %441 = math.tanh %435 : vector<8x128xf32>
    %442 = vector.extract_strided_slice %440 {offsets = [0, 0], sizes = [8, 32], strides = [1, 1]} : vector<8x128xf32> to vector<8x32xf32>
    %443 = vector.extract_strided_slice %440 {offsets = [0, 32], sizes = [8, 32], strides = [1, 1]} : vector<8x128xf32> to vector<8x32xf32>
    %444 = vector.extract_strided_slice %441 {offsets = [0, 64], sizes = [8, 32], strides = [1, 1]} : vector<8x128xf32> to vector<8x32xf32>
    %445 = vector.extract_strided_slice %440 {offsets = [0, 96], sizes = [8, 32], strides = [1, 1]} : vector<8x128xf32> to vector<8x32xf32>
    %446 = arith.mulf %443, %11 : vector<8x32xf32>
    %447 = arith.mulf %442, %444 : vector<8x32xf32>
    %448 = arith.addf %446, %447 : vector<8x32xf32>
    %449 = math.tanh %448 : vector<8x32xf32>
    %450 = arith.mulf %445, %449 : vector<8x32xf32>
    %c1_i32_136 = arith.constant 1 : i32
    %c7_i32_137 = arith.constant 7 : i32
    %451 = arith.subi %c7_i32_137, %c1_i32_136 : i32
    %452 = arith.index_cast %451 : i32 to index
    %c0_138 = arith.constant 0 : index
    %c0_139 = arith.constant 0 : index
    %453 = vector.load %arg14[%452, %c0_138, %c0_139] : memref<8x8x128xf32, #tpu.memory_space<vmem>>, vector<1x8x128xf32>
    %454 = vector.shape_cast %453 : vector<1x8x128xf32> to vector<8x128xf32>
    %cst_140 = arith.constant dense<0.000000e+00> : vector<8x128xf32>
    %455 = tpu.matmul %450, %429, %cst_140 {dimension_numbers = #tpu.dot_dimension_numbers<[1], [0], [0], [1], [0, 0, 1, 1], [], []>} : vector<8x32xf32>, vector<32x128xf32>, vector<8x128xf32> -> vector<8x128xf32>
    %456 = arith.addf %454, %455 : vector<8x128xf32>
    %457 = arith.negf %456 : vector<8x128xf32>
    %458 = math.exp %457 : vector<8x128xf32>
    %cst_141 = arith.constant 1.000000e+00 : f32
    %459 = vector.broadcast %cst_141 : f32 to vector<8x128xf32>
    %460 = arith.addf %459, %458 : vector<8x128xf32>
    %461 = arith.divf %459, %460 : vector<8x128xf32>
    %462 = math.tanh %456 : vector<8x128xf32>
    %463 = vector.extract_strided_slice %461 {offsets = [0, 0], sizes = [8, 32], strides = [1, 1]} : vector<8x128xf32> to vector<8x32xf32>
    %464 = vector.extract_strided_slice %461 {offsets = [0, 32], sizes = [8, 32], strides = [1, 1]} : vector<8x128xf32> to vector<8x32xf32>
    %465 = vector.extract_strided_slice %462 {offsets = [0, 64], sizes = [8, 32], strides = [1, 1]} : vector<8x128xf32> to vector<8x32xf32>
    %466 = vector.extract_strided_slice %461 {offsets = [0, 96], sizes = [8, 32], strides = [1, 1]} : vector<8x128xf32> to vector<8x32xf32>
    %467 = arith.mulf %464, %448 : vector<8x32xf32>
    %468 = arith.mulf %463, %465 : vector<8x32xf32>
    %469 = arith.addf %467, %468 : vector<8x32xf32>
    %470 = math.tanh %469 : vector<8x32xf32>
    %471 = arith.mulf %466, %470 : vector<8x32xf32>
    %c2_i32_142 = arith.constant 2 : i32
    %c7_i32_143 = arith.constant 7 : i32
    %472 = arith.subi %c7_i32_143, %c2_i32_142 : i32
    %473 = arith.index_cast %472 : i32 to index
    %c0_144 = arith.constant 0 : index
    %c0_145 = arith.constant 0 : index
    %474 = vector.load %arg14[%473, %c0_144, %c0_145] : memref<8x8x128xf32, #tpu.memory_space<vmem>>, vector<1x8x128xf32>
    %475 = vector.shape_cast %474 : vector<1x8x128xf32> to vector<8x128xf32>
    %cst_146 = arith.constant dense<0.000000e+00> : vector<8x128xf32>
    %476 = tpu.matmul %471, %429, %cst_146 {dimension_numbers = #tpu.dot_dimension_numbers<[1], [0], [0], [1], [0, 0, 1, 1], [], []>} : vector<8x32xf32>, vector<32x128xf32>, vector<8x128xf32> -> vector<8x128xf32>
    %477 = arith.addf %475, %476 : vector<8x128xf32>
    %478 = arith.negf %477 : vector<8x128xf32>
    %479 = math.exp %478 : vector<8x128xf32>
    %cst_147 = arith.constant 1.000000e+00 : f32
    %480 = vector.broadcast %cst_147 : f32 to vector<8x128xf32>
    %481 = arith.addf %480, %479 : vector<8x128xf32>
    %482 = arith.divf %480, %481 : vector<8x128xf32>
    %483 = math.tanh %477 : vector<8x128xf32>
    %484 = vector.extract_strided_slice %482 {offsets = [0, 0], sizes = [8, 32], strides = [1, 1]} : vector<8x128xf32> to vector<8x32xf32>
    %485 = vector.extract_strided_slice %482 {offsets = [0, 32], sizes = [8, 32], strides = [1, 1]} : vector<8x128xf32> to vector<8x32xf32>
    %486 = vector.extract_strided_slice %483 {offsets = [0, 64], sizes = [8, 32], strides = [1, 1]} : vector<8x128xf32> to vector<8x32xf32>
    %487 = vector.extract_strided_slice %482 {offsets = [0, 96], sizes = [8, 32], strides = [1, 1]} : vector<8x128xf32> to vector<8x32xf32>
    %488 = arith.mulf %485, %469 : vector<8x32xf32>
    %489 = arith.mulf %484, %486 : vector<8x32xf32>
    %490 = arith.addf %488, %489 : vector<8x32xf32>
    %491 = math.tanh %490 : vector<8x32xf32>
    %492 = arith.mulf %487, %491 : vector<8x32xf32>
    %c3_i32_148 = arith.constant 3 : i32
    %c7_i32_149 = arith.constant 7 : i32
    %493 = arith.subi %c7_i32_149, %c3_i32_148 : i32
    %494 = arith.index_cast %493 : i32 to index
    %c0_150 = arith.constant 0 : index
    %c0_151 = arith.constant 0 : index
    %495 = vector.load %arg14[%494, %c0_150, %c0_151] : memref<8x8x128xf32, #tpu.memory_space<vmem>>, vector<1x8x128xf32>
    %496 = vector.shape_cast %495 : vector<1x8x128xf32> to vector<8x128xf32>
    %cst_152 = arith.constant dense<0.000000e+00> : vector<8x128xf32>
    %497 = tpu.matmul %492, %429, %cst_152 {dimension_numbers = #tpu.dot_dimension_numbers<[1], [0], [0], [1], [0, 0, 1, 1], [], []>} : vector<8x32xf32>, vector<32x128xf32>, vector<8x128xf32> -> vector<8x128xf32>
    %498 = arith.addf %496, %497 : vector<8x128xf32>
    %499 = arith.negf %498 : vector<8x128xf32>
    %500 = math.exp %499 : vector<8x128xf32>
    %cst_153 = arith.constant 1.000000e+00 : f32
    %501 = vector.broadcast %cst_153 : f32 to vector<8x128xf32>
    %502 = arith.addf %501, %500 : vector<8x128xf32>
    %503 = arith.divf %501, %502 : vector<8x128xf32>
    %504 = math.tanh %498 : vector<8x128xf32>
    %505 = vector.extract_strided_slice %503 {offsets = [0, 0], sizes = [8, 32], strides = [1, 1]} : vector<8x128xf32> to vector<8x32xf32>
    %506 = vector.extract_strided_slice %503 {offsets = [0, 32], sizes = [8, 32], strides = [1, 1]} : vector<8x128xf32> to vector<8x32xf32>
    %507 = vector.extract_strided_slice %504 {offsets = [0, 64], sizes = [8, 32], strides = [1, 1]} : vector<8x128xf32> to vector<8x32xf32>
    %508 = vector.extract_strided_slice %503 {offsets = [0, 96], sizes = [8, 32], strides = [1, 1]} : vector<8x128xf32> to vector<8x32xf32>
    %509 = arith.mulf %506, %490 : vector<8x32xf32>
    %510 = arith.mulf %505, %507 : vector<8x32xf32>
    %511 = arith.addf %509, %510 : vector<8x32xf32>
    %512 = math.tanh %511 : vector<8x32xf32>
    %513 = arith.mulf %508, %512 : vector<8x32xf32>
    %c4_i32_154 = arith.constant 4 : i32
    %c7_i32_155 = arith.constant 7 : i32
    %514 = arith.subi %c7_i32_155, %c4_i32_154 : i32
    %515 = arith.index_cast %514 : i32 to index
    %c0_156 = arith.constant 0 : index
    %c0_157 = arith.constant 0 : index
    %516 = vector.load %arg14[%515, %c0_156, %c0_157] : memref<8x8x128xf32, #tpu.memory_space<vmem>>, vector<1x8x128xf32>
    %517 = vector.shape_cast %516 : vector<1x8x128xf32> to vector<8x128xf32>
    %cst_158 = arith.constant dense<0.000000e+00> : vector<8x128xf32>
    %518 = tpu.matmul %513, %429, %cst_158 {dimension_numbers = #tpu.dot_dimension_numbers<[1], [0], [0], [1], [0, 0, 1, 1], [], []>} : vector<8x32xf32>, vector<32x128xf32>, vector<8x128xf32> -> vector<8x128xf32>
    %519 = arith.addf %517, %518 : vector<8x128xf32>
    %520 = arith.negf %519 : vector<8x128xf32>
    %521 = math.exp %520 : vector<8x128xf32>
    %cst_159 = arith.constant 1.000000e+00 : f32
    %522 = vector.broadcast %cst_159 : f32 to vector<8x128xf32>
    %523 = arith.addf %522, %521 : vector<8x128xf32>
    %524 = arith.divf %522, %523 : vector<8x128xf32>
    %525 = math.tanh %519 : vector<8x128xf32>
    %526 = vector.extract_strided_slice %524 {offsets = [0, 0], sizes = [8, 32], strides = [1, 1]} : vector<8x128xf32> to vector<8x32xf32>
    %527 = vector.extract_strided_slice %524 {offsets = [0, 32], sizes = [8, 32], strides = [1, 1]} : vector<8x128xf32> to vector<8x32xf32>
    %528 = vector.extract_strided_slice %525 {offsets = [0, 64], sizes = [8, 32], strides = [1, 1]} : vector<8x128xf32> to vector<8x32xf32>
    %529 = vector.extract_strided_slice %524 {offsets = [0, 96], sizes = [8, 32], strides = [1, 1]} : vector<8x128xf32> to vector<8x32xf32>
    %530 = arith.mulf %527, %511 : vector<8x32xf32>
    %531 = arith.mulf %526, %528 : vector<8x32xf32>
    %532 = arith.addf %530, %531 : vector<8x32xf32>
    %533 = math.tanh %532 : vector<8x32xf32>
    %534 = arith.mulf %529, %533 : vector<8x32xf32>
    %c5_i32_160 = arith.constant 5 : i32
    %c7_i32_161 = arith.constant 7 : i32
    %535 = arith.subi %c7_i32_161, %c5_i32_160 : i32
    %536 = arith.index_cast %535 : i32 to index
    %c0_162 = arith.constant 0 : index
    %c0_163 = arith.constant 0 : index
    %537 = vector.load %arg14[%536, %c0_162, %c0_163] : memref<8x8x128xf32, #tpu.memory_space<vmem>>, vector<1x8x128xf32>
    %538 = vector.shape_cast %537 : vector<1x8x128xf32> to vector<8x128xf32>
    %cst_164 = arith.constant dense<0.000000e+00> : vector<8x128xf32>
    %539 = tpu.matmul %534, %429, %cst_164 {dimension_numbers = #tpu.dot_dimension_numbers<[1], [0], [0], [1], [0, 0, 1, 1], [], []>} : vector<8x32xf32>, vector<32x128xf32>, vector<8x128xf32> -> vector<8x128xf32>
    %540 = arith.addf %538, %539 : vector<8x128xf32>
    %541 = arith.negf %540 : vector<8x128xf32>
    %542 = math.exp %541 : vector<8x128xf32>
    %cst_165 = arith.constant 1.000000e+00 : f32
    %543 = vector.broadcast %cst_165 : f32 to vector<8x128xf32>
    %544 = arith.addf %543, %542 : vector<8x128xf32>
    %545 = arith.divf %543, %544 : vector<8x128xf32>
    %546 = math.tanh %540 : vector<8x128xf32>
    %547 = vector.extract_strided_slice %545 {offsets = [0, 0], sizes = [8, 32], strides = [1, 1]} : vector<8x128xf32> to vector<8x32xf32>
    %548 = vector.extract_strided_slice %545 {offsets = [0, 32], sizes = [8, 32], strides = [1, 1]} : vector<8x128xf32> to vector<8x32xf32>
    %549 = vector.extract_strided_slice %546 {offsets = [0, 64], sizes = [8, 32], strides = [1, 1]} : vector<8x128xf32> to vector<8x32xf32>
    %550 = vector.extract_strided_slice %545 {offsets = [0, 96], sizes = [8, 32], strides = [1, 1]} : vector<8x128xf32> to vector<8x32xf32>
    %551 = arith.mulf %548, %532 : vector<8x32xf32>
    %552 = arith.mulf %547, %549 : vector<8x32xf32>
    %553 = arith.addf %551, %552 : vector<8x32xf32>
    %554 = math.tanh %553 : vector<8x32xf32>
    %555 = arith.mulf %550, %554 : vector<8x32xf32>
    %c6_i32_166 = arith.constant 6 : i32
    %c7_i32_167 = arith.constant 7 : i32
    %556 = arith.subi %c7_i32_167, %c6_i32_166 : i32
    %557 = arith.index_cast %556 : i32 to index
    %c0_168 = arith.constant 0 : index
    %c0_169 = arith.constant 0 : index
    %558 = vector.load %arg14[%557, %c0_168, %c0_169] : memref<8x8x128xf32, #tpu.memory_space<vmem>>, vector<1x8x128xf32>
    %559 = vector.shape_cast %558 : vector<1x8x128xf32> to vector<8x128xf32>
    %cst_170 = arith.constant dense<0.000000e+00> : vector<8x128xf32>
    %560 = tpu.matmul %555, %429, %cst_170 {dimension_numbers = #tpu.dot_dimension_numbers<[1], [0], [0], [1], [0, 0, 1, 1], [], []>} : vector<8x32xf32>, vector<32x128xf32>, vector<8x128xf32> -> vector<8x128xf32>
    %561 = arith.addf %559, %560 : vector<8x128xf32>
    %562 = arith.negf %561 : vector<8x128xf32>
    %563 = math.exp %562 : vector<8x128xf32>
    %cst_171 = arith.constant 1.000000e+00 : f32
    %564 = vector.broadcast %cst_171 : f32 to vector<8x128xf32>
    %565 = arith.addf %564, %563 : vector<8x128xf32>
    %566 = arith.divf %564, %565 : vector<8x128xf32>
    %567 = math.tanh %561 : vector<8x128xf32>
    %568 = vector.extract_strided_slice %566 {offsets = [0, 0], sizes = [8, 32], strides = [1, 1]} : vector<8x128xf32> to vector<8x32xf32>
    %569 = vector.extract_strided_slice %566 {offsets = [0, 32], sizes = [8, 32], strides = [1, 1]} : vector<8x128xf32> to vector<8x32xf32>
    %570 = vector.extract_strided_slice %567 {offsets = [0, 64], sizes = [8, 32], strides = [1, 1]} : vector<8x128xf32> to vector<8x32xf32>
    %571 = vector.extract_strided_slice %566 {offsets = [0, 96], sizes = [8, 32], strides = [1, 1]} : vector<8x128xf32> to vector<8x32xf32>
    %572 = arith.mulf %569, %553 : vector<8x32xf32>
    %573 = arith.mulf %568, %570 : vector<8x32xf32>
    %574 = arith.addf %572, %573 : vector<8x32xf32>
    %575 = math.tanh %574 : vector<8x32xf32>
    %576 = arith.mulf %571, %575 : vector<8x32xf32>
    %c7_i32_172 = arith.constant 7 : i32
    %c7_i32_173 = arith.constant 7 : i32
    %577 = arith.subi %c7_i32_173, %c7_i32_172 : i32
    %578 = arith.index_cast %577 : i32 to index
    %c0_174 = arith.constant 0 : index
    %c0_175 = arith.constant 0 : index
    %579 = vector.load %arg14[%578, %c0_174, %c0_175] : memref<8x8x128xf32, #tpu.memory_space<vmem>>, vector<1x8x128xf32>
    %580 = vector.shape_cast %579 : vector<1x8x128xf32> to vector<8x128xf32>
    %cst_176 = arith.constant dense<0.000000e+00> : vector<8x128xf32>
    %581 = tpu.matmul %576, %429, %cst_176 {dimension_numbers = #tpu.dot_dimension_numbers<[1], [0], [0], [1], [0, 0, 1, 1], [], []>} : vector<8x32xf32>, vector<32x128xf32>, vector<8x128xf32> -> vector<8x128xf32>
    %582 = arith.addf %580, %581 : vector<8x128xf32>
    %583 = arith.negf %582 : vector<8x128xf32>
    %584 = math.exp %583 : vector<8x128xf32>
    %cst_177 = arith.constant 1.000000e+00 : f32
    %585 = vector.broadcast %cst_177 : f32 to vector<8x128xf32>
    %586 = arith.addf %585, %584 : vector<8x128xf32>
    %587 = arith.divf %585, %586 : vector<8x128xf32>
    %588 = math.tanh %582 : vector<8x128xf32>
    %589 = vector.extract_strided_slice %587 {offsets = [0, 0], sizes = [8, 32], strides = [1, 1]} : vector<8x128xf32> to vector<8x32xf32>
    %590 = vector.extract_strided_slice %587 {offsets = [0, 32], sizes = [8, 32], strides = [1, 1]} : vector<8x128xf32> to vector<8x32xf32>
    %591 = vector.extract_strided_slice %588 {offsets = [0, 64], sizes = [8, 32], strides = [1, 1]} : vector<8x128xf32> to vector<8x32xf32>
    %592 = vector.extract_strided_slice %587 {offsets = [0, 96], sizes = [8, 32], strides = [1, 1]} : vector<8x128xf32> to vector<8x32xf32>
    %593 = arith.mulf %590, %574 : vector<8x32xf32>
    %594 = arith.mulf %589, %591 : vector<8x32xf32>
    %595 = arith.addf %593, %594 : vector<8x32xf32>
    %596 = math.tanh %595 : vector<8x32xf32>
    %597 = arith.mulf %592, %596 : vector<8x32xf32>
    %c8_i32_178 = arith.constant 8 : i32
    %c0_179 = arith.constant 0 : index
    %c0_180 = arith.constant 0 : index
    %598 = vector.load %arg9[%c0_179, %c0_180] : memref<1x32xf32, #tpu.memory_space<vmem>>, vector<1x32xf32>
    %599 = vector.broadcast %598 : vector<1x32xf32> to vector<8x32xf32>
    %600 = arith.mulf %597, %599 : vector<8x32xf32>
    %cst_181 = arith.constant dense<0.000000e+00> : vector<8xf32>
    %601 = vector.multi_reduction <add>, %600, %cst_181 [1] : vector<8x32xf32> to vector<8xf32>
    %602 = vector.shape_cast %601 : vector<8xf32> to vector<8x1xf32>
    %c0_182 = arith.constant 0 : index
    %c0_183 = arith.constant 0 : index
    %603 = vector.load %arg10[%c0_182, %c0_183] : memref<1x1xf32, #tpu.memory_space<vmem>>, vector<1x1xf32>
    %604 = vector.broadcast %603 : vector<1x1xf32> to vector<8x1xf32>
    %605 = arith.addf %602, %604 : vector<8x1xf32>
    %c0_184 = arith.constant 0 : index
    %c0_185 = arith.constant 0 : index
    %606 = vector.load %arg11[%c0_184, %c0_185] : memref<8x1xf32, #tpu.memory_space<vmem>>, vector<8x1xf32>
    tpu.vector_store %arg11[%c0_184, %c0_185], %605 {strides = array<i32>} : memref<8x1xf32, #tpu.memory_space<vmem>>, vector<8x1xf32>,
    return
  }
  func.func @transform_0(%arg0: i32) -> (i32, i32, i32) {
    %c0_i32 = arith.constant 0 : i32
    %c0_i32_0 = arith.constant 0 : i32
    %c0_i32_1 = arith.constant 0 : i32
    return %c0_i32, %arg0, %c0_i32_0 : i32, i32, i32
  }
  func.func @transform_1(%arg0: i32) -> (i32, i32) {
    %c0_i32 = arith.constant 0 : i32
    %c0_i32_0 = arith.constant 0 : i32
    %c0_i32_1 = arith.constant 0 : i32
    return %c0_i32, %c0_i32_0 : i32, i32
  }
  func.func @transform_2(%arg0: i32) -> (i32, i32) {
    %c0_i32 = arith.constant 0 : i32
    %c0_i32_0 = arith.constant 0 : i32
    %c0_i32_1 = arith.constant 0 : i32
    return %c0_i32, %c0_i32_0 : i32, i32
  }
  func.func @transform_3(%arg0: i32) -> (i32, i32) {
    %c0_i32 = arith.constant 0 : i32
    %c0_i32_0 = arith.constant 0 : i32
    %c0_i32_1 = arith.constant 0 : i32
    return %c0_i32, %c0_i32_0 : i32, i32
  }
  func.func @transform_4(%arg0: i32) -> (i32, i32) {
    %c0_i32 = arith.constant 0 : i32
    %c0_i32_0 = arith.constant 0 : i32
    %c0_i32_1 = arith.constant 0 : i32
    return %c0_i32, %c0_i32_0 : i32, i32
  }
  func.func @transform_5(%arg0: i32) -> (i32, i32) {
    %c0_i32 = arith.constant 0 : i32
    %c0_i32_0 = arith.constant 0 : i32
    %c0_i32_1 = arith.constant 0 : i32
    return %c0_i32, %c0_i32_0 : i32, i32
  }
  func.func @transform_6(%arg0: i32) -> (i32, i32) {
    %c0_i32 = arith.constant 0 : i32
    %c0_i32_0 = arith.constant 0 : i32
    %c0_i32_1 = arith.constant 0 : i32
    return %c0_i32, %c0_i32_0 : i32, i32
  }
  func.func @transform_7(%arg0: i32) -> (i32, i32) {
    %c0_i32 = arith.constant 0 : i32
    %c0_i32_0 = arith.constant 0 : i32
    %c0_i32_1 = arith.constant 0 : i32
    return %c0_i32, %c0_i32_0 : i32, i32
  }
  func.func @transform_8(%arg0: i32) -> (i32, i32) {
    %c0_i32 = arith.constant 0 : i32
    %c0_i32_0 = arith.constant 0 : i32
    %c0_i32_1 = arith.constant 0 : i32
    return %c0_i32, %c0_i32_0 : i32, i32
  }
  func.func @transform_9(%arg0: i32) -> (i32, i32) {
    %c0_i32 = arith.constant 0 : i32
    %c0_i32_0 = arith.constant 0 : i32
    %c0_i32_1 = arith.constant 0 : i32
    return %c0_i32, %c0_i32_0 : i32, i32
  }
  func.func @transform_10(%arg0: i32) -> (i32, i32) {
    %c0_i32 = arith.constant 0 : i32
    %c0_i32_0 = arith.constant 0 : i32
    return %arg0, %c0_i32 : i32, i32
  }
}

</mosaic_0001>

<bundles_post_ra>
// kernel: tpu_custom_call.1
= control target key start
LH: loop header
LB: loop body
LE: loop exit
PB: predicated region body
PF: predicated region fallthrough
CT: control target
= control target key end

     0   :  { %s5297_s0 = inlined_call_operand.hbm [shape: f32[8,16,16], index: 0, kind: input, shape index: {}]   ;;  %s5298_s1 = inlined_call_operand.hbm [shape: f32[16,256], index: 1, kind: input, shape index: {}]   ;;  %s5299_s2 = inlined_call_operand.vmem [shape: f32[1,256], index: 2, kind: input, shape index: {}]   ;;  %s5300_s3 = inlined_call_operand.hbm [shape: f32[32,128], index: 3, kind: input, shape index: {}]   ;;  %s5301_s4 = inlined_call_operand.hbm [shape: f32[32,128], index: 4, kind: input, shape index: {}]   ;;  %s5302_s5 = inlined_call_operand.hbm [shape: f32[64,128], index: 5, kind: input, shape index: {}]   ;;  %s5303_s6 = inlined_call_operand.hbm [shape: f32[32,128], index: 6, kind: input, shape index: {}]   ;;  %s5304_s7 = inlined_call_operand.vmem [shape: f32[1,128], index: 7, kind: input, shape index: {}]   ;;  %s5305_s8 = inlined_call_operand.vmem [shape: f32[1,32], index: 8, kind: input, shape index: {}]   ;;  %s5306_s9 = inlined_call_operand.<no memory space> [shape: f32[1,1], index: 9, kind: input, shape index: {}]   ;;  %s5307_s10 = inlined_call_operand.vmem [shape: f32[16,1], index: 10, kind: output, shape index: {}]  }
   0x1   :  { %v15_v0 = vstv %s5306_s9 }
   0x2   :  { %16 = vst [vmem:[#allocation5] sm:$0x1] %v15_v0 }
   0x3   :  { %17 = vsyncpa [#allocation7], 0 }
   0x4   :  { %19 = vsyncpa [#allocation7 + $0x1], 0 }
   0x5   :  { %20 = vsyncpa [#allocation9], 0 }
   0x6   :  { %21 = vsyncpa [#allocation12], 0 }
   0x7   :  { %22 = vsyncpa [#allocation15], 0  ;;  %s4516_s15 = smov 0   ;;  %s4518_s16 = smov 0  }
   0x8   :  { %s4520_s17 = smov 0   ;;  %s4522_s18 = smov 0  }
   0x9 LB: > { %s4535_s9 = sadd.s32 4294967295, %s4441_s18   ;;  %p48_p0 = scmp.ne.s32.totalorder %s4433_s16, %s4429_s15  ;;  %s4441_s18 = sphi %s4522_s18, %s5331_s18   ;;  %s4437_s17 = sphi %s4520_s17, %s5330_s17   ;;  %s4433_s16 = sphi %s4518_s16, %s5329_s16   ;;  %s4429_s15 = sphi %s4516_s15, %s5328_s15  }
   0xa   : > { %p5310_p1 = scmp.eq.s32.totalorder %s4535_s9, 0  ;;  %p3431_p2 = scmp.ge.s32.totalorder %s4441_s18, 1 }
   0xb   : > { %p274_p3 = scmp.lt.s32.totalorder %s4441_s18, 3  ;;  %s4443_s21 = smov [#allocation8]  }
   0xc   : > { %p4543_p4 = por %p5310_p1, %p48_p0  ;;  %s286_s22 = sshll.u32 %s4443_s21, 4  ;;  %s287_s22 = int_to_ptr.vmem [resolvable:$true] %s286_s22 }
   0xd   : > { %p4547_p5 = pnand %p3431_p2, %p274_p3  ;;  %s4444_s24 = smov [#allocation11]  }
   0xe   : > { %s5313_s19 = scalar_select %p4543_p4, 1, 0 }
   0xf   : > { %s5314_s20 = scalar_select %p4547_p5, 1, 0 }
  0x10   : > { %p3964_p6 = pneg %p4547_p5  ;;  %s315_s25 = sshll.u32 %s4444_s24, 4  ;;  %s316_s25 = int_to_ptr.vmem [resolvable:$true] %s315_s25 }
  0x11   : > { %s4248_s27 = scalar_lea.vmem %s287_s22, 512  ;;  %p4256_p12 = scmp.lt.s32.totalorder %s287_s22, %s287_s22 }
  0x12   : > { %p4555_p7 = pnand %p3964_p6, %p5310_p1  ;;  %p4249_p9 = scmp.ne.s32.totalorder %s287_s22, %s4248_s27 }
  0x13   : > { %p4257_p13 = scmp.lt.s32.totalorder %s4248_s27, %s4248_s27 }
  0x14   : > { %p4561_p8 = pneg %p4555_p7 }
  0x15   : > { %p4258_p0 = por %p4257_p13, %p4256_p12 }
  0x16   : > { %p4251_p10 = pnand %p4249_p9, %p4561_p8 }
  0x18   : > { %p4252_p11 = pneg %p4251_p10 }
  0x1a   : > { %p4259_p2 = pnand %p4258_p0, %p4252_p11 }
  0x1c   : > { %4262 = shalt.err (!%p4259_p2)
}
  0x1d   : > { %s5308_s28 = smov 256   ;;  %s4446_s29 = smov 16  }
  0x1e   : > { %3967 = dma.hbm_to_vmem [thread:$0]  (!%p4555_p7), %s5298_s1, 512, %s287_s22, [#allocation9], %s5308_s28, %s5308_s28, %s4446_s29  }
  0x1f   : > { %s4447_s12 = smov [#allocation10]   ;;  %s4274_s14 = scalar_lea.vmem %s316_s25, 512 }
  0x20   : > { %s302_s13 = sshll.u32 %s4447_s12, 4  ;;  %p4275_p3 = scmp.ne.s32.totalorder %s316_s25, %s4274_s14  ;;  %s303_s13 = int_to_ptr.vmem [resolvable:$true] %s302_s13 }
  0x21   : > { %p4282_p10 = scmp.lt.s32.totalorder %s316_s25, %s316_s25  ;;  %p4283_p11 = scmp.lt.s32.totalorder %s4274_s14, %s4274_s14 }
  0x22   : > { %p4277_p6 = pnand %p4275_p3, %p4561_p8 }
  0x23   : > { %p4284_p12 = por %p4283_p11, %p4282_p10 }
  0x24   : > { %p4278_p9 = pneg %p4277_p6 }
  0x26   : > { %p4285_p13 = pnand %p4284_p12, %p4278_p9 }
  0x28   : > { %4288 = shalt.err (!%p4285_p13)
}
  0x29   : > { %s5309_s15 = smov 128   ;;  %s4449_s21 = smov 8  }
  0x2a   : > { %3973 = dma.hbm_to_vmem [thread:$0]  (!%p4555_p7), %s5301_s4, 512, %s316_s25, [#allocation12], %s5309_s15, %s5309_s15, %s4449_s21  }
  0x2b   : > { %s4300_s27 = scalar_lea.vmem %s303_s13, 512  ;;  %p4308_p6 = scmp.lt.s32.totalorder %s303_s13, %s303_s13 }
  0x2c   : > { %p4301_p0 = scmp.ne.s32.totalorder %s303_s13, %s4300_s27  ;;  %p4309_p9 = scmp.lt.s32.totalorder %s4300_s27, %s4300_s27 }
  0x2e   : > { %p4303_p2 = pnand %p4301_p0, %p4561_p8  ;;  %p4310_p10 = por %p4309_p9, %p4308_p6 }
  0x30   : > { %p4304_p3 = pneg %p4303_p2 }
  0x32   : > { %p4311_p11 = pnand %p4310_p10, %p4304_p3 }
  0x34   : > { %4314 = shalt.err (!%p4311_p11)
}
  0x35   : > { %3970 = dma.hbm_to_vmem [thread:$0]  (!%p4555_p7), %s5300_s3, 512, %s303_s13, [#allocation9], %s5309_s15, %s5309_s15, %s4449_s21  }
  0x36   : > { %s4450_s25 = smov [#allocation13]   ;;  %s4451_s12 = smov [#allocation14]  }
  0x37   : > { %s328_s11 = sshll.u32 %s4450_s25, 4  ;;  %s341_s14 = sshll.u32 %s4451_s12, 4  ;;  %s329_s11 = int_to_ptr.vmem [resolvable:$true] %s328_s11  ;;  %s342_s14 = int_to_ptr.vmem [resolvable:$true] %s341_s14 }
  0x38   : > { %s4326_s22 = scalar_lea.vmem %s329_s11, 1024  ;;  %p4334_p2 = scmp.lt.s32.totalorder %s329_s11, %s329_s11 }
  0x39   : > { %p4327_p12 = scmp.ne.s32.totalorder %s329_s11, %s4326_s22  ;;  %p4335_p3 = scmp.lt.s32.totalorder %s4326_s22, %s4326_s22 }
  0x3b   : > { %p4329_p13 = pnand %p4327_p12, %p4561_p8  ;;  %p4336_p6 = por %p4335_p3, %p4334_p2 }
  0x3d   : > { %p4330_p0 = pneg %p4329_p13 }
  0x3f   : > { %p4337_p9 = pnand %p4336_p6, %p4330_p0 }
  0x41   : > { %4340 = shalt.err (!%p4337_p9)
}
  0x42   : > { %3976 = dma.hbm_to_vmem [thread:$0]  (!%p4555_p7), %s5302_s5, 1024, %s329_s11, [#allocation12], %s5309_s15, %s5309_s15, %s4449_s21  }
  0x43   : > { %s4352_s27 = scalar_lea.vmem %s342_s14, 512  ;;  %p4360_p13 = scmp.lt.s32.totalorder %s342_s14, %s342_s14 }
  0x44   : > { %p4353_p10 = scmp.ne.s32.totalorder %s342_s14, %s4352_s27  ;;  %p4361_p2 = scmp.lt.s32.totalorder %s4352_s27, %s4352_s27 }
  0x46   : > { %p4355_p11 = pnand %p4353_p10, %p4561_p8  ;;  %p4362_p0 = por %p4361_p2, %p4360_p13 }
  0x48   : > { %p4356_p12 = pneg %p4355_p11 }
  0x4a   : > { %p4363_p3 = pnand %p4362_p0, %p4356_p12 }
  0x4c   : > { %4366 = shalt.err (!%p4363_p3)
}
  0x4d   : > { %3979 = dma.hbm_to_vmem [thread:$0]  (!%p4555_p7), %s5303_s6, 512, %s342_s14, [#allocation15], %s5309_s15, %s5309_s15, %s4449_s21  }
  0x4e   : > { %s4615_s26 = sadd.s32 1, %s4441_s18   ;;  %s35_s25 = sadd.s32 1, %s4437_s17 }
  0x4f   : > { %s32_s23 = ssub.s32 %s4441_s18, %s4615_s26  ;;  %p42_p6 = scmp.ne.s32.totalorder %s4437_s17, %s4433_s16 }
  0x50   : > { %p33_p8 = scmp.eq.s32.totalorder %s32_s23, 0  ;;  %p43_p9 = scmp.eq.s32.totalorder %s4441_s18, 0 }
  0x51   : > { %p3989_p10 = scmp.lt.s32.totalorder %s4441_s18, 2  ;;  %s364_s12 = sand.u32 1, %s4437_s17  }
  0x52   : > { %s4625_s11 = scalar_select %p33_p8, %s4437_s17, %s35_s25  }
  0x53   : > { %p44_p11 = por %p43_p9, %p42_p6  ;;  %s3438_s22 = sshll.u32 %s364_s12, 6 }
  0x54   : > { %s3439_s13 = sshll.u32 %s4441_s18, 7  ;;  %s368_s14 = scalar_lea.vmem [#allocation6], %s3438_s22 }
  0x55   : > { %s4632_s29 = scalar_lea.hbm %s5297_s0, %s3439_s13  ;;  %s374_s30 = sshll.u32 %s368_s14, 4  ;;  %s4634_s30 = int_to_ptr.vmem [resolvable:$true] %s374_s30 }
  0x56   : > { %p4636_p7 = pnand %p3989_p10, %p44_p11  ;;  %s4640_s25 = scalar_lea.sflag [#allocation7], %s364_s12 }
  0x57   : > { %s4367_s18 = scalar_lea.hbm %s4632_s29, 1024  ;;  %s4372_s22 = scalar_lea.hbm %s5297_s0, 2048 }
  0x58   : > { %p4368_p12 = scmp.ne.s32.totalorder %s4632_s29, %s4367_s18  ;;  %p4369_p13 = pneg %p4636_p7 }
  0x59   : > { %p4373_p3 = scmp.lt.s32.totalorder %s4632_s29, %s5297_s0  ;;  %p4374_p8 = scmp.lt.s32.totalorder %s4372_s22, %s4367_s18 }
  0x5a   : > { %p4370_p2 = pnand %p4369_p13, %p4368_p12 }
  0x5b   : > { %p4375_p6 = por %p4374_p8, %p4373_p3 }
  0x5c   : > { %p4371_p0 = pneg %p4370_p2 }
  0x5e   : > { %p4376_p9 = pnand %p4375_p6, %p4371_p0 }
  0x60   : > { %4379 = shalt.err (!%p4376_p9)
}
  0x61   : > { %s4380_s12 = scalar_lea.vmem %s4634_s30, 1024  ;;  %s4452_s28 = smov [#allocation6]  }
  0x62   : > { %p4381_p10 = scmp.ne.s32.totalorder %s4634_s30, %s4380_s12  ;;  %s4385_s15 = sshll.u32 %s4452_s28, 4  ;;  %s4386_s15 = int_to_ptr.vmem [resolvable:$false] %s4385_s15 }
  0x63   : > { %s4387_s13 = scalar_lea.vmem %s4386_s15, 2048  ;;  %p4388_p2 = scmp.lt.s32.totalorder %s4634_s30, %s4386_s15 }
  0x64   : > { %p4383_p11 = pnand %p4381_p10, %p4369_p13  ;;  %p4389_p1 = scmp.lt.s32.totalorder %s4387_s13, %s4380_s12 }
  0x66   : > { %p4384_p12 = pneg %p4383_p11  ;;  %p4390_p4 = por %p4389_p1, %p4388_p2 }
  0x68   : > { %p4391_p5 = pnand %p4390_p4, %p4384_p12 }
  0x6a   : > { %4394 = shalt.err (!%p4391_p5)
}
  0x6b   : > { %s5318_s18 = smov 128   ;;  %s5319_s24 = smov 256  }
  0x6c   : > { %3983 = dma.hbm_to_vmem [thread:$0]  (!%p4636_p7), %s4632_s29, 1024, %s4634_s30, %s4640_s25, %s5319_s24, %s5318_s18, %s4449_s21  }
  0x6d   : > { %p5320_p13 = scmp.ne.s32.totalorder %s5314_s20, 0 }
  0x6e   : > { %s388_s28 = sand.u32 (!%p5320_p13), 1, %s4433_s16   ;;  %p5321_p1 = scmp.ne.s32.totalorder (!%p5320_p13), %s5313_s19, 0 }
  0x6f   : > { %386 = sbr.rel (%p5320_p13) target bundleno = 11360 (0x2c60), region = 60  ;;  %s3441_s15 = sshll.u32 (!%p5320_p13), %s388_s28, 6 }
  0x70   : > { %s389_s22 = scalar_lea.sflag (!%p5320_p13), [#allocation7], %s388_s28  ;;  %s4667_s27 = scalar_lea.vmem (!%p5320_p13), [#allocation6], %s3441_s15 }
  0x74   : > { %4412 = dma.done.wait (%p5321_p1), %s389_s22, 1024  }
  0x75   : > { %4414 = vsyncadd (%p5321_p1), %s389_s22, 4294966272  ;;  %p5322_p4 = scmp.eq.s32.totalorder %s4535_s9, 0 }
  0x77   : > { %4416 = dma.done.wait (%p5322_p4), [#allocation9], 1024   ;;  %p5323_p5 = pmov %p5322_p4 }
  0x78   : > { %p5324_p7 = pmov %p5322_p4 }
  0x79   : > { %4418 = vsyncadd (%p5323_p5), [#allocation9], 4294966272 }
  0x7a   : > { %4420 = dma.done.wait (%p5324_p7), [#allocation12], 1536   ;;  %p5325_p0 = pmov %p5322_p4 }
  0x7c   : > { %4422 = vsyncadd (%p5325_p0), [#allocation12], 4294965760  ;;  %p5326_p3 = pmov %p5325_p0 }
  0x7d   : > { %p5327_p8 = pmov %p5325_p0 }
  0x7e   : > { %4424 = dma.done.wait (%p5326_p3), [#allocation15], 512  }
  0x7f   : > { %4426 = vsyncadd (%p5327_p8), [#allocation15], 4294966784  ;;  %v4453_v1 = vmov 0.0   ;;  %vm4454_vm0 = vmmov 0   ;;  %v463_v2 = vld [vmem:[#allocation8 + $0x18] sm:$0xff]  ;;  %v462_v4 = vld [vmem:[#allocation8 + $0x10] sm:$0xff]  ;;  %v466_v22 = vlaneseq }
  0x80   : > { %3650 = vmatprep.subr.mxu1 %v4453_v1  ;;  %565 = vmatprep.mubr.f32.mxu0 %v4453_v1  ;;  %v4689_v3 = vld [vmem:[#allocation10 + $0x18] sm:$0xff]  ;;  %v461_v5 = vld [vmem:[#allocation8 + $0x8] sm:$0xff]  ;;  %v4692_v6 = vld [vmem:[#allocation10 + $0x10] sm:$0xff]  ;;  %vm476_vm1 = vcmask 130048   ;;  %s4455_s21 = smov 64   ;;  %s4456_s29 = smov 32  }
  0x81   : > { %3658 = vmatprep.mubr.msk.f32.mxu1 %vm4454_vm0, %v4453_v1  ;;  %529 = vmatprep.subr.mxu0 %v463_v2  ;;  %v460_v7 = vld [vmem:[#allocation8] sm:$0xff]  ;;  %v4696_v9 = vld [vmem:[#allocation10 + $0x8] sm:$0xff]  ;;  %v4707_v12 = vld [vmem:[#allocation11 + $0x18] sm:$0xff]  ;;  %v467_v23 = vshrl.u32 %v466_v22, 7  ;;  %vm641_vm2 = vcmask 261120   ;;  %vm845_vm3 = vcmask 523520  }
  0x82   : > { %3651 = vmatpush3.msra.mxu1 %v4689_v3  ;;  %530 = vmatpush1.msra.mxu0 %v462_v4  ;;  %v452_v8 = vld [vmem:[%s4667_s27] sm:$0xff]  ;;  %v453_v11 = vld [vmem:[%s4667_s27 + $0x8] sm:$0xff]  ;;  %v4713_v13 = vld [vmem:[#allocation11 + $0x10] sm:$0xff]  ;;  %vm2338_vm4 = vcmask 523264   ;;  %s4457_s12 = smov 96   ;;  %p448_p6 = scmp.lt.s32.totalorder %s4535_s9, 1 }
  0x83   : > { %3652 = vmatprep.subr.mxu1 %v4453_v1  ;;  %531 = vmatprep.subr.mxu0 %v461_v5  ;;  %v4700_v10 = vld [vmem:[#allocation10] sm:$0xff]  ;;  %v454_v14 = vld [vmem:[%s4667_s27 + $0x10] sm:$0xff]  ;;  %v4720_v15 = vld [vmem:[#allocation11 + $0x8] sm:$0xff]  ;;  %v468_v24 = vsub.s32 0, %v467_v23  ;;  %v472_v26 = vsub.s32 1, %v467_v23  ;;  %vm3315_vm5 = vcmask 7168  }
  0x84   : > { %3653 = vmatpush3.msra.mxu1 %v4692_v6  ;;  %532 = vmatpush1.msra.mxu0 %v460_v7  ;;  %v4726_v16 = vld [vmem:[#allocation11] sm:$0xff]  ;;  %v455_v17 = vld [vmem:[%s4667_s27 + $0x18] sm:$0xff]  ;;  %v457_v19 = vld [vmem:[%s4667_s27 + $0x28] sm:$0xff]  ;;  %s5333_s9 = smov (!%p448_p6, %s4535_s9), 1 }
  0x85   : > { %3654 = vmatprep.subr.mxu1 %v4453_v1  ;;  %3448 = vmatmul.mubr.msk.f32.vlgmr.msra.gmra.mxu0 %vm476_vm1, %v452_v8  ;;  %v456_v18 = vld [vmem:[%s4667_s27 + $0x20] sm:$0xff]  ;;  %v458_v20 = vld [vmem:[%s4667_s27 + $0x30] sm:$0xff]  ;;  %v459_v21 = vld [vmem:[%s4667_s27 + $0x38] sm:$0xff]  ;;  %s3447_s13 = sshll.u32 %s5333_s9, 3 }
  0x86   : > { %3655 = vmatpush3.msra.mxu1 %v4696_v9  ;;  %571 = vmatprep.mubr.f32.mxu0 %v4453_v1  ;;  %v464_v25 = vld [vmem:[%s5299_s2] sm:$0x3]  ;;  %s451_s28 = scalar_lea.vmem %s5307_s10, %s3447_s13 }
  0x87   : > { %3656 = vmatprep.subr.mxu1 %v4453_v1  ;;  %3694 = vmatprep.subr.mxu0 %v4453_v1  ;;  %v469_v27 = vrot.slane %v464_v25, %v468_v24  ;;  %v473_v28 = vrot.slane %v464_v25, %v472_v26 }
  0x88   : > { %3657 = vmatpush3.msra.mxu1 %v4700_v10  ;;  %3695 = vmatpush3.msra.mxu0 %v4689_v3 }
  0x89   : > { %3659 = vmatmul.mubr.f32.vlgmr.msra.gmra.mxu1 %v4453_v1  ;;  %3661 = vmatprep.subr.mxu1 %v4453_v1 }
  0x8a   : > { %3449 = vmatmul.mubr.msk.f32.gmra.mxu0 %vm476_vm1, %v453_v11  ;;  %3662 = vmatpush3.msra.mxu1 %v4707_v12 }
  0x8b   : > { %577 = vmatprep.mubr.f32.mxu0 %v4453_v1  ;;  %3663 = vmatprep.subr.mxu1 %v4453_v1 }
  0x8c   : > { %3664 = vmatpush3.msra.mxu1 %v4713_v13  ;;  %3669 = vmatprep.mubr.msk.f32.mxu1 %vm4454_vm0, %v4453_v1 }
  0x8d   : > { %3665 = vmatprep.subr.mxu1 %v4453_v1  ;;  %3696 = vmatprep.subr.mxu0 %v4453_v1 }
  0x8e   : > { %3450 = vmatmul.mubr.msk.f32.gmra.mxu0 %vm476_vm1, %v454_v14  ;;  %3666 = vmatpush3.msra.mxu1 %v4720_v15 }
  0x8f   : > { %583 = vmatprep.mubr.f32.mxu0 %v4453_v1  ;;  %3667 = vmatprep.subr.mxu1 %v4453_v1 }
  0x90   : > { %3668 = vmatpush3.msra.mxu1 %v4726_v16  ;;  %3697 = vmatpush3.msra.mxu0 %v4692_v6 }
  0x91   : > { %3670 = vmatmul.mubr.f32.vlgmr.msra.gmra.mxu1 %v4453_v1  ;;  %3672 = vmatprep.subr.mxu1 %v4453_v1 }
  0x92   : > { %3451 = vmatmul.mubr.msk.f32.gmra.mxu0 %vm476_vm1, %v455_v17  ;;  %3673 = vmatpush3.msra.mxu1 %v4689_v3 }
  0x93   : > { %589 = vmatprep.mubr.f32.mxu0 %v4453_v1  ;;  %3674 = vmatprep.subr.mxu1 %v4453_v1 }
  0x94   : > { %3675 = vmatpush3.msra.mxu1 %v4692_v6  ;;  %3680 = vmatprep.mubr.msk.f32.mxu1 %vm4454_vm0, %v4453_v1 }
  0x95   : > { %3676 = vmatprep.subr.mxu1 %v4453_v1  ;;  %3698 = vmatprep.subr.mxu0 %v4453_v1 }
  0x96   : > { %3452 = vmatmul.mubr.msk.f32.gmra.mxu0 %vm476_vm1, %v456_v18  ;;  %3677 = vmatpush3.msra.mxu1 %v4696_v9 }
  0x97   : > { %595 = vmatprep.mubr.f32.mxu0 %v4453_v1  ;;  %3678 = vmatprep.subr.mxu1 %v4453_v1 }
  0x98   : > { %3679 = vmatpush3.msra.mxu1 %v4700_v10  ;;  %3699 = vmatpush3.msra.mxu0 %v4696_v9 }
  0x99   : > { %3683 = vmatprep.subr.mxu1 %v4453_v1  ;;  %3700 = vmatprep.subr.mxu0 %v4453_v1 }
  0x9a   : > { %3453 = vmatmul.mubr.msk.f32.gmra.mxu0 %vm476_vm1, %v457_v19 }
  0x9b   : > { %601 = vmatprep.mubr.f32.mxu0 %v4453_v1  ;;  %3701 = vmatpush3.msra.mxu0 %v4700_v10 }
  0x9c   : > { %3716 = vmatprep.subr.mxu0 %v4453_v1 }
  0x9e   : > { %3454 = vmatmul.mubr.msk.f32.gmra.mxu0 %vm476_vm1, %v458_v20 }
  0x9f   : > { %607 = vmatprep.mubr.f32.mxu0 %v4453_v1 }
  0xa2   : > { %3455 = vmatmul.mubr.msk.f32.gmra.mxu0 %vm476_vm1, %v459_v21 }
  0xa3   : > { %3702 = vmatprep.mubr.msk.f32.mxu0 %vm4454_vm0, %v4453_v1 }
 0x145   : > { %v567_v29 = vpop.f32.mrf.mxu0 }
 0x146   : > { %v568_v30 = vadd.f32 %v567_v29, %v469_v27 }
 0x147   : > { %v569_v31 = vpop.f32.mrf.mxu0 }
 0x148   : > { %v4772_v32 = vadd.f32 %v569_v31, %v473_v28 }
 0x149   : > { %v711_v33 = vpop.f32.mrf.mxu1 }
 0x14a   : > { %v715_v34 = vadd.f32 %v711_v33, %v568_v30  ;;  %v573_v35 = vpop.f32.mrf.mxu0 }
 0x14b   : > { %v4774_v36 = vadd.f32 %v573_v35, %v469_v27  ;;  %v3660_v37 = vpop.f32.mrf.mxu1 }
 0x14c   : > { %4041 = vtanh.f32 %v715_v34  ;;  %v575_v38 = vpop.f32.mrf.mxu0  ;;  %v3456_v8 = vmul.f32 -1.442695, %v715_v34 }
 0x14d   : > { %v4776_v39 = vadd.f32 %v575_v38, %v473_v28 }
 0x14e   : > { %v579_v40 = vpop.f32.mrf.mxu0 }
 0x14f   : > { %v4778_v41 = vadd.f32 %v579_v40, %v469_v27 }
 0x150   : > { %v581_v42 = vpop.f32.mrf.mxu0 }
 0x151   : > { %v4780_v43 = vadd.f32 %v581_v42, %v473_v28  ;;  %v782_v44 = vpop.f32.mrf.mxu1 }
 0x152   : > { %v585_v45 = vpop.f32.mrf.mxu0 }
 0x153   : > { %v4782_v46 = vadd.f32 %v585_v45, %v469_v27  ;;  %v3671_v47 = vpop.f32.mrf.mxu1 }
 0x154   : > { %v587_v48 = vpop.f32.mrf.mxu0 }
 0x155   : > { %v4784_v49 = vadd.f32 %v587_v48, %v473_v28 }
 0x156   : > { %v591_v50 = vpop.f32.mrf.mxu0 }
 0x157   : > { %v4786_v51 = vadd.f32 %v591_v50, %v469_v27 }
 0x158   : > { %v593_v52 = vpop.f32.mrf.mxu0 }
 0x159   : > { %v4042_v53 = vpop.eup %4041  ;;  %v4788_v54 = vadd.f32 %v593_v52, %v473_v28 }
 0x15a   : > { %v597_v55 = vpop.f32.mrf.mxu0  ;;  %796 = vrot.lane.b32.xlu0 %v4042_v53, %s4455_s21 }
 0x15b   : > { %v4791_v56 = vadd.f32 %v597_v55, %v469_v27 }
 0x15c   : > { %v599_v57 = vpop.f32.mrf.mxu0 }
 0x15d   : > { %v4793_v58 = vadd.f32 %v599_v57, %v473_v28 }
 0x15e   : > { %v603_v59 = vpop.f32.mrf.mxu0 }
 0x15f   : > { %v4795_v60 = vadd.f32 %v603_v59, %v469_v27 }
 0x160   : > { %v605_v61 = vpop.f32.mrf.mxu0 }
 0x161   : > { %v4797_v62 = vadd.f32 %v605_v61, %v473_v28 }
 0x162   : > { %v609_v63 = vpop.f32.mrf.mxu0 }
 0x163   : > { %v4799_v0 = vadd.f32 %v609_v63, %v469_v27 }
 0x164   : > { %v611_v2 = vpop.f32.mrf.mxu0 }
 0x165   : > { %v612_v4 = vadd.f32 %v611_v2, %v473_v28 }
 0x167   : > { %v786_v5 = vadd.f32 %v782_v44, %v612_v4 }
 0x169   : > { %4043 = vtanh.f32 %v786_v5  ;;  %v3457_v17 = vmul.f32 -1.442695, %v786_v5 }
 0x16a   : > { %4045 = vpow2.f32 %v3456_v8 }
 0x176   : > { %v4044_v7 = vpop.eup %4043 }
 0x177   : > { %820 = vrot.lane.b32.xlu0 %v4044_v7, %s4455_s21  ;;  %v4046_v11 = vpop.eup %4045 }
 0x178   : > { %v790_v14 = vadd.f32 1.0, %v4046_v11 }
 0x17a   : > { %4047 = vrcp.f32 %v790_v14 }
 0x17b   : > { %4049 = vpow2.f32 %v3457_v17 }
 0x187   : > { %v4048_v18 = vpop.eup %4047 }
 0x188   : > { %v4050_v21 = vpop.eup %4049  ;;  %v794_v26 = vmul.f32 0.0, %v4048_v18 }
 0x189   : > { %v814_v22 = vadd.f32 1.0, %v4050_v21 }
 0x18b   : > { %4051 = vrcp.f32 %v814_v22 }
 0x198   : > { %v4052_v23 = vpop.eup %4051 }
 0x199   : > { %v818_v30 = vmul.f32 0.0, %v4052_v23 }
 0x1cc   : > { %v797_v19 = vpop.permute.xlu0 %796 }
 0x1cd   : > { %v799_v20 = vmul.f32 %v4048_v18, %v797_v19 }
 0x1cf   : > { %801 = vrot.lane.b32.xlu1 %v799_v20, %s4456_s29 }
 0x1e9   : > { %v821_v24 = vpop.permute.xlu0 %820 }
 0x1ea   : > { %v823_v25 = vmul.f32 %v4052_v23, %v821_v24 }
 0x1ec   : > { %825 = vrot.lane.b32.xlu1 %v823_v25, %s4456_s29 }
 0x241   : > { %v802_v27 = vpop.permute.xlu1 %801 }
 0x242   : > { %v4804_v28 = vadd.f32 %v802_v27, %v794_v26 }
 0x244   : > { %4053 = vtanh.f32 %v4804_v28 }
 0x251   : > { %v4054_v29 = vpop.eup %4053 }
 0x252   : > { %807 = vrot.lane.b32.xlu0 %v4054_v29, %s4455_s21 }
 0x25e   : > { %v826_v31 = vpop.permute.xlu1 %825 }
 0x25f   : > { %v4808_v33 = vadd.f32 %v826_v31, %v818_v30 }
 0x261   : > { %4055 = vtanh.f32 %v4808_v33 }
 0x26e   : > { %v4056_v34 = vpop.eup %4055 }
 0x26f   : > { %831 = vrot.lane.b32.xlu1 %v4056_v34, %s4455_s21 }
 0x2c4   : > { %v808_v35 = vpop.permute.xlu0 %807 }
 0x2c5   : > { %v810_v37 = vmul.f32 %v4048_v18, %v808_v35 }
 0x2c7   : > { %836 = vrot.lane.b32.xlu0 %v810_v37, %s4456_s29 }
 0x2e1   : > { %v832_v38 = vpop.permute.xlu1 %831 }
 0x2e2   : > { %v4813_v40 = vmul.f32 %v4052_v23, %v832_v38 }
 0x2e4   : > { %924 = vrot.lane.b32.xlu1 %v4813_v40, %s4456_s29 }
 0x339   : > { %v837_v42 = vpop.permute.xlu0 %836 }
 0x33a   : > { %839 = vst.msk [vmem:[#allocation3] sm:$0xff] %vm641_vm2, %v837_v42  ;;  %3681 = vmatmul.mubr.msk.f32.vlgmr.msra.gmra.mxu1 %vm641_vm2, %v837_v42 }
 0x33b   : > { %3684 = vmatpush3.msra.mxu1 %v4707_v12  ;;  %3691 = vmatprep.mubr.msk.f32.mxu1 %vm4454_vm0, %v4453_v1 }
 0x33c   : > { %3685 = vmatprep.subr.mxu1 %v4453_v1 }
 0x33d   : > { %3686 = vmatpush3.msra.mxu1 %v4713_v13 }
 0x33e   : > { %3687 = vmatprep.subr.mxu1 %v4453_v1 }
 0x33f   : > { %3688 = vmatpush3.msra.mxu1 %v4720_v15 }
 0x340   : > { %3689 = vmatprep.subr.mxu1 %v4453_v1 }
 0x341   : > { %3690 = vmatpush3.msra.mxu1 %v4726_v16 }
 0x342   : > { %3705 = vmatprep.subr.mxu1 %v4453_v1 }
 0x356   : > { %v925_v44 = vpop.permute.xlu1 %924 }
 0x357   : > { %3692 = vmatmul.mubr.msk.f32.vlgmr.msra.gmra.mxu1 %vm641_vm2, %v925_v44 }
 0x358   : > { %3706 = vmatpush3.msra.mxu1 %v4707_v12  ;;  %3713 = vmatprep.mubr.msk.f32.mxu1 %vm4454_vm0, %v4453_v1 }
 0x359   : > { %3707 = vmatprep.subr.mxu1 %v4453_v1 }
 0x35a   : > { %3708 = vmatpush3.msra.mxu1 %v4713_v13 }
 0x35b   : > { %3709 = vmatprep.subr.mxu1 %v4453_v1 }
 0x35c   : > { %3710 = vmatpush3.msra.mxu1 %v4720_v15 }
 0x35d   : > { %3711 = vmatprep.subr.mxu1 %v4453_v1 }
 0x35e   : > { %3712 = vmatpush3.msra.mxu1 %v4726_v16 }
 0x35f   : > { %3727 = vmatprep.subr.mxu1 %v4453_v1 }
 0x3fa   : > { %v919_v45 = vpop.f32.mrf.mxu1 }
 0x3fb   : > { %v923_v47 = vadd.f32 %v919_v45, %v4774_v36 }
 0x3fc   : > { %v3682_v48 = vpop.f32.mrf.mxu1 }
 0x3fd   : > { %4057 = vtanh.f32 %v923_v47  ;;  %v3460_v59 = vmul.f32 -1.442695, %v923_v47 }
 0x40a   : > { %v4058_v50 = vpop.eup %4057 }
 0x40b   : > { %1008 = vrot.lane.b32.xlu1 %v4058_v50, %s4455_s21 }
 0x417   : > { %v994_v52 = vpop.f32.mrf.mxu1 }
 0x418   : > { %v998_v53 = vadd.f32 %v994_v52, %v4797_v62 }
 0x419   : > { %v3693_v55 = vpop.f32.mrf.mxu1 }
 0x41a   : > { %4059 = vtanh.f32 %v998_v53  ;;  %v3461_v2 = vmul.f32 -1.442695, %v998_v53 }
 0x41b   : > { %4061 = vpow2.f32 %v3460_v59 }
 0x427   : > { %v4060_v57 = vpop.eup %4059 }
 0x428   : > { %1032 = vrot.lane.b32.xlu0 %v4060_v57, %s4455_s21  ;;  %v4062_v61 = vpop.eup %4061 }
 0x429   : > { %v1002_v63 = vadd.f32 1.0, %v4062_v61 }
 0x42b   : > { %4063 = vrcp.f32 %v1002_v63 }
 0x42c   : > { %4065 = vpow2.f32 %v3461_v2 }
 0x438   : > { %v4064_v36 = vpop.eup %4063 }
 0x439   : > { %v4066_v7 = vpop.eup %4065  ;;  %v1006_v17 = vmul.f32 %v4064_v36, %v4804_v28 }
 0x43a   : > { %v1026_v8 = vadd.f32 1.0, %v4066_v7 }
 0x43c   : > { %4067 = vrcp.f32 %v1026_v8 }
 0x449   : > { %v4068_v62 = vpop.eup %4067 }
 0x44a   : > { %v1030_v21 = vmul.f32 %v4068_v62, %v4808_v33 }
 0x47d   : > { %v1009_v4 = vpop.permute.xlu1 %1008 }
 0x47e   : > { %v1011_v5 = vmul.f32 %v4064_v36, %v1009_v4 }
 0x480   : > { %1013 = vrot.lane.b32.xlu1 %v1011_v5, %s4456_s29 }
 0x49a   : > { %v1033_v11 = vpop.permute.xlu0 %1032 }
 0x49b   : > { %v1035_v14 = vmul.f32 %v4068_v62, %v1033_v11 }
 0x49d   : > { %1037 = vrot.lane.b32.xlu0 %v1035_v14, %s4456_s29 }
 0x4f2   : > { %v1014_v18 = vpop.permute.xlu1 %1013 }
 0x4f3   : > { %v4847_v19 = vadd.f32 %v1014_v18, %v1006_v17 }
 0x4f5   : > { %4069 = vtanh.f32 %v4847_v19 }
 0x502   : > { %v4070_v20 = vpop.eup %4069 }
 0x503   : > { %1019 = vrot.lane.b32.xlu1 %v4070_v20, %s4455_s21 }
 0x50f   : > { %v1038_v22 = vpop.permute.xlu0 %1037 }
 0x510   : > { %v4852_v23 = vadd.f32 %v1038_v22, %v1030_v21 }
 0x512   : > { %4071 = vtanh.f32 %v4852_v23 }
 0x51f   : > { %v4072_v24 = vpop.eup %4071 }
 0x520   : > { %1043 = vrot.lane.b32.xlu0 %v4072_v24, %s4455_s21 }
 0x575   : > { %v1020_v25 = vpop.permute.xlu1 %1019 }
 0x576   : > { %v1022_v26 = vmul.f32 %v4064_v36, %v1020_v25 }
 0x578   : > { %1048 = vrot.lane.b32.xlu1 %v1022_v26, %s4456_s29 }
 0x592   : > { %v1044_v27 = vpop.permute.xlu0 %1043 }
 0x593   : > { %v4857_v28 = vmul.f32 %v4068_v62, %v1044_v27 }
 0x595   : > { %1136 = vrot.lane.b32.xlu0 %v4857_v28, %s4456_s29 }
 0x5ea   : > { %v1049_v29 = vpop.permute.xlu1 %1048 }
 0x5eb   : > { %1052 = vst.msk [vmem:[#allocation3 + $0x8] sm:$0xff] %vm641_vm2, %v1049_v29  ;;  %3703 = vmatmul.mubr.msk.f32.vlgmr.msra.gmra.mxu0 %vm641_vm2, %v1049_v29 }
 0x5ec   : > { %3717 = vmatpush3.msra.mxu0 %v4689_v3  ;;  %3724 = vmatprep.mubr.msk.f32.mxu0 %vm4454_vm0, %v4453_v1 }
 0x5ed   : > { %3718 = vmatprep.subr.mxu0 %v4453_v1 }
 0x5ee   : > { %3719 = vmatpush3.msra.mxu0 %v4692_v6 }
 0x5ef   : > { %3720 = vmatprep.subr.mxu0 %v4453_v1 }
 0x5f0   : > { %3721 = vmatpush3.msra.mxu0 %v4696_v9 }
 0x5f1   : > { %3722 = vmatprep.subr.mxu0 %v4453_v1 }
 0x5f2   : > { %3723 = vmatpush3.msra.mxu0 %v4700_v10 }
 0x5f3   : > { %3738 = vmatprep.subr.mxu0 %v4453_v1 }
 0x607   : > { %v1137_v30 = vpop.permute.xlu0 %1136 }
 0x608   : > { %3714 = vmatmul.mubr.msk.f32.vlgmr.msra.gmra.mxu1 %vm641_vm2, %v1137_v30 }
 0x609   : > { %3728 = vmatpush3.msra.mxu1 %v4707_v12  ;;  %3735 = vmatprep.mubr.msk.f32.mxu1 %vm4454_vm0, %v4453_v1 }
 0x60a   : > { %3729 = vmatprep.subr.mxu1 %v4453_v1 }
 0x60b   : > { %3730 = vmatpush3.msra.mxu1 %v4713_v13 }
 0x60c   : > { %3731 = vmatprep.subr.mxu1 %v4453_v1 }
 0x60d   : > { %3732 = vmatpush3.msra.mxu1 %v4720_v15 }
 0x60e   : > { %3733 = vmatprep.subr.mxu1 %v4453_v1 }
 0x60f   : > { %3734 = vmatpush3.msra.mxu1 %v4726_v16 }
 0x610   : > { %3749 = vmatprep.subr.mxu1 %v4453_v1 }
 0x6ab   : > { %v1131_v31 = vpop.f32.mrf.mxu0 }
 0x6ac   : > { %v1135_v33 = vadd.f32 %v1131_v31, %v4778_v41 }
 0x6ad   : > { %v3704_v34 = vpop.f32.mrf.mxu0 }
 0x6ae   : > { %4073 = vtanh.f32 %v1135_v33  ;;  %v3464_v45 = vmul.f32 -1.442695, %v1135_v33 }
 0x6bb   : > { %v4074_v35 = vpop.eup %4073 }
 0x6bc   : > { %1220 = vrot.lane.b32.xlu1 %v4074_v35, %s4455_s21 }
 0x6c8   : > { %v1206_v37 = vpop.f32.mrf.mxu1 }
 0x6c9   : > { %v1210_v38 = vadd.f32 %v1206_v37, %v4793_v58 }
 0x6ca   : > { %v3715_v42 = vpop.f32.mrf.mxu1 }
 0x6cb   : > { %4075 = vtanh.f32 %v1210_v38  ;;  %v3465_v50 = vmul.f32 -1.442695, %v1210_v38 }
 0x6cc   : > { %4077 = vpow2.f32 %v3464_v45 }
 0x6d8   : > { %v4076_v44 = vpop.eup %4075 }
 0x6d9   : > { %1244 = vrot.lane.b32.xlu0 %v4076_v44, %s4455_s21  ;;  %v4078_v47 = vpop.eup %4077 }
 0x6da   : > { %v1214_v48 = vadd.f32 1.0, %v4078_v47 }
 0x6dc   : > { %4079 = vrcp.f32 %v1214_v48 }
 0x6dd   : > { %4081 = vpow2.f32 %v3465_v50 }
 0x6e9   : > { %v4080_v41 = vpop.eup %4079 }
 0x6ea   : > { %v4082_v55 = vpop.eup %4081  ;;  %v1218_v63 = vmul.f32 %v4080_v41, %v4847_v19 }
 0x6eb   : > { %v1238_v57 = vadd.f32 1.0, %v4082_v55 }
 0x6ed   : > { %4083 = vrcp.f32 %v1238_v57 }
 0x6fa   : > { %v4084_v58 = vpop.eup %4083 }
 0x6fb   : > { %v1242_v5 = vmul.f32 %v4084_v58, %v4852_v23 }
 0x72e   : > { %v1221_v52 = vpop.permute.xlu1 %1220 }
 0x72f   : > { %v1223_v53 = vmul.f32 %v4080_v41, %v1221_v52 }
 0x731   : > { %1225 = vrot.lane.b32.xlu1 %v1223_v53, %s4456_s29 }
 0x74b   : > { %v1245_v59 = vpop.permute.xlu0 %1244 }
 0x74c   : > { %v1247_v61 = vmul.f32 %v4084_v58, %v1245_v59 }
 0x74e   : > { %1249 = vrot.lane.b32.xlu0 %v1247_v61, %s4456_s29 }
 0x7a3   : > { %v1226_v2 = vpop.permute.xlu1 %1225 }
 0x7a4   : > { %v4891_v36 = vadd.f32 %v1226_v2, %v1218_v63 }
 0x7a6   : > { %4085 = vtanh.f32 %v4891_v36 }
 0x7b3   : > { %v4086_v4 = vpop.eup %4085 }
 0x7b4   : > { %1231 = vrot.lane.b32.xlu1 %v4086_v4, %s4455_s21 }
 0x7c0   : > { %v1250_v7 = vpop.permute.xlu0 %1249 }
 0x7c1   : > { %v4896_v8 = vadd.f32 %v1250_v7, %v1242_v5 }
 0x7c3   : > { %4087 = vtanh.f32 %v4896_v8 }
 0x7d0   : > { %v4088_v62 = vpop.eup %4087 }
 0x7d1   : > { %1255 = vrot.lane.b32.xlu0 %v4088_v62, %s4455_s21 }
 0x826   : > { %v1232_v11 = vpop.permute.xlu1 %1231 }
 0x827   : > { %v1234_v14 = vmul.f32 %v4080_v41, %v1232_v11 }
 0x829   : > { %1260 = vrot.lane.b32.xlu1 %v1234_v14, %s4456_s29 }
 0x843   : > { %v1256_v17 = vpop.permute.xlu0 %1255 }
 0x844   : > { %v4901_v18 = vmul.f32 %v4084_v58, %v1256_v17 }
 0x846   : > { %1348 = vrot.lane.b32.xlu0 %v4901_v18, %s4456_s29 }
 0x89b   : > { %v1261_v19 = vpop.permute.xlu1 %1260 }
 0x89c   : > { %1264 = vst.msk [vmem:[#allocation3 + $0x10] sm:$0xff] %vm641_vm2, %v1261_v19  ;;  %3725 = vmatmul.mubr.msk.f32.vlgmr.msra.gmra.mxu0 %vm641_vm2, %v1261_v19 }
 0x89d   : > { %3739 = vmatpush3.msra.mxu0 %v4689_v3  ;;  %3746 = vmatprep.mubr.msk.f32.mxu0 %vm4454_vm0, %v4453_v1 }
 0x89e   : > { %3740 = vmatprep.subr.mxu0 %v4453_v1 }
 0x89f   : > { %3741 = vmatpush3.msra.mxu0 %v4692_v6 }
 0x8a0   : > { %3742 = vmatprep.subr.mxu0 %v4453_v1 }
 0x8a1   : > { %3743 = vmatpush3.msra.mxu0 %v4696_v9 }
 0x8a2   : > { %3744 = vmatprep.subr.mxu0 %v4453_v1 }
 0x8a3   : > { %3745 = vmatpush3.msra.mxu0 %v4700_v10 }
 0x8a4   : > { %3760 = vmatprep.subr.mxu0 %v4453_v1 }
 0x8b8   : > { %v1349_v20 = vpop.permute.xlu0 %1348 }
 0x8b9   : > { %3736 = vmatmul.mubr.msk.f32.vlgmr.msra.gmra.mxu1 %vm641_vm2, %v1349_v20 }
 0x8ba   : > { %3750 = vmatpush3.msra.mxu1 %v4707_v12  ;;  %3757 = vmatprep.mubr.msk.f32.mxu1 %vm4454_vm0, %v4453_v1 }
 0x8bb   : > { %3751 = vmatprep.subr.mxu1 %v4453_v1 }
 0x8bc   : > { %3752 = vmatpush3.msra.mxu1 %v4713_v13 }
 0x8bd   : > { %3753 = vmatprep.subr.mxu1 %v4453_v1 }
 0x8be   : > { %3754 = vmatpush3.msra.mxu1 %v4720_v15 }
 0x8bf   : > { %3755 = vmatprep.subr.mxu1 %v4453_v1 }
 0x8c0   : > { %3756 = vmatpush3.msra.mxu1 %v4726_v16 }
 0x8c1   : > { %3771 = vmatprep.subr.mxu1 %v4453_v1 }
 0x95c   : > { %v1343_v21 = vpop.f32.mrf.mxu0 }
 0x95d   : > { %v1347_v22 = vadd.f32 %v1343_v21, %v4782_v46 }
 0x95e   : > { %v3726_v23 = vpop.f32.mrf.mxu0 }
 0x95f   : > { %4089 = vtanh.f32 %v1347_v22  ;;  %v3468_v30 = vmul.f32 -1.442695, %v1347_v22 }
 0x96c   : > { %v4090_v24 = vpop.eup %4089 }
 0x96d   : > { %1432 = vrot.lane.b32.xlu1 %v4090_v24, %s4455_s21 }
 0x979   : > { %v1418_v25 = vpop.f32.mrf.mxu1 }
 0x97a   : > { %v1422_v26 = vadd.f32 %v1418_v25, %v4788_v54 }
 0x97b   : > { %v3737_v27 = vpop.f32.mrf.mxu1 }
 0x97c   : > { %4091 = vtanh.f32 %v1422_v26  ;;  %v3469_v34 = vmul.f32 -1.442695, %v1422_v26 }
 0x97d   : > { %4093 = vpow2.f32 %v3468_v30 }
 0x989   : > { %v4092_v29 = vpop.eup %4091 }
 0x98a   : > { %1456 = vrot.lane.b32.xlu0 %v4092_v29, %s4455_s21  ;;  %v4094_v31 = vpop.eup %4093 }
 0x98b   : > { %v1426_v33 = vadd.f32 1.0, %v4094_v31 }
 0x98d   : > { %4095 = vrcp.f32 %v1426_v33 }
 0x98e   : > { %4097 = vpow2.f32 %v3469_v34 }
 0x99a   : > { %v4096_v46 = vpop.eup %4095 }
 0x99b   : > { %v4098_v38 = vpop.eup %4097  ;;  %v1430_v47 = vmul.f32 %v4096_v46, %v4891_v36 }
 0x99c   : > { %v1450_v42 = vadd.f32 1.0, %v4098_v38 }
 0x99e   : > { %4099 = vrcp.f32 %v1450_v42 }
 0x9ab   : > { %v4100_v54 = vpop.eup %4099 }
 0x9ac   : > { %v1454_v52 = vmul.f32 %v4100_v54, %v4896_v8 }
 0x9df   : > { %v1433_v35 = vpop.permute.xlu1 %1432 }
 0x9e0   : > { %v1435_v37 = vmul.f32 %v4096_v46, %v1433_v35 }
 0x9e2   : > { %1437 = vrot.lane.b32.xlu1 %v1435_v37, %s4456_s29 }
 0x9fc   : > { %v1457_v44 = vpop.permute.xlu0 %1456 }
 0x9fd   : > { %v1459_v45 = vmul.f32 %v4100_v54, %v1457_v44 }
 0x9ff   : > { %1461 = vrot.lane.b32.xlu0 %v1459_v45, %s4456_s29 }
 0xa54   : > { %v1438_v48 = vpop.permute.xlu1 %1437 }
 0xa55   : > { %v4935_v50 = vadd.f32 %v1438_v48, %v1430_v47 }
 0xa57   : > { %4101 = vtanh.f32 %v4935_v50 }
 0xa64   : > { %v4102_v41 = vpop.eup %4101 }
 0xa65   : > { %1443 = vrot.lane.b32.xlu1 %v4102_v41, %s4455_s21 }
 0xa71   : > { %v1462_v53 = vpop.permute.xlu0 %1461 }
 0xa72   : > { %v4940_v55 = vadd.f32 %v1462_v53, %v1454_v52 }
 0xa74   : > { %4103 = vtanh.f32 %v4940_v55 }
 0xa81   : > { %v4104_v57 = vpop.eup %4103 }
 0xa82   : > { %1467 = vrot.lane.b32.xlu0 %v4104_v57, %s4455_s21 }
 0xad7   : > { %v1444_v58 = vpop.permute.xlu1 %1443 }
 0xad8   : > { %v1446_v59 = vmul.f32 %v4096_v46, %v1444_v58 }
 0xada   : > { %1472 = vrot.lane.b32.xlu1 %v1446_v59, %s4456_s29 }
 0xaf4   : > { %v1468_v61 = vpop.permute.xlu0 %1467 }
 0xaf5   : > { %v4945_v63 = vmul.f32 %v4100_v54, %v1468_v61 }
 0xaf7   : > { %1558 = vrot.lane.b32.xlu0 %v4945_v63, %s4456_s29 }
 0xb4c   : > { %v1473_v2 = vpop.permute.xlu1 %1472 }
 0xb4d   : > { %1476 = vst.msk [vmem:[#allocation3 + $0x18] sm:$0xff] %vm641_vm2, %v1473_v2  ;;  %3747 = vmatmul.mubr.msk.f32.vlgmr.msra.gmra.mxu0 %vm641_vm2, %v1473_v2 }
 0xb4e   : > { %3761 = vmatpush3.msra.mxu0 %v4689_v3  ;;  %3768 = vmatprep.mubr.msk.f32.mxu0 %vm4454_vm0, %v4453_v1 }
 0xb4f   : > { %3762 = vmatprep.subr.mxu0 %v4453_v1 }
 0xb50   : > { %3763 = vmatpush3.msra.mxu0 %v4692_v6 }
 0xb51   : > { %3764 = vmatprep.subr.mxu0 %v4453_v1 }
 0xb52   : > { %3765 = vmatpush3.msra.mxu0 %v4696_v9 }
 0xb53   : > { %3766 = vmatprep.subr.mxu0 %v4453_v1 }
 0xb54   : > { %3767 = vmatpush3.msra.mxu0 %v4700_v10 }
 0xb55   : > { %3782 = vmatprep.subr.mxu0 %v4453_v1 }
 0xb69   : > { %v1559_v36 = vpop.permute.xlu0 %1558 }
 0xb6a   : > { %3758 = vmatmul.mubr.msk.f32.vlgmr.msra.gmra.mxu1 %vm641_vm2, %v1559_v36 }
 0xb6b   : > { %3772 = vmatpush3.msra.mxu1 %v4707_v12  ;;  %3779 = vmatprep.mubr.msk.f32.mxu1 %vm4454_vm0, %v4453_v1 }
 0xb6c   : > { %3773 = vmatprep.subr.mxu1 %v4453_v1 }
 0xb6d   : > { %3774 = vmatpush3.msra.mxu1 %v4713_v13 }
 0xb6e   : > { %3775 = vmatprep.subr.mxu1 %v4453_v1 }
 0xb6f   : > { %3776 = vmatpush3.msra.mxu1 %v4720_v15 }
 0xb70   : > { %3777 = vmatprep.subr.mxu1 %v4453_v1 }
 0xb71   : > { %3778 = vmatpush3.msra.mxu1 %v4726_v16 }
 0xb72   : > { %3793 = vmatprep.subr.mxu1 %v4453_v1 }
 0xc0d   : > { %v1553_v4 = vpop.f32.mrf.mxu0 }
 0xc0e   : > { %v1557_v5 = vadd.f32 %v1553_v4, %v4786_v51 }
 0xc0f   : > { %v3748_v7 = vpop.f32.mrf.mxu0 }
 0xc10   : > { %4105 = vtanh.f32 %v1557_v5  ;;  %v3472_v19 = vmul.f32 -1.442695, %v1557_v5 }
 0xc1d   : > { %v4106_v8 = vpop.eup %4105 }
 0xc1e   : > { %1642 = vrot.lane.b32.xlu1 %v4106_v8, %s4455_s21 }
 0xc2a   : > { %v1628_v62 = vpop.f32.mrf.mxu1 }
 0xc2b   : > { %v1632_v11 = vadd.f32 %v1628_v62, %v4784_v49 }
 0xc2c   : > { %v3759_v14 = vpop.f32.mrf.mxu1 }
 0xc2d   : > { %4107 = vtanh.f32 %v1632_v11  ;;  %v3473_v22 = vmul.f32 -1.442695, %v1632_v11 }
 0xc2e   : > { %4109 = vpow2.f32 %v3472_v19 }
 0xc3a   : > { %v4108_v17 = vpop.eup %4107 }
 0xc3b   : > { %1666 = vrot.lane.b32.xlu0 %v4108_v17, %s4455_s21  ;;  %v4110_v20 = vpop.eup %4109 }
 0xc3c   : > { %v1636_v21 = vadd.f32 1.0, %v4110_v20 }
 0xc3e   : > { %4111 = vrcp.f32 %v1636_v21 }
 0xc3f   : > { %4113 = vpow2.f32 %v3473_v22 }
 0xc4b   : > { %v4112_v51 = vpop.eup %4111 }
 0xc4c   : > { %v4114_v25 = vpop.eup %4113  ;;  %v1640_v30 = vmul.f32 %v4112_v51, %v4935_v50 }
 0xc4d   : > { %v1660_v26 = vadd.f32 1.0, %v4114_v25 }
 0xc4f   : > { %4115 = vrcp.f32 %v1660_v26  ;;  %v4233_v26 = vld [vmem:[#allocation10 + $0x18] sm:$0xff] }
 0xc5c   : > { %v4116_v49 = vpop.eup %4115 }
 0xc5d   : > { %v1664_v46 = vmul.f32 %v4116_v49, %v4940_v55 }
 0xc90   : > { %v1643_v23 = vpop.permute.xlu1 %1642 }
 0xc91   : > { %v1645_v24 = vmul.f32 %v4112_v51, %v1643_v23 }
 0xc93   : > { %1647 = vrot.lane.b32.xlu1 %v1645_v24, %s4456_s29 }
 0xcad   : > { %v1667_v27 = vpop.permute.xlu0 %1666 }
 0xcae   : > { %v1669_v29 = vmul.f32 %v4116_v49, %v1667_v27  ;;  %v4235_v27 = vld [vmem:[#allocation10 + $0x8] sm:$0xff] }
 0xcb0   : > { %1671 = vrot.lane.b32.xlu0 %v1669_v29, %s4456_s29  ;;  %v4236_v29 = vld [vmem:[#allocation10] sm:$0xff] }
 0xd05   : > { %v1648_v31 = vpop.permute.xlu1 %1647 }
 0xd06   : > { %v4979_v33 = vadd.f32 %v1648_v31, %v1640_v30 }
 0xd08   : > { %4117 = vtanh.f32 %v4979_v33 }
 0xd15   : > { %v4118_v34 = vpop.eup %4117 }
 0xd16   : > { %1653 = vrot.lane.b32.xlu1 %v4118_v34, %s4455_s21 }
 0xd22   : > { %v1672_v35 = vpop.permute.xlu0 %1671 }
 0xd23   : > { %v4984_v37 = vadd.f32 %v1672_v35, %v1664_v46 }
 0xd25   : > { %4119 = vtanh.f32 %v4984_v37 }
 0xd32   : > { %v4120_v38 = vpop.eup %4119 }
 0xd33   : > { %1677 = vrot.lane.b32.xlu0 %v4120_v38, %s4455_s21 }
 0xd88   : > { %v1654_v42 = vpop.permute.xlu1 %1653 }
 0xd89   : > { %v1656_v54 = vmul.f32 %v4112_v51, %v1654_v42 }
 0xd8b   : > { %1682 = vrot.lane.b32.xlu1 %v1656_v54, %s4456_s29 }
 0xda5   : > { %v1678_v44 = vpop.permute.xlu0 %1677 }
 0xda6   : > { %v4989_v45 = vmul.f32 %v4116_v49, %v1678_v44  ;;  %v4234_v49 = vld [vmem:[#allocation10 + $0x10] sm:$0xff] }
 0xda8   : > { %1766 = vrot.lane.b32.xlu0 %v4989_v45, %s4456_s29 }
 0xdfd   : > { %v4993_v47 = vpop.permute.xlu1 %1682 }
 0xdfe   : > { %3769 = vmatmul.mubr.msk.f32.vlgmr.msra.gmra.mxu0 %vm641_vm2, %v4993_v47 }
 0xdff   : > { %3783 = vmatpush3.msra.mxu0 %v4689_v3  ;;  %3790 = vmatprep.mubr.msk.f32.mxu0 %vm4454_vm0, %v4453_v1 }
 0xe00   : > { %3784 = vmatprep.subr.mxu0 %v4453_v1 }
 0xe01   : > { %3785 = vmatpush3.msra.mxu0 %v4692_v6 }
 0xe02   : > { %3786 = vmatprep.subr.mxu0 %v4453_v1 }
 0xe03   : > { %3787 = vmatpush3.msra.mxu0 %v4696_v9 }
 0xe04   : > { %3788 = vmatprep.subr.mxu0 %v4453_v1 }
 0xe05   : > { %3789 = vmatpush3.msra.mxu0 %v4700_v10 }
 0xe06   : > { %3804 = vmatprep.subr.mxu0 %v4453_v1 }
 0xe1a   : > { %v1767_v48 = vpop.permute.xlu0 %1766 }
 0xe1b   : > { %3780 = vmatmul.mubr.msk.f32.vlgmr.msra.gmra.mxu1 %vm641_vm2, %v1767_v48 }
 0xe1c   : > { %3794 = vmatpush3.msra.mxu1 %v4707_v12  ;;  %3801 = vmatprep.mubr.msk.f32.mxu1 %vm4454_vm0, %v4453_v1 }
 0xe1d   : > { %3795 = vmatprep.subr.mxu1 %v4453_v1 }
 0xe1e   : > { %3796 = vmatpush3.msra.mxu1 %v4713_v13 }
 0xe1f   : > { %3797 = vmatprep.subr.mxu1 %v4453_v1 }
 0xe20   : > { %3798 = vmatpush3.msra.mxu1 %v4720_v15 }
 0xe21   : > { %3799 = vmatprep.subr.mxu1 %v4453_v1 }
 0xe22   : > { %3800 = vmatpush3.msra.mxu1 %v4726_v16 }
 0xe23   : > { %3815 = vmatprep.subr.mxu1 %v4453_v1 }
 0xebe   : > { %v1761_v3 = vpop.f32.mrf.mxu0 }
 0xebf   : > { %v1765_v6 = vadd.f32 %v1761_v3, %v4791_v56 }
 0xec0   : > { %v3770_v9 = vpop.f32.mrf.mxu0 }
 0xec1   : > { %4121 = vtanh.f32 %v1765_v6  ;;  %v3476_v55 = vmul.f32 -1.442695, %v1765_v6 }
 0xece   : > { %v4122_v10 = vpop.eup %4121 }
 0xecf   : > { %1850 = vrot.lane.b32.xlu1 %v4122_v10, %s4455_s21 }
 0xedb   : > { %v1836_v50 = vpop.f32.mrf.mxu1 }
 0xedc   : > { %v1840_v41 = vadd.f32 %v1836_v50, %v4780_v43 }
 0xedd   : > { %v3781_v52 = vpop.f32.mrf.mxu1 }
 0xede   : > { %4123 = vtanh.f32 %v1840_v41  ;;  %v3477_v59 = vmul.f32 -1.442695, %v1840_v41 }
 0xedf   : > { %4125 = vpow2.f32 %v3476_v55 }
 0xeeb   : > { %v4124_v53 = vpop.eup %4123 }
 0xeec   : > { %1874 = vrot.lane.b32.xlu0 %v4124_v53, %s4455_s21  ;;  %v4126_v57 = vpop.eup %4125 }
 0xeed   : > { %v1844_v58 = vadd.f32 1.0, %v4126_v57 }
 0xeef   : > { %4127 = vrcp.f32 %v1844_v58 }
 0xef0   : > { %4129 = vpow2.f32 %v3477_v59 }
 0xefc   : > { %v4128_v56 = vpop.eup %4127 }
 0xefd   : > { %v4130_v36 = vpop.eup %4129  ;;  %v1848_v8 = vmul.f32 %v4128_v56, %v4979_v33 }
 0xefe   : > { %v1868_v4 = vadd.f32 1.0, %v4130_v36 }
 0xf00   : > { %4131 = vrcp.f32 %v1868_v4 }
 0xf0d   : > { %v4132_v43 = vpop.eup %4131 }
 0xf0e   : > { %v1872_v17 = vmul.f32 %v4132_v43, %v4984_v37 }
 0xf41   : > { %v1851_v61 = vpop.permute.xlu1 %1850 }
 0xf42   : > { %v1853_v2 = vmul.f32 %v4128_v56, %v1851_v61 }
 0xf44   : > { %1855 = vrot.lane.b32.xlu1 %v1853_v2, %s4456_s29 }
 0xf5e   : > { %v1875_v5 = vpop.permute.xlu0 %1874 }
 0xf5f   : > { %v1877_v7 = vmul.f32 %v4132_v43, %v1875_v5 }
 0xf61   : > { %1879 = vrot.lane.b32.xlu0 %v1877_v7, %s4456_s29 }
 0xfb6   : > { %v1856_v62 = vpop.permute.xlu1 %1855 }
 0xfb7   : > { %v5025_v11 = vadd.f32 %v1856_v62, %v1848_v8 }
 0xfb9   : > { %4133 = vtanh.f32 %v5025_v11 }
 0xfc6   : > { %v4134_v14 = vpop.eup %4133 }
 0xfc7   : > { %1861 = vrot.lane.b32.xlu1 %v4134_v14, %s4455_s21 }
 0xfd3   : > { %v1880_v19 = vpop.permute.xlu0 %1879 }
 0xfd4   : > { %v5030_v20 = vadd.f32 %v1880_v19, %v1872_v17 }
 0xfd6   : > { %4135 = vtanh.f32 %v5030_v20 }
 0xfe3   : > { %v4136_v21 = vpop.eup %4135 }
 0xfe4   : > { %1885 = vrot.lane.b32.xlu0 %v4136_v21, %s4455_s21 }
0x1039   : > { %v1862_v22 = vpop.permute.xlu1 %1861 }
0x103a   : > { %v1864_v51 = vmul.f32 %v4128_v56, %v1862_v22 }
0x103c   : > { %1890 = vrot.lane.b32.xlu1 %v1864_v51, %s4456_s29 }
0x1056   : > { %v1886_v23 = vpop.permute.xlu0 %1885 }
0x1057   : > { %v5035_v24 = vmul.f32 %v4132_v43, %v1886_v23 }
0x1059   : > { %1974 = vrot.lane.b32.xlu0 %v5035_v24, %s4456_s29 }
0x10ae   : > { %v5039_v25 = vpop.permute.xlu1 %1890 }
0x10af   : > { %3791 = vmatmul.mubr.msk.f32.vlgmr.msra.gmra.mxu0 %vm641_vm2, %v5039_v25 }
0x10b0   : > { %3805 = vmatpush3.msra.mxu0 %v4233_v26  ;;  %3812 = vmatprep.mubr.msk.f32.mxu0 %vm4454_vm0, %v4453_v1 }
0x10b1   : > { %3806 = vmatprep.subr.mxu0 %v4453_v1 }
0x10b2   : > { %3807 = vmatpush3.msra.mxu0 %v4234_v49 }
0x10b3   : > { %3808 = vmatprep.subr.mxu0 %v4453_v1 }
0x10b4   : > { %3809 = vmatpush3.msra.mxu0 %v4235_v27 }
0x10b5   : > { %3810 = vmatprep.subr.mxu0 %v4453_v1 }
0x10b6   : > { %3811 = vmatpush3.msra.mxu0 %v4236_v29 }
0x10cb   : > { %v1975_v30 = vpop.permute.xlu0 %1974 }
0x10cc   : > { %3802 = vmatmul.mubr.msk.f32.vlgmr.msra.gmra.mxu1 %vm641_vm2, %v1975_v30 }
0x10cd   : > { %3816 = vmatpush3.msra.mxu1 %v4707_v12  ;;  %3823 = vmatprep.mubr.msk.f32.mxu1 %vm4454_vm0, %v4453_v1 }
0x10ce   : > { %3817 = vmatprep.subr.mxu1 %v4453_v1 }
0x10cf   : > { %3818 = vmatpush3.msra.mxu1 %v4713_v13 }
0x10d0   : > { %3819 = vmatprep.subr.mxu1 %v4453_v1 }
0x10d1   : > { %3820 = vmatpush3.msra.mxu1 %v4720_v15 }
0x10d2   : > { %3821 = vmatprep.subr.mxu1 %v4453_v1 }
0x10d3   : > { %3822 = vmatpush3.msra.mxu1 %v4726_v16 }
0x10d4   : > { %3854 = vmatprep.subr.mxu1 %v4453_v1 }
0x116f   : > { %v1969_v31 = vpop.f32.mrf.mxu0 }
0x1170   : > { %v1973_v12 = vadd.f32 %v1969_v31, %v4795_v60 }
0x1171   : > { %v3792_v33 = vpop.f32.mrf.mxu0 }
0x1172   : > { %4137 = vtanh.f32 %v1973_v12  ;;  %v3480_v37 = vmul.f32 -1.442695, %v1973_v12 }
0x117f   : > { %v4138_v34 = vpop.eup %4137 }
0x1180   : > { %2058 = vrot.lane.b32.xlu1 %v4138_v34, %s4455_s21 }
0x118c   : > { %v2044_v46 = vpop.f32.mrf.mxu1 }
0x118d   : > { %v2048_v13 = vadd.f32 %v2044_v46, %v4776_v39 }
0x118e   : > { %v3803_v35 = vpop.f32.mrf.mxu1 }
0x118f   : > { %4139 = vtanh.f32 %v2048_v13  ;;  %v3481_v42 = vmul.f32 -1.442695, %v2048_v13 }
0x1190   : > { %4141 = vpow2.f32 %v3480_v37  ;;  %v2329_v37 = vld [vmem:[#allocation13 + $0x30] sm:$0xff] }
0x119c   : > { %v4140_v15 = vpop.eup %4139 }
0x119d   : > { %2082 = vrot.lane.b32.xlu0 %v4140_v15, %s4455_s21  ;;  %v4142_v16 = vpop.eup %4141  ;;  %v2330_v15 = vld [vmem:[#allocation13 + $0x38] sm:$0xff] }
0x119e   : > { %v2052_v38 = vadd.f32 1.0, %v4142_v16  ;;  %3826 = vmatprep.subr.mxu0 %v2330_v15  ;;  %v2328_v16 = vld [vmem:[#allocation13 + $0x28] sm:$0xff] }
0x11a0   : > { %4143 = vrcp.f32 %v2052_v38 }
0x11a1   : > { %4145 = vpow2.f32 %v3481_v42 }
0x11ad   : > { %v4144_v60 = vpop.eup %4143 }
0x11ae   : > { %v4146_v48 = vpop.eup %4145  ;;  %v2056_v10 = vmul.f32 %v4144_v60, %v5025_v11 }
0x11af   : > { %v2076_v3 = vadd.f32 1.0, %v4146_v48  ;;  %v2324_v48 = vld [vmem:[#allocation13 + $0x8] sm:$0xff] }
0x11b1   : > { %4147 = vrcp.f32 %v2076_v3  ;;  %v2323_v3 = vld [vmem:[#allocation13] sm:$0xff] }
0x11be   : > { %v4148_v39 = vpop.eup %4147 }
0x11bf   : > { %v2080_v53 = vmul.f32 %v4148_v39, %v5030_v20 }
0x11f2   : > { %v2059_v54 = vpop.permute.xlu1 %2058 }
0x11f3   : > { %v2061_v44 = vmul.f32 %v4144_v60, %v2059_v54  ;;  %v2326_v54 = vld [vmem:[#allocation13 + $0x18] sm:$0xff] }
0x11f5   : > { %2063 = vrot.lane.b32.xlu1 %v2061_v44, %s4456_s29  ;;  %v2325_v44 = vld [vmem:[#allocation13 + $0x10] sm:$0xff] }
0x120f   : > { %v2083_v6 = vpop.permute.xlu0 %2082 }
0x1210   : > { %v2085_v9 = vmul.f32 %v4148_v39, %v2083_v6 }
0x1212   : > { %2087 = vrot.lane.b32.xlu0 %v2085_v9, %s4456_s29  ;;  %v5111_v9 = vld [vmem:[#allocation14 + $0x10] sm:$0xff] }
0x1267   : > { %v2064_v50 = vpop.permute.xlu1 %2063 }
0x1268   : > { %v2066_v41 = vadd.f32 %v2064_v50, %v2056_v10  ;;  %v5115_v10 = vld [vmem:[#allocation14 + $0x8] sm:$0xff]  ;;  %v5120_v50 = vld [vmem:[#allocation14] sm:$0xff] }
0x126a   : > { %4149 = vtanh.f32 %v2066_v41 }
0x1277   : > { %v4150_v52 = vpop.eup %4149 }
0x1278   : > { %2069 = vrot.lane.b32.xlu1 %v4150_v52, %s4455_s21 }
0x1284   : > { %v2088_v55 = vpop.permute.xlu0 %2087 }
0x1285   : > { %v2090_v57 = vadd.f32 %v2088_v55, %v2080_v53 }
0x1287   : > { %4151 = vtanh.f32 %v2090_v57 }
0x1294   : > { %v4152_v58 = vpop.eup %4151 }
0x1295   : > { %2093 = vrot.lane.b32.xlu0 %v4152_v58, %s4455_s21 }
0x12ea   : > { %v2070_v59 = vpop.permute.xlu1 %2069 }
0x12eb   : > { %v2072_v56 = vmul.f32 %v4144_v60, %v2070_v59 }
0x12ed   : > { %2098 = vrot.lane.b32.xlu1 %v2072_v56, %s4456_s29 }
0x1307   : > { %v2094_v61 = vpop.permute.xlu0 %2093 }
0x1308   : > { %v2096_v2 = vmul.f32 %v4148_v39, %v2094_v61 }
0x130a   : > { %2182 = vrot.lane.b32.xlu0 %v2096_v2, %s4456_s29 }
0x135f   : > { %v5071_v36 = vpop.permute.xlu1 %2098 }
0x1360   : > { %3813 = vmatmul.mubr.msk.f32.vlgmr.msra.gmra.mxu0 %vm641_vm2, %v5071_v36 }
0x1361   : > { %3827 = vmatpush3.msra.mxu0 %v2330_v15 }
0x1362   : > { %3828 = vmatprep.subr.mxu0 %v2329_v37 }
0x1363   : > { %3829 = vmatpush3.msra.mxu0 %v2329_v37 }
0x1364   : > { %3830 = vmatprep.subr.mxu0 %v2328_v16 }
0x1365   : > { %3831 = vmatpush3.msra.mxu0 %v2328_v16 }
0x137c   : > { %v2183_v4 = vpop.permute.xlu0 %2182 }
0x137d   : > { %3824 = vmatmul.mubr.msk.f32.vlgmr.msra.gmra.mxu1 %vm641_vm2, %v2183_v4 }
0x137e   : > { %3862 = vmatprep.mubr.msk.f32.mxu1 %vm4454_vm0, %v4453_v1 }
0x1420   : > { %v2177_v43 = vpop.f32.mrf.mxu0 }
0x1421   : > { %v2181_v5 = vadd.f32 %v2177_v43, %v4799_v0  ;;  %v3486_v43 = vld [vmem:[%s5304_s7] ss:$0 sm:$0xff] }
0x1422   : > { %v3814_v7 = vpop.f32.mrf.mxu0 }
0x1423   : > { %4153 = vtanh.f32 %v2181_v5  ;;  %v3484_v19 = vmul.f32 -1.442695, %v2181_v5 }
0x1430   : > { %v4154_v8 = vpop.eup %4153 }
0x1431   : > { %2266 = vrot.lane.b32.xlu1 %v4154_v8, %s4455_s21 }
0x143d   : > { %v2252_v62 = vpop.f32.mrf.mxu1 }
0x143e   : > { %v2256_v11 = vadd.f32 %v2252_v62, %v4772_v32 }
0x143f   : > { %v3825_v14 = vpop.f32.mrf.mxu1 }
0x1440   : > { %4155 = vtanh.f32 %v2256_v11  ;;  %v3485_v22 = vmul.f32 -1.442695, %v2256_v11 }
0x1441   : > { %4157 = vpow2.f32 %v3484_v19 }
0x144d   : > { %v4156_v17 = vpop.eup %4155 }
0x144e   : > { %2290 = vrot.lane.b32.xlu0 %v4156_v17, %s4455_s21  ;;  %v4158_v20 = vpop.eup %4157 }
0x144f   : > { %v2260_v21 = vadd.f32 1.0, %v4158_v20 }
0x1451   : > { %4159 = vrcp.f32 %v2260_v21 }
0x1452   : > { %4161 = vpow2.f32 %v3485_v22 }
0x145e   : > { %v5082_v0 = vpop.eup %4159 }
0x145f   : > { %v4162_v32 = vpop.eup %4161  ;;  %v2264_v30 = vmul.f32 %v5082_v0, %v2066_v41 }
0x1460   : > { %v2284_v26 = vadd.f32 1.0, %v4162_v32 }
0x1462   : > { %4163 = vrcp.f32 %v2284_v26 }
0x146f   : > { %v4164_v49 = vpop.eup %4163 }
0x1470   : > { %v2288_v34 = vmul.f32 %v4164_v49, %v2090_v57 }
0x14a3   : > { %v2267_v51 = vpop.permute.xlu1 %2266 }
0x14a4   : > { %v2269_v23 = vmul.f32 %v5082_v0, %v2267_v51 }
0x14a6   : > { %2271 = vrot.lane.b32.xlu1 %v2269_v23, %s4456_s29 }
0x14c0   : > { %v2291_v27 = vpop.permute.xlu0 %2290 }
0x14c1   : > { %v2293_v29 = vmul.f32 %v4164_v49, %v2291_v27 }
0x14c3   : > { %2295 = vrot.lane.b32.xlu0 %v2293_v29, %s4456_s29 }
0x1518   : > { %v2272_v31 = vpop.permute.xlu1 %2271 }
0x1519   : > { %v2274_v12 = vadd.f32 %v2272_v31, %v2264_v30 }
0x151b   : > { %4165 = vtanh.f32 %v2274_v12 }
0x1528   : > { %v4166_v33 = vpop.eup %4165 }
0x1529   : > { %2277 = vrot.lane.b32.xlu1 %v4166_v33, %s4455_s21 }
0x152d   : > { %2103 = vrot.lane.b32.xlu1 %v2096_v2, %s4455_s21 }
0x1531   : > { %1687 = vrot.lane.b32.xlu1 %v4989_v45, %s4455_s21  ;;  %v2327_v45 = vld [vmem:[#allocation13 + $0x20] sm:$0xff] }
0x1532   : > { %3832 = vmatprep.subr.mxu0 %v2327_v45 }
0x1533   : > { %3833 = vmatpush3.msra.mxu0 %v2327_v45 }
0x1534   : > { %3834 = vmatprep.subr.mxu0 %v2326_v54 }
0x1535   : > { %1266 = vrot.lane.b32.xlu1 %v4901_v18, %s4455_s21  ;;  %v2296_v46 = vpop.permute.xlu0 %2295  ;;  %3835 = vmatpush3.msra.mxu0 %v2326_v54 }
0x1536   : > { %v2298_v13 = vadd.f32 %v2296_v46, %v2288_v34  ;;  %3836 = vmatprep.subr.mxu0 %v2325_v44 }
0x1537   : > { %3837 = vmatpush3.msra.mxu0 %v2325_v44 }
0x1538   : > { %4167 = vtanh.f32 %v2298_v13  ;;  %3838 = vmatprep.subr.mxu0 %v2324_v48 }
0x1539   : > { %841 = vrot.lane.b32.xlu1 %v4813_v40, %s4455_s21  ;;  %3839 = vmatpush3.msra.mxu0 %v2324_v48 }
0x153a   : > { %3840 = vmatprep.subr.mxu0 %v2323_v3 }
0x153b   : > { %3841 = vmatpush3.msra.mxu0 %v2323_v3 }
0x153c   : > { %3887 = vmatprep.subr.mxu0 %v4453_v1 }
0x1545   : > { %v4168_v35 = vpop.eup %4167 }
0x1546   : > { %2301 = vrot.lane.b32.xlu0 %v4168_v35, %s4455_s21 }
0x159b   : > { %v2278_v18 = vpop.permute.xlu1 %2277 }
0x159f   : > { %v2104_v38 = vpop.permute.xlu1 %2103 }
0x15a0   : > { %2106 = vst.msk [vmem:[#allocation3 + $0x8] sm:$0xff] %vm845_vm3, %v2104_v38 }
0x15a3   : > { %v1688_v40 = vpop.permute.xlu1 %1687 }
0x15a4   : > { %1690 = vst.msk [vmem:[#allocation3 + $0x18] sm:$0xff] %vm845_vm3, %v1688_v40 }
0x15a7   : > { %v1267_v42 = vpop.permute.xlu1 %1266  ;;  %v2316_v53 = vld [vmem:[#allocation3 + $0x8] sm:$0xff] }
0x15a8   : > { %1270 = vst.msk [vmem:[#allocation3 + $0x28] sm:$0xff] %vm845_vm3, %v1267_v42 }
0x15a9   : > { %1893 = vst.msk [vmem:[#allocation3 + $0x28] sm:$0xff] %vm641_vm2, %v5039_v25  ;;  %v5105_v25 = vld [vmem:[#allocation14 + $0x18] sm:$0xff] }
0x15aa   : > { %3855 = vmatpush3.msra.mxu1 %v5105_v25 }
0x15ab   : > { %v842_v60 = vpop.permute.xlu1 %841  ;;  %3856 = vmatprep.subr.mxu1 %v4453_v1  ;;  %v2318_v58 = vld [vmem:[#allocation3 + $0x18] sm:$0xff] }
0x15ac   : > { %846 = vst.msk [vmem:[#allocation3 + $0x38] sm:$0xff] %vm845_vm3, %v842_v60  ;;  %3857 = vmatpush3.msra.mxu1 %v5111_v9 }
0x15ad   : > { %3858 = vmatprep.subr.mxu1 %v4453_v1 }
0x15ae   : > { %3859 = vmatpush3.msra.mxu1 %v5115_v10 }
0x15af   : > { %3860 = vmatprep.subr.mxu1 %v4453_v1 }
0x15b0   : > { %3861 = vmatpush3.msra.mxu1 %v5120_v50  ;;  %v2320_v56 = vld [vmem:[#allocation3 + $0x28] sm:$0xff] }
0x15b1   : > { %3863 = vmatmul.mubr.f32.vlgmr.msra.gmra.mxu1 %v4453_v1  ;;  %3865 = vmatprep.subr.mxu1 %v4453_v1 }
0x15b2   : > { %3866 = vmatpush3.msra.mxu1 %v5105_v25  ;;  %3873 = vmatprep.mubr.msk.f32.mxu1 %vm4454_vm0, %v4453_v1 }
0x15b3   : > { %3867 = vmatprep.subr.mxu1 %v4453_v1 }
0x15b4   : > { %3868 = vmatpush3.msra.mxu1 %v5111_v9 }
0x15b5   : > { %3869 = vmatprep.subr.mxu1 %v4453_v1 }
0x15b6   : > { %3870 = vmatpush3.msra.mxu1 %v5115_v10 }
0x15b7   : > { %3871 = vmatprep.subr.mxu1 %v4453_v1 }
0x15b8   : > { %v2302_v39 = vpop.permute.xlu0 %2301  ;;  %3872 = vmatpush3.msra.mxu1 %v5120_v50 }
0x15b9   : > { %v2304_v6 = vmul.f32 %v4164_v49, %v2302_v39  ;;  %3876 = vmatprep.subr.mxu1 %v4453_v1 }
0x15bb   : > { %2311 = vrot.lane.b32.xlu0 %v2304_v6, %s4455_s21 }
0x15bf   : > { %1895 = vrot.lane.b32.xlu0 %v5035_v24, %s4455_s21 }
0x15c3   : > { %1478 = vrot.lane.b32.xlu0 %v4945_v63, %s4455_s21  ;;  %v2280_v63 = vmul.f32 %v5082_v0, %v2278_v18 }
0x15c7   : > { %1054 = vrot.lane.b32.xlu0 %v4857_v28, %s4455_s21 }
0x15cb   : > { %2306 = vrot.lane.b32.xlu0 %v2280_v63, %s4456_s29 }
0x162d   : > { %v2312_v28 = vpop.permute.xlu0 %2311 }
0x162e   : > { %2314 = vst.msk [vmem:[#allocation3] sm:$0xff] %vm845_vm3, %v2312_v28 }
0x1631   : > { %v1896_v24 = vpop.permute.xlu0 %1895 }
0x1632   : > { %1898 = vst.msk [vmem:[#allocation3 + $0x10] sm:$0xff] %vm845_vm3, %v1896_v24 }
0x1635   : > { %v1479_v41 = vpop.permute.xlu0 %1478  ;;  %v2315_v52 = vld [vmem:[#allocation3] sm:$0xff] }
0x1636   : > { %1482 = vst.msk [vmem:[#allocation3 + $0x20] sm:$0xff] %vm845_vm3, %v1479_v41  ;;  %3842 = vmatprep.mubr.msk.f32.mxu0 %vm2338_vm4, %v2315_v52 }
0x1637   : > { %1685 = vst.msk [vmem:[#allocation3 + $0x20] sm:$0xff] %vm641_vm2, %v4993_v47  ;;  %3843 = vmatmul.mubr.msk.f32.vlgmr.msra.gmra.mxu0 %vm2338_vm4, %v2316_v53 }
0x1638   : > { %3888 = vmatpush3.msra.mxu0 %v5105_v25 }
0x1639   : > { %v1055_v55 = vpop.permute.xlu0 %1054  ;;  %v2317_v57 = vld [vmem:[#allocation3 + $0x10] sm:$0xff]  ;;  %3889 = vmatprep.subr.mxu0 %v4453_v1 }
0x163a   : > { %1058 = vst.msk [vmem:[#allocation3 + $0x30] sm:$0xff] %vm845_vm3, %v1055_v55  ;;  %3845 = vmatprep.mubr.msk.f32.mxu0 %vm2338_vm4, %v2317_v57  ;;  %3890 = vmatpush3.msra.mxu0 %v5111_v9 }
0x163b   : > { %2101 = vst.msk [vmem:[#allocation3 + $0x30] sm:$0xff] %vm641_vm2, %v5071_v36  ;;  %3846 = vmatmul.mubr.msk.f32.gmra.mxu0 %vm2338_vm4, %v2318_v58  ;;  %3891 = vmatprep.subr.mxu0 %v4453_v1 }
0x163c   : > { %3892 = vmatpush3.msra.mxu0 %v5115_v10 }
0x163d   : > { %v2307_v47 = vpop.permute.xlu0 %2306  ;;  %3893 = vmatprep.subr.mxu0 %v4453_v1 }
0x163e   : > { %2309 = vst.msk [vmem:[#allocation3 + $0x38] sm:$0xff] %vm641_vm2, %v2307_v47  ;;  %v2319_v59 = vld [vmem:[#allocation3 + $0x20] sm:$0xff]  ;;  %3894 = vmatpush3.msra.mxu0 %v5120_v50 }
0x163f   : > { %3848 = vmatprep.mubr.msk.f32.mxu0 %vm2338_vm4, %v2319_v59  ;;  %3909 = vmatprep.subr.mxu0 %v4453_v1 }
0x1640   : > { %3849 = vmatmul.mubr.msk.f32.gmra.mxu0 %vm2338_vm4, %v2320_v56 }
0x1642   : > { %v2321_v61 = vld [vmem:[#allocation3 + $0x30] sm:$0xff] }
0x1643   : > { %3851 = vmatprep.mubr.msk.f32.mxu0 %vm2338_vm4, %v2321_v61 }
0x1645   : > { %v2322_v2 = vld [vmem:[#allocation3 + $0x38] sm:$0xff] }
0x1646   : > { %3852 = vmatmul.mubr.msk.f32.gmra.mxu0 %vm2338_vm4, %v2322_v2 }
0x1647   : > { %3895 = vmatprep.mubr.msk.f32.mxu0 %vm4454_vm0, %v4453_v1 }
0x1671   : > { %v2548_v36 = vpop.f32.mrf.mxu1 }
0x1673   : > { %v3864_v4 = vpop.f32.mrf.mxu1 }
0x16f7   : > { %v3844_v5 = vpop.f32.mrf.mxu0 }
0x16f8   : > { %v5170_v7 = vadd.f32 %v3844_v5, %v3486_v43 }
0x16f9   : > { %v2429_v8 = vpop.f32.mrf.mxu0 }
0x16fa   : > { %v5172_v62 = vadd.f32 %v3486_v43, %v2429_v8 }
0x16fb   : > { %v3847_v11 = vpop.f32.mrf.mxu0 }
0x16fc   : > { %v5174_v14 = vadd.f32 %v3847_v11, %v3486_v43 }
0x16fd   : > { %v2439_v17 = vpop.f32.mrf.mxu0 }
0x16fe   : > { %v5176_v19 = vadd.f32 %v3486_v43, %v2439_v17 }
0x1700   : > { %v3850_v20 = vpop.f32.mrf.mxu0 }
0x1701   : > { %v5178_v21 = vadd.f32 %v3850_v20, %v3486_v43 }
0x1702   : > { %v2449_v22 = vpop.f32.mrf.mxu0 }
0x1703   : > { %v5180_v0 = vadd.f32 %v3486_v43, %v2449_v22 }
0x1706   : > { %v3853_v51 = vpop.f32.mrf.mxu0 }
0x1707   : > { %v2465_v23 = vadd.f32 %v3853_v51, %v3486_v43 }
0x1708   : > { %v2459_v16 = vpop.f32.mrf.mxu0 }
0x1709   : > { %v2552_v32 = vadd.f32 %v2548_v36, %v2465_v23  ;;  %v2460_v45 = vadd.f32 %v3486_v43, %v2459_v16 }
0x170b   : > { %4169 = vtanh.f32 %v2552_v32  ;;  %v3495_v49 = vmul.f32 -1.442695, %v2552_v32 }
0x170d   : > { %4171 = vpow2.f32 %v3495_v49 }
0x1718   : > { %v4170_v26 = vpop.eup %4169 }
0x1719   : > { %2562 = vrot.lane.b32.xlu1 %v4170_v26, %s4455_s21 }
0x171a   : > { %v4172_v27 = vpop.eup %4171 }
0x171b   : > { %v2556_v29 = vadd.f32 1.0, %v4172_v27 }
0x171d   : > { %4173 = vrcp.f32 %v2556_v29 }
0x172a   : > { %v4174_v30 = vpop.eup %4173 }
0x172b   : > { %v2560_v33 = vmul.f32 0.0, %v4174_v30 }
0x178b   : > { %v2563_v31 = vpop.permute.xlu1 %2562 }
0x178c   : > { %v2565_v12 = vmul.f32 %v4174_v30, %v2563_v31 }
0x178e   : > { %2567 = vrot.lane.b32.xlu0 %v2565_v12, %s4456_s29 }
0x1800   : > { %v2568_v34 = vpop.permute.xlu0 %2567 }
0x1801   : > { %v2570_v46 = vadd.f32 %v2568_v34, %v2560_v33 }
0x1803   : > { %4175 = vtanh.f32 %v2570_v46 }
0x1810   : > { %v4176_v13 = vpop.eup %4175 }
0x1811   : > { %2573 = vrot.lane.b32.xlu1 %v4176_v13, %s4455_s21 }
0x1883   : > { %v2574_v35 = vpop.permute.xlu1 %2573 }
0x1884   : > { %v2576_v15 = vmul.f32 %v4174_v30, %v2574_v35 }
0x1886   : > { %2580 = vrot.lane.b32.xlu0 %v2576_v15, %s4456_s29 }
0x18f8   : > { %v2581_v37 = vpop.permute.xlu0 %2580 }
0x18f9   : > { %3874 = vmatmul.mubr.msk.f32.vlgmr.msra.gmra.mxu1 %vm641_vm2, %v2581_v37 }
0x18fa   : > { %3877 = vmatpush3.msra.mxu1 %v5105_v25  ;;  %3884 = vmatprep.mubr.msk.f32.mxu1 %vm4454_vm0, %v4453_v1 }
0x18fb   : > { %3878 = vmatprep.subr.mxu1 %v4453_v1 }
0x18fc   : > { %3879 = vmatpush3.msra.mxu1 %v5111_v9 }
0x18fd   : > { %3880 = vmatprep.subr.mxu1 %v4453_v1 }
0x18fe   : > { %3881 = vmatpush3.msra.mxu1 %v5115_v10 }
0x18ff   : > { %3882 = vmatprep.subr.mxu1 %v4453_v1 }
0x1900   : > { %3883 = vmatpush3.msra.mxu1 %v5120_v50 }
0x1901   : > { %3898 = vmatprep.subr.mxu1 %v4453_v1 }
0x19b9   : > { %v2650_v18 = vpop.f32.mrf.mxu1 }
0x19ba   : > { %v2654_v38 = vadd.f32 %v2650_v18, %v2460_v45 }
0x19bb   : > { %v3875_v40 = vpop.f32.mrf.mxu1 }
0x19bc   : > { %4177 = vtanh.f32 %v2654_v38  ;;  %v3497_v60 = vmul.f32 -1.442695, %v2654_v38 }
0x19be   : > { %4179 = vpow2.f32 %v3497_v60 }
0x19c9   : > { %v4178_v42 = vpop.eup %4177 }
0x19ca   : > { %2664 = vrot.lane.b32.xlu1 %v4178_v42, %s4455_s21 }
0x19cb   : > { %v4180_v54 = vpop.eup %4179 }
0x19cc   : > { %v2658_v44 = vadd.f32 1.0, %v4180_v54 }
0x19ce   : > { %4181 = vrcp.f32 %v2658_v44 }
0x19db   : > { %v4182_v48 = vpop.eup %4181 }
0x19dc   : > { %v2662_v6 = vmul.f32 %v4182_v48, %v2570_v46 }
0x1a3c   : > { %v2665_v3 = vpop.permute.xlu1 %2664 }
0x1a3d   : > { %v2667_v39 = vmul.f32 %v4182_v48, %v2665_v3 }
0x1a3f   : > { %2669 = vrot.lane.b32.xlu0 %v2667_v39, %s4456_s29 }
0x1ab1   : > { %v2670_v63 = vpop.permute.xlu0 %2669 }
0x1ab2   : > { %v2672_v28 = vadd.f32 %v2670_v63, %v2662_v6 }
0x1ab4   : > { %4183 = vtanh.f32 %v2672_v28 }
0x1ac1   : > { %v4184_v24 = vpop.eup %4183 }
0x1ac2   : > { %2675 = vrot.lane.b32.xlu1 %v4184_v24, %s4455_s21 }
0x1b34   : > { %v2676_v41 = vpop.permute.xlu1 %2675 }
0x1b35   : > { %v2678_v52 = vmul.f32 %v4182_v48, %v2676_v41 }
0x1b37   : > { %2682 = vrot.lane.b32.xlu0 %v2678_v52, %s4456_s29 }
0x1ba9   : > { %v2683_v53 = vpop.permute.xlu0 %2682 }
0x1baa   : > { %3885 = vmatmul.mubr.msk.f32.vlgmr.msra.gmra.mxu1 %vm641_vm2, %v2683_v53 }
0x1bab   : > { %3899 = vmatpush3.msra.mxu1 %v5105_v25  ;;  %3906 = vmatprep.mubr.msk.f32.mxu1 %vm4454_vm0, %v4453_v1 }
0x1bac   : > { %3900 = vmatprep.subr.mxu1 %v4453_v1 }
0x1bad   : > { %3901 = vmatpush3.msra.mxu1 %v5111_v9 }
0x1bae   : > { %3902 = vmatprep.subr.mxu1 %v4453_v1 }
0x1baf   : > { %3903 = vmatpush3.msra.mxu1 %v5115_v10 }
0x1bb0   : > { %3904 = vmatprep.subr.mxu1 %v4453_v1 }
0x1bb1   : > { %3905 = vmatpush3.msra.mxu1 %v5120_v50 }
0x1bb2   : > { %3920 = vmatprep.subr.mxu1 %v4453_v1 }
0x1c6a   : > { %v2752_v55 = vpop.f32.mrf.mxu1 }
0x1c6b   : > { %v2756_v57 = vadd.f32 %v2752_v55, %v5178_v21 }
0x1c6c   : > { %v3886_v58 = vpop.f32.mrf.mxu1 }
0x1c6d   : > { %4185 = vtanh.f32 %v2756_v57  ;;  %v3499_v59 = vmul.f32 -1.442695, %v2756_v57 }
0x1c6f   : > { %4187 = vpow2.f32 %v3499_v59 }
0x1c7a   : > { %v4186_v47 = vpop.eup %4185 }
0x1c7b   : > { %2766 = vrot.lane.b32.xlu1 %v4186_v47, %s4455_s21 }
0x1c7c   : > { %v4188_v56 = vpop.eup %4187 }
0x1c7d   : > { %v2760_v61 = vadd.f32 1.0, %v4188_v56 }
0x1c7f   : > { %4189 = vrcp.f32 %v2760_v61 }
0x1c8c   : > { %v4190_v2 = vpop.eup %4189 }
0x1c8d   : > { %v2764_v43 = vmul.f32 %v4190_v2, %v2672_v28 }
0x1ced   : > { %v2767_v36 = vpop.permute.xlu1 %2766 }
0x1cee   : > { %v2769_v4 = vmul.f32 %v4190_v2, %v2767_v36 }
0x1cf0   : > { %2771 = vrot.lane.b32.xlu0 %v2769_v4, %s4456_s29 }
0x1d62   : > { %v2772_v5 = vpop.permute.xlu0 %2771 }
0x1d63   : > { %v2774_v8 = vadd.f32 %v2772_v5, %v2764_v43 }
0x1d65   : > { %4191 = vtanh.f32 %v2774_v8 }
0x1d72   : > { %v4192_v11 = vpop.eup %4191 }
0x1d73   : > { %2777 = vrot.lane.b32.xlu1 %v4192_v11, %s4455_s21 }
0x1de5   : > { %v2778_v17 = vpop.permute.xlu1 %2777 }
0x1de6   : > { %v2780_v20 = vmul.f32 %v4190_v2, %v2778_v17 }
0x1de8   : > { %2784 = vrot.lane.b32.xlu0 %v2780_v20, %s4456_s29 }
0x1e5a   : > { %v2785_v21 = vpop.permute.xlu0 %2784 }
0x1e5b   : > { %3896 = vmatmul.mubr.msk.f32.vlgmr.msra.gmra.mxu0 %vm641_vm2, %v2785_v21 }
0x1e5c   : > { %3910 = vmatpush3.msra.mxu0 %v5105_v25  ;;  %3917 = vmatprep.mubr.msk.f32.mxu0 %vm4454_vm0, %v4453_v1 }
0x1e5d   : > { %3911 = vmatprep.subr.mxu0 %v4453_v1 }
0x1e5e   : > { %3912 = vmatpush3.msra.mxu0 %v5111_v9 }
0x1e5f   : > { %3913 = vmatprep.subr.mxu0 %v4453_v1 }
0x1e60   : > { %3914 = vmatpush3.msra.mxu0 %v5115_v10 }
0x1e61   : > { %3915 = vmatprep.subr.mxu0 %v4453_v1 }
0x1e62   : > { %3916 = vmatpush3.msra.mxu0 %v5120_v50 }
0x1e63   : > { %3931 = vmatprep.subr.mxu0 %v4453_v1 }
0x1f1b   : > { %v2854_v22 = vpop.f32.mrf.mxu0 }
0x1f1c   : > { %v2858_v51 = vadd.f32 %v2854_v22, %v5180_v0 }
0x1f1d   : > { %v3897_v23 = vpop.f32.mrf.mxu0 }
0x1f1e   : > { %4193 = vtanh.f32 %v2858_v51  ;;  %v3501_v26 = vmul.f32 -1.442695, %v2858_v51 }
0x1f20   : > { %4195 = vpow2.f32 %v3501_v26 }
0x1f2b   : > { %v4194_v32 = vpop.eup %4193 }
0x1f2c   : > { %2868 = vrot.lane.b32.xlu1 %v4194_v32, %s4455_s21 }
0x1f2d   : > { %v4196_v49 = vpop.eup %4195 }
0x1f2e   : > { %v2862_v27 = vadd.f32 1.0, %v4196_v49 }
0x1f30   : > { %4197 = vrcp.f32 %v2862_v27 }
0x1f3d   : > { %v4198_v29 = vpop.eup %4197 }
0x1f3e   : > { %v2866_v12 = vmul.f32 %v4198_v29, %v2774_v8 }
0x1f9e   : > { %v2869_v30 = vpop.permute.xlu1 %2868 }
0x1f9f   : > { %v2871_v31 = vmul.f32 %v4198_v29, %v2869_v30 }
0x1fa1   : > { %2873 = vrot.lane.b32.xlu0 %v2871_v31, %s4456_s29 }
0x2013   : > { %v2874_v33 = vpop.permute.xlu0 %2873 }
0x2014   : > { %v2876_v34 = vadd.f32 %v2874_v33, %v2866_v12 }
0x2016   : > { %4199 = vtanh.f32 %v2876_v34 }
0x2023   : > { %v4200_v0 = vpop.eup %4199 }
0x2024   : > { %2879 = vrot.lane.b32.xlu1 %v4200_v0, %s4455_s21 }
0x2096   : > { %v2880_v46 = vpop.permute.xlu1 %2879 }
0x2097   : > { %v2882_v13 = vmul.f32 %v4198_v29, %v2880_v46 }
0x2099   : > { %2886 = vrot.lane.b32.xlu0 %v2882_v13, %s4456_s29  ;;  %v3510_v13 = vld [vmem:[%s5305_s8] ss:$0 sm:$0xff] }
0x210b   : > { %v2887_v35 = vpop.permute.xlu0 %2886 }
0x210c   : > { %3907 = vmatmul.mubr.msk.f32.vlgmr.msra.gmra.mxu1 %vm641_vm2, %v2887_v35 }
0x210d   : > { %3921 = vmatpush3.msra.mxu1 %v5105_v25  ;;  %3928 = vmatprep.mubr.msk.f32.mxu1 %vm4454_vm0, %v4453_v1 }
0x210e   : > { %3922 = vmatprep.subr.mxu1 %v4453_v1 }
0x210f   : > { %3923 = vmatpush3.msra.mxu1 %v5111_v9 }
0x2110   : > { %3924 = vmatprep.subr.mxu1 %v4453_v1 }
0x2111   : > { %3925 = vmatpush3.msra.mxu1 %v5115_v10 }
0x2112   : > { %3926 = vmatprep.subr.mxu1 %v4453_v1 }
0x2113   : > { %3927 = vmatpush3.msra.mxu1 %v5120_v50 }
0x21cc   : > { %v2956_v15 = vpop.f32.mrf.mxu1 }
0x21cd   : > { %v2960_v37 = vadd.f32 %v2956_v15, %v5174_v14 }
0x21ce   : > { %v3908_v16 = vpop.f32.mrf.mxu1 }
0x21cf   : > { %4201 = vtanh.f32 %v2960_v37  ;;  %v3503_v18 = vmul.f32 -1.442695, %v2960_v37 }
0x21d1   : > { %4203 = vpow2.f32 %v3503_v18 }
0x21dc   : > { %v4202_v45 = vpop.eup %4201 }
0x21dd   : > { %2970 = vrot.lane.b32.xlu1 %v4202_v45, %s4455_s21 }
0x21de   : > { %v4204_v38 = vpop.eup %4203 }
0x21df   : > { %v2964_v40 = vadd.f32 1.0, %v4204_v38 }
0x21e1   : > { %4205 = vrcp.f32 %v2964_v40 }
0x21ee   : > { %v4206_v42 = vpop.eup %4205 }
0x21ef   : > { %v2968_v44 = vmul.f32 %v4206_v42, %v2876_v34 }
0x224f   : > { %v2971_v60 = vpop.permute.xlu1 %2970 }
0x2250   : > { %v2973_v54 = vmul.f32 %v4206_v42, %v2971_v60  ;;  %v3511_v60 = vld [vmem:[#allocation5] ss:$0 sm:$0xff] }
0x2252   : > { %2975 = vrot.lane.b32.xlu0 %v2973_v54, %s4456_s29 }
0x22c4   : > { %v2976_v48 = vpop.permute.xlu0 %2975 }
0x22c5   : > { %v2978_v3 = vadd.f32 %v2976_v48, %v2968_v44 }
0x22c7   : > { %4207 = vtanh.f32 %v2978_v3 }
0x22d4   : > { %v4208_v14 = vpop.eup %4207 }
0x22d5   : > { %2981 = vrot.lane.b32.xlu1 %v4208_v14, %s4455_s21 }
0x2347   : > { %v2982_v39 = vpop.permute.xlu1 %2981 }
0x2348   : > { %v2984_v6 = vmul.f32 %v4206_v42, %v2982_v39 }
0x234a   : > { %2988 = vrot.lane.b32.xlu0 %v2984_v6, %s4456_s29 }
0x23bc   : > { %v2989_v63 = vpop.permute.xlu0 %2988 }
0x23bd   : > { %3918 = vmatmul.mubr.msk.f32.vlgmr.msra.gmra.mxu0 %vm641_vm2, %v2989_v63 }
0x23be   : > { %3932 = vmatpush3.msra.mxu0 %v5105_v25  ;;  %3939 = vmatprep.mubr.msk.f32.mxu0 %vm4454_vm0, %v4453_v1 }
0x23bf   : > { %3933 = vmatprep.subr.mxu0 %v4453_v1 }
0x23c0   : > { %3934 = vmatpush3.msra.mxu0 %v5111_v9 }
0x23c1   : > { %3935 = vmatprep.subr.mxu0 %v4453_v1 }
0x23c2   : > { %3936 = vmatpush3.msra.mxu0 %v5115_v10 }
0x23c3   : > { %3937 = vmatprep.subr.mxu0 %v4453_v1 }
0x23c4   : > { %3938 = vmatpush3.msra.mxu0 %v5120_v50 }
0x247d   : > { %v3058_v28 = vpop.f32.mrf.mxu0 }
0x247e   : > { %v3062_v24 = vadd.f32 %v3058_v28, %v5176_v19 }
0x247f   : > { %v3919_v41 = vpop.f32.mrf.mxu0 }
0x2480   : > { %4209 = vtanh.f32 %v3062_v24  ;;  %v3505_v52 = vmul.f32 -1.442695, %v3062_v24 }
0x2482   : > { %4211 = vpow2.f32 %v3505_v52 }
0x248d   : > { %v4210_v25 = vpop.eup %4209 }
0x248e   : > { %3072 = vrot.lane.b32.xlu1 %v4210_v25, %s4455_s21 }
0x248f   : > { %v4212_v53 = vpop.eup %4211 }
0x2490   : > { %v3066_v9 = vadd.f32 1.0, %v4212_v53 }
0x2492   : > { %4213 = vrcp.f32 %v3066_v9 }
0x249f   : > { %v4214_v55 = vpop.eup %4213 }
0x24a0   : > { %v3070_v1 = vmul.f32 %v4214_v55, %v2978_v3 }
0x2500   : > { %v3073_v57 = vpop.permute.xlu1 %3072 }
0x2501   : > { %v3075_v10 = vmul.f32 %v4214_v55, %v3073_v57 }
0x2503   : > { %3077 = vrot.lane.b32.xlu0 %v3075_v10, %s4456_s29 }
0x2575   : > { %v3078_v50 = vpop.permute.xlu0 %3077 }
0x2576   : > { %v3080_v58 = vadd.f32 %v3078_v50, %v3070_v1 }
0x2578   : > { %4215 = vtanh.f32 %v3080_v58 }
0x2585   : > { %v4216_v19 = vpop.eup %4215 }
0x2586   : > { %3083 = vrot.lane.b32.xlu1 %v4216_v19, %s4455_s21 }
0x25f8   : > { %v3084_v47 = vpop.permute.xlu1 %3083 }
0x25f9   : > { %v3086_v59 = vmul.f32 %v4214_v55, %v3084_v47 }
0x25fb   : > { %3090 = vrot.lane.b32.xlu0 %v3086_v59, %s4456_s29 }
0x266d   : > { %v3091_v56 = vpop.permute.xlu0 %3090 }
0x266e   : > { %3929 = vmatmul.mubr.msk.f32.vlgmr.msra.gmra.mxu1 %vm641_vm2, %v3091_v56 }
0x272e   : > { %v3160_v61 = vpop.f32.mrf.mxu1 }
0x272f   : > { %v3164_v2 = vadd.f32 %v3160_v61, %v5170_v7 }
0x2730   : > { %v3930_v36 = vpop.f32.mrf.mxu1 }
0x2731   : > { %4217 = vtanh.f32 %v3164_v2  ;;  %v3507_v43 = vmul.f32 -1.442695, %v3164_v2 }
0x2733   : > { %4219 = vpow2.f32 %v3507_v43 }
0x273e   : > { %v4218_v4 = vpop.eup %4217 }
0x273f   : > { %3174 = vrot.lane.b32.xlu1 %v4218_v4, %s4455_s21 }
0x2740   : > { %v4220_v5 = vpop.eup %4219 }
0x2741   : > { %v3168_v8 = vadd.f32 1.0, %v4220_v5 }
0x2743   : > { %4221 = vrcp.f32 %v3168_v8 }
0x2750   : > { %v4222_v11 = vpop.eup %4221 }
0x2751   : > { %v3172_v21 = vmul.f32 %v4222_v11, %v3080_v58 }
0x27b1   : > { %v3175_v17 = vpop.permute.xlu1 %3174 }
0x27b2   : > { %v3177_v20 = vmul.f32 %v4222_v11, %v3175_v17 }
0x27b4   : > { %3179 = vrot.lane.b32.xlu0 %v3177_v20, %s4456_s29 }
0x2826   : > { %v3180_v22 = vpop.permute.xlu0 %3179 }
0x2827   : > { %v3182_v51 = vadd.f32 %v3180_v22, %v3172_v21 }
0x2829   : > { %4223 = vtanh.f32 %v3182_v51 }
0x2836   : > { %v4224_v7 = vpop.eup %4223 }
0x2837   : > { %3185 = vrot.lane.b32.xlu1 %v4224_v7, %s4455_s21 }
0x28a9   : > { %v3186_v23 = vpop.permute.xlu1 %3185 }
0x28aa   : > { %v3188_v32 = vmul.f32 %v4222_v11, %v3186_v23 }
0x28ac   : > { %3191 = vrot.lane.b32.xlu0 %v3188_v32, %s4456_s29 }
0x291e   : > { %v3192_v26 = vpop.permute.xlu0 %3191 }
0x291f   : > { %3940 = vmatmul.mubr.msk.f32.vlgmr.msra.gmra.mxu0 %vm641_vm2, %v3192_v26 }
0x29df   : > { %v3261_v49 = vpop.f32.mrf.mxu0 }
0x29e0   : > { %v3265_v27 = vadd.f32 %v3261_v49, %v5172_v62 }
0x29e1   : > { %v3941_v29 = vpop.f32.mrf.mxu0 }
0x29e2   : > { %4225 = vtanh.f32 %v3265_v27  ;;  %v3509_v31 = vmul.f32 -1.442695, %v3265_v27 }
0x29e4   : > { %4227 = vpow2.f32 %v3509_v31 }
0x29ef   : > { %v4226_v30 = vpop.eup %4225 }
0x29f0   : > { %3275 = vrot.lane.b32.xlu1 %v4226_v30, %s4455_s21 }
0x29f1   : > { %v4228_v12 = vpop.eup %4227 }
0x29f2   : > { %v3269_v33 = vadd.f32 1.0, %v4228_v12 }
0x29f4   : > { %4229 = vrcp.f32 %v3269_v33 }
0x2a01   : > { %v4230_v34 = vpop.eup %4229 }
0x2a02   : > { %v3273_v62 = vmul.f32 %v4230_v34, %v3182_v51 }
0x2a62   : > { %v3276_v0 = vpop.permute.xlu1 %3275 }
0x2a63   : > { %v3278_v46 = vmul.f32 %v4230_v34, %v3276_v0 }
0x2a65   : > { %3280 = vrot.lane.b32.xlu0 %v3278_v46, %s4456_s29 }
0x2a69   : > { %3296 = vrot.lane.b32.xlu0 %v3510_v13, %s4457_s12 }
0x2ad7   : > { %v3281_v35 = vpop.permute.xlu0 %3280 }
0x2ad8   : > { %v3283_v15 = vadd.f32 %v3281_v35, %v3273_v62 }
0x2ada   : > { %4231 = vtanh.f32 %v3283_v15 }
0x2adb   : > { %v3297_v45 = vpop.permute.xlu0 %3296 }
0x2ae7   : > { %v4232_v37 = vpop.eup %4231 }
0x2ae8   : > { %3286 = vrot.lane.b32.xlu1 %v4232_v37, %s4455_s21 }
0x2b5a   : > { %v3287_v16 = vpop.permute.xlu1 %3286 }
0x2b5b   : > { %v3289_v18 = vmul.f32 %v4230_v34, %v3287_v16 }
0x2b5d   : > { %v3299_v38 = vmul.f32 %v3297_v45, %v3289_v18 }
0x2b5f   : > { %3301 = vrot.lane.b32.xlu1 %v3299_v38, %s4456_s29 }
0x2bd1   : > { %v3302_v40 = vpop.permute.xlu1 %3301 }
0x2bd2   : > { %v3304_v42 = vsel %vm641_vm2, %v3302_v40, 0.0 }
0x2bd3   : > { %3305 = vadd.xlane.f32.xlu0 %v3304_v42 }
0x2c5c   : > { %v3306_v54 = vpop.xlane.xlu0 %3305 }
0x2c5d   : > { %v3314_v44 = vadd.f32 %v3511_v60, %v3306_v54 }
0x2c5f   : > { %3316 = vst.msk [vmem:[%s451_s28] sm:$0xff] %vm3315_vm5, %v3314_v44 }
0x2c60 PF: > { %p25_p9 = scmp.ge.s32.totalorder %s4615_s26, 4   ;;  %s5328_s15 = smov %s4433_s16 }
0x2c61   : > { %s5329_s16 = smov %s4437_s17  ;;  %s5330_s17 = smov %s4625_s11 }
0x2c62   : > { %s5331_s18 = smov %s4615_s26  ;;  %27 = sbr.rel (!%p25_p9) target bundleno = 9 (0x9), region = 141 }
0x2c67   :  { %3336 = vsyncpa [#allocation7], 1 }
0x2c68   :  { %3338 = vsyncpa [#allocation7 + $0x1], 1 }
0x2c69   :  { %3339 = vsyncpa [#allocation9], 1 }
0x2c6a   :  { %3340 = vsyncpa [#allocation12], 1 }
0x2c6b   :  { %3341 = vsyncpa [#allocation15], 1 }

</bundles_post_ra>
